<compile_context>
chip_gen: v6e
topology: v6e:2x2x1
jax: 0.10.0
libtpu: 0.0.40
codegen_flags: <defaults>
</compile_context>

<pallas_src>
import jax
import jax.numpy as jnp
from jax import lax
from jax.experimental import pallas as pl
from jax.experimental.pallas import tpu as pltpu


def _round_up(x, d):
    return ((x + d - 1) // d) * d


def _pad_to(x, shape):
    pads = [(0, s - d) for d, s in zip(x.shape, shape)]
    if any(p[1] for p in pads):
        x = jnp.pad(x, pads)
    return x


def _log_softmax_last(x):
    mx = jnp.max(x, axis=-1, keepdims=True)
    return x - (mx + jnp.log(jnp.sum(jnp.exp(x - mx), axis=-1, keepdims=True)))


def _make_kernel(k, bn, bm, sub_m, cache_across_m):
    """Build the kernel for one (n-tile, m-tile) grid step.

    a/b/c     : (bn, bm) int32 observed class indices
    sa        : (bn, k)        marginal logits
    sxa       : (bn, k, k)     conditional logits      (softmax over last axis)
    syax      : (bn, k, k, k)  2nd conditional logits  (softmax over last axis)
    out       : (bn, bm) f32   log p(a, b, c)
    combined  : VMEM scratch (bn, k*k, k) = full joint log-prob table
                combined[n, a*k+b, c] = lsyax[n,a,b,c] + lsxa[n,a,b] + lsa[n,a]
    """
    kk = k * k
    num_sub = bm // sub_m
    f32 = jnp.float32

    def kernel(a_ref, b_ref, c_ref, sa_ref, sxa_ref, syax_ref, out_ref,
               combined_ref):

        def build_table():
            lsa = _log_softmax_last(sa_ref[...])                  # (bn, k)
            lsxa = _log_softmax_last(sxa_ref[...])                # (bn, k, k)
            prior = lsxa + lsa[:, :, None]                        # (bn, k, k)
            lsyax = _log_softmax_last(syax_ref[...])              # (bn, k, k, k)
            # (bn,k,k,k) -> (bn,k*k,k): merges a leading dim into the sublane
            # dim (layout-preserving for k a multiple of 8), done once per build.
            combined_ref[...] = (lsyax + prior[..., None]).reshape(bn, kk, k)

        if cache_across_m:
            # m axis is the innermost sequential ("arbitrary") grid axis: build
            # the table once per n-tile and reuse it for every m-tile.
            @pl.when(pl.program_id(1) == 0)
            def _():
                build_table()
        else:
            # m axis is sharded across TensorCores ("parallel"): recompute the
            # tiny (k^3 per model) table every step -- negligible vs. a 2048-lane
            # m block, and required for correctness without the sequential cache.
            build_table()

        # Hoisted iotas: built once per grid step, reused by every sub-chunk
        # compare (only compare+convert remain inside the loop).
        iota_kk = lax.broadcasted_iota(jnp.int32, (bn, kk, sub_m), 1)
        iota_k = lax.broadcasted_iota(jnp.int32, (bn, k, sub_m), 1)

        def body(s, carry):
            off = pl.multiple_of(s * sub_m, sub_m)
            sl = pl.ds(off, sub_m)
            a = a_ref[:, sl]
            b = b_ref[:, sl]
            c = c_ref[:, sl]
            ab = a * k + b                                        # flattened (a, b)

            # One gather: contract the k^2 axis on the MXU against the combined
            # table, producing only a (bn, k, sub_m) intermediate...
            oab = (iota_kk == ab[:, None, :]).astype(f32)         # (bn, kk, sub_m)
            rowsel = jnp.einsum('nsq,nsm->nqm', combined_ref[...], oab,
                                preferred_element_type=f32)       # (bn, k, sub_m)
            # ...then a k-deep select/reduce on the VPU for the c index.
            oc = (iota_k == c[:, None, :]).astype(f32)            # (bn, k, sub_m)
            out_ref[:, sl] = jnp.sum(oc * rowsel, axis=1)
            return carry

        lax.fori_loop(0, num_sub, body, 0, unroll=True)

    return kernel


def categorical_module_forward(sa, sxa, syax, a, b, c, *, model_mode=1,
                               block_n=8, block_m=2048, sub_m=256):
    """JAX wrapper mirroring CategoricalModule(sa, sxa, syax, model_mode).forward(a, b, c)."""
    n, k = sa.shape
    m = a.shape[1]
    if model_mode == 2:
        b, c = c, b

    # Tile geometry: n on sublanes (multiple of 8), m on lanes.  The per-grid-step
    # m block is large (amortizes fixed per-step cost and approaches the HBM
    # roofline); the kernel walks it in lane-dense sub-chunks of `sub` so the
    # one-hot working set stays bounded.  Pad in the wrapper, slice after.
    bn = _round_up(min(block_n, _round_up(n, 8)), 8)
    sub = _round_up(min(sub_m, _round_up(m, 128)), 128)
    bm = min(_round_up(block_m, sub), _round_up(m, sub))
    n_p = _round_up(n, bn)
    m_p = _round_up(m, bm)
    num_n = n_p // bn
    num_m = m_p // bm

    # The per-n-tile table cache is only valid when the m axis is sequential.
    # With a single n tile and several m tiles, shard the m axis across the
    # TensorCores instead (v7x megacore) and recompute the table per step.
    cache_across_m = (num_n >= 2) or (num_m == 1)
    dim_sem = (("parallel", "arbitrary") if cache_across_m
               else ("parallel", "parallel"))

    f32 = jnp.float32
    sa_p = _pad_to(sa.astype(f32), (n_p, k))
    sxa_p = _pad_to(sxa.astype(f32), (n_p, k, k))
    syax_p = _pad_to(syax.astype(f32), (n_p, k, k, k))
    a_p = _pad_to(a.astype(jnp.int32), (n_p, m_p))
    b_p = _pad_to(b.astype(jnp.int32), (n_p, m_p))
    c_p = _pad_to(c.astype(jnp.int32), (n_p, m_p))

    kernel = _make_kernel(k, bn, bm, sub, cache_across_m)

    table_builds = num_n if cache_across_m else num_n * num_m
    cost = pl.CostEstimate(
        flops=2 * n_p * m_p * (k * k * k + k),
        transcendentals=table_builds * bn * (k + k * k + k ** 3),
        bytes_accessed=4 * 4 * n_p * m_p
                       + 4 * num_m * n_p * (k + k * k + k ** 3),
    )

    out = pl.pallas_call(
        kernel,
        out_shape=jax.ShapeDtypeStruct((n_p, m_p), f32),
        grid=(num_n, num_m),
        in_specs=[
            pl.BlockSpec((bn, bm), lambda ni, mi: (ni, mi)),            # a
            pl.BlockSpec((bn, bm), lambda ni, mi: (ni, mi)),            # b
            pl.BlockSpec((bn, bm), lambda ni, mi: (ni, mi)),            # c
            pl.BlockSpec((bn, k), lambda ni, mi: (ni, 0)),              # sa
            pl.BlockSpec((bn, k, k), lambda ni, mi: (ni, 0, 0)),        # sxa
            pl.BlockSpec((bn, k, k, k), lambda ni, mi: (ni, 0, 0, 0)),  # syax
        ],
        out_specs=pl.BlockSpec((bn, bm), lambda ni, mi: (ni, mi)),
        scratch_shapes=[
            pltpu.VMEM((bn, k * k, k), f32),   # combined log-prob table
        ],
        compiler_params=pltpu.CompilerParams(
            dimension_semantics=dim_sem,
            # Working set at defaults (bn=8, bm=2048, k=8) is ~2-3 MiB; keep an
            # explicit limit that is safe on v7x (64 MiB physical) as well.
            vmem_limit_bytes=32 * 1024 * 1024,
        ),
        cost_estimate=cost,
    )(a_p, b_p, c_p, sa_p, sxa_p, syax_p)

    return out[:n, :m]


def reference_forward(sa, sxa, syax, a, b, c, *, model_mode=1):
    """Pure-JAX reference matching the PyTorch forward."""
    if model_mode == 2:
        b, c = c, b
    lsa = jax.nn.log_softmax(sa.astype(jnp.float32), axis=1)
    lsxa = jax.nn.log_softmax(sxa.astype(jnp.float32), axis=2)
    lsyax = jax.nn.log_softmax(syax.astype(jnp.float32), axis=3)
    joint = lsyax + (lsxa + lsa[:, :, None])[:, :, :, None]
    n, m = a.shape
    rows = jnp.broadcast_to(jnp.arange(n)[:, None], (n, m))
    return joint[rows, a, b, c]


if __name__ == "__main__":
    base_key = jax.random.PRNGKey(0)

    def run_case(case_id, n, k, m, model_mode, **kw):
        key = jax.random.fold_in(base_key, case_id)
        ks = jax.random.split(key, 6)
        sa = jax.random.normal(ks[0], (n, k), dtype=jnp.float32)
        sxa = jax.random.normal(ks[1], (n, k, k), dtype=jnp.float32)
        syax = jax.random.normal(ks[2], (n, k, k, k), dtype=jnp.float32)
        # Center like CategoricalStatic / sample_joint do (not required for correctness).
        sa = sa - sa.mean(axis=1, keepdims=True)
        sxa = sxa - sxa.mean(axis=2, keepdims=True)
        syax = syax - syax.mean(axis=3, keepdims=True)
        a = jax.random.randint(ks[3], (n, m), 0, k, dtype=jnp.int32)
        b = jax.random.randint(ks[4], (n, m), 0, k, dtype=jnp.int32)
        c = jax.random.randint(ks[5], (n, m), 0, k, dtype=jnp.int32)

        out = jax.block_until_ready(
            categorical_module_forward(sa, sxa, syax, a, b, c,
                                       model_mode=model_mode, **kw))
        ref = reference_forward(sa, sxa, syax, a, b, c, model_mode=model_mode)
        assert out.shape == (n, m)
        assert jnp.allclose(out, ref, atol=1e-5, rtol=1e-5), (case_id, out, ref)

    run_case(0, n=4, k=8, m=16, model_mode=1)                  # single padded tile
    run_case(1, n=4, k=8, m=16, model_mode=2)                  # b/c swap path
    run_case(2, n=12, k=8, m=300, model_mode=1)                # 2 n-tiles, default big m block
    run_case(3, n=12, k=8, m=300, model_mode=1, block_m=256)   # cached path, multiple m tiles
    run_case(4, n=8, k=8, m=600, model_mode=2, block_m=256)    # 1 n-tile -> m-parallel recompute path

    print("KERNEL_OK")
</pallas_src>

<mosaic_0001>
module attributes {stable_mosaic.version = 11 : i64} {
  func.func @kernel(%arg0: i32, %arg1: i32, %arg2: memref<8x128xi32, #tpu.memory_space<vmem>>, %arg3: memref<8x128xi32, #tpu.memory_space<vmem>>, %arg4: memref<8x128xi32, #tpu.memory_space<vmem>>, %arg5: memref<8x8xf32, #tpu.memory_space<vmem>>, %arg6: memref<8x8x8xf32, #tpu.memory_space<vmem>>, %arg7: memref<8x8x8x8xf32, #tpu.memory_space<vmem>>, %arg8: memref<8x128xf32, #tpu.memory_space<vmem>>, %arg9: memref<8x64x8xf32, #tpu.memory_space<vmem>>) attributes {dimension_semantics = [#tpu.dimension_semantics<parallel>, #tpu.dimension_semantics<arbitrary>], iteration_bounds = array<i64: 1, 1>, scalar_prefetch = 0 : i64, scratch_operands = 1 : i64, tpu.core_type = #tpu.core_type<tc>, window_params = [{transform_indices = @transform_0, window_bounds = array<i64: 8, 128>}, {transform_indices = @transform_1, window_bounds = array<i64: 8, 128>}, {transform_indices = @transform_2, window_bounds = array<i64: 8, 128>}, {transform_indices = @transform_3, window_bounds = array<i64: 8, 8>}, {transform_indices = @transform_4, window_bounds = array<i64: 8, 8, 8>}, {transform_indices = @transform_5, window_bounds = array<i64: 8, 8, 8, 8>}, {transform_indices = @transform_6, window_bounds = array<i64: 8, 128>}]} {
    %c0_i32 = arith.constant 0 : i32
    %0 = arith.cmpi eq, %arg1, %c0_i32 : i32
    %1 = arith.extui %0 : i1 to i32
    %c0_i32_0 = arith.constant 0 : i32
    %2 = arith.cmpi ne, %1, %c0_i32_0 : i32
    scf.if %2 {
      %c0_9 = arith.constant 0 : index
      %c0_10 = arith.constant 0 : index
      %32 = vector.load %arg5[%c0_9, %c0_10] : memref<8x8xf32, #tpu.memory_space<vmem>>, vector<8x8xf32>
      %cst_11 = arith.constant dense<0xFF800000> : vector<8xf32>
      %33 = vector.multi_reduction <maximumf>, %32, %cst_11 [1] : vector<8x8xf32> to vector<8xf32>
      %34 = vector.shape_cast %33 : vector<8xf32> to vector<8x1xf32>
      %35 = vector.broadcast %34 : vector<8x1xf32> to vector<8x8xf32>
      %36 = arith.subf %32, %35 : vector<8x8xf32>
      %37 = math.exp %36 : vector<8x8xf32>
      %cst_12 = arith.constant dense<0.000000e+00> : vector<8xf32>
      %38 = vector.multi_reduction <add>, %37, %cst_12 [1] : vector<8x8xf32> to vector<8xf32>
      %39 = vector.shape_cast %38 : vector<8xf32> to vector<8x1xf32>
      %40 = math.log %39 : vector<8x1xf32>
      %41 = arith.addf %34, %40 : vector<8x1xf32>
      %42 = vector.broadcast %41 : vector<8x1xf32> to vector<8x8xf32>
      %43 = arith.subf %32, %42 : vector<8x8xf32>
      %c0_13 = arith.constant 0 : index
      %c0_14 = arith.constant 0 : index
      %c0_15 = arith.constant 0 : index
      %44 = vector.load %arg6[%c0_13, %c0_14, %c0_15] : memref<8x8x8xf32, #tpu.memory_space<vmem>>, vector<8x8x8xf32>
      %cst_16 = arith.constant dense<0xFF800000> : vector<8x8xf32>
      %45 = vector.multi_reduction <maximumf>, %44, %cst_16 [2] : vector<8x8x8xf32> to vector<8x8xf32>
      %46 = vector.shape_cast %45 : vector<8x8xf32> to vector<8x8x1xf32>
      %47 = vector.broadcast %46 : vector<8x8x1xf32> to vector<8x8x8xf32>
      %48 = arith.subf %44, %47 : vector<8x8x8xf32>
      %49 = math.exp %48 : vector<8x8x8xf32>
      %cst_17 = arith.constant dense<0.000000e+00> : vector<8x8xf32>
      %50 = vector.multi_reduction <add>, %49, %cst_17 [2] : vector<8x8x8xf32> to vector<8x8xf32>
      %51 = vector.shape_cast %50 : vector<8x8xf32> to vector<8x8x1xf32>
      %52 = math.log %51 : vector<8x8x1xf32>
      %53 = arith.addf %46, %52 : vector<8x8x1xf32>
      %54 = vector.broadcast %53 : vector<8x8x1xf32> to vector<8x8x8xf32>
      %55 = arith.subf %44, %54 : vector<8x8x8xf32>
      %56 = vector.shape_cast %43 : vector<8x8xf32> to vector<8x8x1xf32>
      %57 = vector.broadcast %56 : vector<8x8x1xf32> to vector<8x8x8xf32>
      %58 = arith.addf %55, %57 : vector<8x8x8xf32>
      %c0_18 = arith.constant 0 : index
      %c0_19 = arith.constant 0 : index
      %c0_20 = arith.constant 0 : index
      %c0_21 = arith.constant 0 : index
      %59 = vector.load %arg7[%c0_18, %c0_19, %c0_20, %c0_21] : memref<8x8x8x8xf32, #tpu.memory_space<vmem>>, vector<8x8x8x8xf32>
      %cst_22 = arith.constant dense<0xFF800000> : vector<8x8x8xf32>
      %60 = vector.multi_reduction <maximumf>, %59, %cst_22 [3] : vector<8x8x8x8xf32> to vector<8x8x8xf32>
      %61 = vector.shape_cast %60 : vector<8x8x8xf32> to vector<8x8x8x1xf32>
      %62 = vector.broadcast %61 : vector<8x8x8x1xf32> to vector<8x8x8x8xf32>
      %63 = arith.subf %59, %62 : vector<8x8x8x8xf32>
      %64 = math.exp %63 : vector<8x8x8x8xf32>
      %cst_23 = arith.constant dense<0.000000e+00> : vector<8x8x8xf32>
      %65 = vector.multi_reduction <add>, %64, %cst_23 [3] : vector<8x8x8x8xf32> to vector<8x8x8xf32>
      %66 = vector.shape_cast %65 : vector<8x8x8xf32> to vector<8x8x8x1xf32>
      %67 = math.log %66 : vector<8x8x8x1xf32>
      %68 = arith.addf %61, %67 : vector<8x8x8x1xf32>
      %69 = vector.broadcast %68 : vector<8x8x8x1xf32> to vector<8x8x8x8xf32>
      %70 = arith.subf %59, %69 : vector<8x8x8x8xf32>
      %71 = vector.shape_cast %58 : vector<8x8x8xf32> to vector<8x8x8x1xf32>
      %72 = vector.broadcast %71 : vector<8x8x8x1xf32> to vector<8x8x8x8xf32>
      %73 = arith.addf %70, %72 : vector<8x8x8x8xf32>
      %74 = vector.shape_cast %73 : vector<8x8x8x8xf32> to vector<8x64x8xf32>
      %c0_24 = arith.constant 0 : index
      %c0_25 = arith.constant 0 : index
      %c0_26 = arith.constant 0 : index
      %75 = vector.load %arg9[%c0_24, %c0_25, %c0_26] : memref<8x64x8xf32, #tpu.memory_space<vmem>>, vector<8x64x8xf32>
      tpu.vector_store %arg9[%c0_24, %c0_25, %c0_26], %74 {strides = array<i32>} : memref<8x64x8xf32, #tpu.memory_space<vmem>>, vector<8x64x8xf32>,
    } else {
    }
    %3 = tpu.iota {dimensions = array<i32: 1>} : vector<8x64x128xi32>
    %4 = tpu.iota {dimensions = array<i32: 1>} : vector<8x8x128xi32>
    %c0_i32_1 = arith.constant 0 : i32
    %c128_i32 = arith.constant 128 : i32
    %5 = arith.muli %c0_i32_1, %c128_i32 : i32
    %6 = tpu.assume_multiple %5, 128 : i32
    %c0 = arith.constant 0 : index
    %7 = arith.index_cast %6 : i32 to index
    %8 = vector.load %arg2[%c0, %7] : memref<8x128xi32, #tpu.memory_space<vmem>>, vector<8x128xi32>
    %c0_2 = arith.constant 0 : index
    %9 = arith.index_cast %6 : i32 to index
    %10 = vector.load %arg3[%c0_2, %9] : memref<8x128xi32, #tpu.memory_space<vmem>>, vector<8x128xi32>
    %c0_3 = arith.constant 0 : index
    %11 = arith.index_cast %6 : i32 to index
    %12 = vector.load %arg4[%c0_3, %11] : memref<8x128xi32, #tpu.memory_space<vmem>>, vector<8x128xi32>
    %c8_i32 = arith.constant 8 : i32
    %13 = vector.broadcast %c8_i32 : i32 to vector<8x128xi32>
    %14 = arith.muli %8, %13 : vector<8x128xi32>
    %15 = arith.addi %14, %10 : vector<8x128xi32>
    %16 = vector.shape_cast %15 : vector<8x128xi32> to vector<8x1x128xi32>
    %17 = vector.broadcast %16 : vector<8x1x128xi32> to vector<8x64x128xi32>
    %18 = arith.cmpi eq, %3, %17 : vector<8x64x128xi32>
    %19 = arith.extui %18 : vector<8x64x128xi1> to vector<8x64x128xi32>
    %20 = arith.sitofp %19 : vector<8x64x128xi32> to vector<8x64x128xf32>
    %c0_4 = arith.constant 0 : index
    %c0_5 = arith.constant 0 : index
    %c0_6 = arith.constant 0 : index
    %21 = vector.load %arg9[%c0_4, %c0_5, %c0_6] : memref<8x64x8xf32, #tpu.memory_space<vmem>>, vector<8x64x8xf32>
    "tpu.trace_start"() <{level = 10 : i32, message = "nsq,nsm->nqm"}> : () -> ()
    %cst = arith.constant dense<0.000000e+00> : vector<8x8x128xf32>
    %22 = tpu.matmul %21, %20, %cst {dimension_numbers = #tpu.dot_dimension_numbers<[1], [1], [2], [2], [0, 0, 0, 2, 1, 2], [0], [0]>} : vector<8x64x8xf32>, vector<8x64x128xf32>, vector<8x8x128xf32> -> vector<8x8x128xf32>
    "tpu.trace_stop"() : () -> ()
    %23 = vector.shape_cast %12 : vector<8x128xi32> to vector<8x1x128xi32>
    %24 = vector.broadcast %23 : vector<8x1x128xi32> to vector<8x8x128xi32>
    %25 = arith.cmpi eq, %4, %24 : vector<8x8x128xi32>
    %26 = arith.extui %25 : vector<8x8x128xi1> to vector<8x8x128xi32>
    %27 = arith.sitofp %26 : vector<8x8x128xi32> to vector<8x8x128xf32>
    %28 = arith.mulf %27, %22 : vector<8x8x128xf32>
    %cst_7 = arith.constant dense<0.000000e+00> : vector<8x128xf32>
    %29 = vector.multi_reduction <add>, %28, %cst_7 [1] : vector<8x8x128xf32> to vector<8x128xf32>
    %c0_8 = arith.constant 0 : index
    %30 = arith.index_cast %6 : i32 to index
    %31 = vector.load %arg8[%c0_8, %30] : memref<8x128xf32, #tpu.memory_space<vmem>>, vector<8x128xf32>
    tpu.vector_store %arg8[%c0_8, %30], %29 {strides = array<i32>} : memref<8x128xf32, #tpu.memory_space<vmem>>, vector<8x128xf32>,
    %c1_i32 = arith.constant 1 : i32
    return
  }
  func.func @transform_0(%arg0: i32, %arg1: i32) -> (i32, i32) {
    %c0_i32 = arith.constant 0 : i32
    return %arg0, %arg1 : i32, i32
  }
  func.func @transform_1(%arg0: i32, %arg1: i32) -> (i32, i32) {
    %c0_i32 = arith.constant 0 : i32
    return %arg0, %arg1 : i32, i32
  }
  func.func @transform_2(%arg0: i32, %arg1: i32) -> (i32, i32) {
    %c0_i32 = arith.constant 0 : i32
    return %arg0, %arg1 : i32, i32
  }
  func.func @transform_3(%arg0: i32, %arg1: i32) -> (i32, i32) {
    %c0_i32 = arith.constant 0 : i32
    %c0_i32_0 = arith.constant 0 : i32
    return %arg0, %c0_i32 : i32, i32
  }
  func.func @transform_4(%arg0: i32, %arg1: i32) -> (i32, i32, i32) {
    %c0_i32 = arith.constant 0 : i32
    %c0_i32_0 = arith.constant 0 : i32
    %c0_i32_1 = arith.constant 0 : i32
    return %arg0, %c0_i32, %c0_i32_0 : i32, i32, i32
  }
  func.func @transform_5(%arg0: i32, %arg1: i32) -> (i32, i32, i32, i32) {
    %c0_i32 = arith.constant 0 : i32
    %c0_i32_0 = arith.constant 0 : i32
    %c0_i32_1 = arith.constant 0 : i32
    %c0_i32_2 = arith.constant 0 : i32
    return %arg0, %c0_i32, %c0_i32_0, %c0_i32_1 : i32, i32, i32, i32
  }
  func.func @transform_6(%arg0: i32, %arg1: i32) -> (i32, i32) {
    %c0_i32 = arith.constant 0 : i32
    return %arg0, %arg1 : i32, i32
  }
}

</mosaic_0001>

<bundles_post_ra>
// kernel: tpu_custom_call.1
= control target key start
LH: loop header
LB: loop body
LE: loop exit
PB: predicated region body
PF: predicated region fallthrough
CT: control target
= control target key end

     0   :  { %11 = vsyncpa [#allocation4], 0  ;;  %s5745_s0 = inlined_call_operand.hbm [shape: s32[8,128], index: 0, kind: input, shape index: {}]   ;;  %s5746_s1 = inlined_call_operand.hbm [shape: s32[8,128], index: 1, kind: input, shape index: {}]   ;;  %s5747_s2 = inlined_call_operand.hbm [shape: s32[8,128], index: 2, kind: input, shape index: {}]   ;;  %s5748_s3 = inlined_call_operand.hbm [shape: f32[8,8], index: 3, kind: input, shape index: {}]   ;;  %s5749_s4 = inlined_call_operand.hbm [shape: f32[8,8,8], index: 4, kind: input, shape index: {}]   ;;  %s5750_s5 = inlined_call_operand.hbm [shape: f32[8,8,8,8], index: 5, kind: input, shape index: {}]   ;;  %s5751_s6 = inlined_call_operand.hbm [shape: f32[8,128], index: 6, kind: output, shape index: {}]  }
   0x1   :  { %12 = vsyncpa [#allocation7], 0 }
   0x2   :  { %13 = vsyncpa [#allocation10], 0 }
   0x3   :  { %14 = vsyncpa [#allocation13], 0 }
   0x4   :  { %15 = vsyncpa [#allocation5], 0  ;;  %s4081_s21 = smov [#allocation6]   ;;  %s4082_s23 = smov [#allocation9]  }
   0x5   :  { %s32_s22 = sshll.u32 %s4081_s21, 4  ;;  %s52_s24 = sshll.u32 %s4082_s23, 4  ;;  %s33_s22 = int_to_ptr.vmem [resolvable:$true] %s32_s22  ;;  %s53_s24 = int_to_ptr.vmem [resolvable:$true] %s52_s24 }
   0x6   :  { %s3939_s25 = scalar_lea.vmem %s33_s22, 128  ;;  %p3944_p1 = scmp.lt.s32.totalorder %s33_s22, %s33_s22 }
   0x7   :  { %p3940_p0 = scmp.ne.s32.totalorder %s33_s22, %s3939_s25  ;;  %p3945_p2 = scmp.lt.s32.totalorder %s3939_s25, %s3939_s25 }
   0x9   :  { %p3946_p3 = por %p3945_p2, %p3944_p1 }
   0xb   :  { %p3947_p4 = pnand %p3946_p3, %p3940_p0 }
   0xd   :  { %3950 = shalt.err (!%p3947_p4)
}
   0xe   :  { %35 = dma.hbm_to_vmem [thread:$0]  %s5746_s1, 128, %s33_s22, [#allocation7]  }
   0xf   :  { %s3959_s28 = scalar_lea.vmem %s53_s24, 128  ;;  %p3964_p6 = scmp.lt.s32.totalorder %s53_s24, %s53_s24 }
  0x10   :  { %p3960_p5 = scmp.ne.s32.totalorder %s53_s24, %s3959_s28  ;;  %p3965_p7 = scmp.lt.s32.totalorder %s3959_s28, %s3959_s28 }
  0x12   :  { %p3966_p8 = por %p3965_p7, %p3964_p6 }
  0x14   :  { %p3967_p9 = pnand %p3966_p8, %p3960_p5 }
  0x16   :  { %3970 = shalt.err (!%p3967_p9)
}
  0x17   :  { %55 = dma.hbm_to_vmem [thread:$0]  %s5748_s3, 128, %s53_s24, [#allocation10]  }
  0x18   :  { %s4083_s7 = smov [#allocation3]   ;;  %s4084_s9 = smov [#allocation8]  }
  0x19   :  { %s22_s8 = sshll.u32 %s4083_s7, 4  ;;  %s42_s10 = sshll.u32 %s4084_s9, 4  ;;  %s23_s8 = int_to_ptr.vmem [resolvable:$true] %s22_s8  ;;  %s43_s10 = int_to_ptr.vmem [resolvable:$true] %s42_s10 }
  0x1a   :  { %s3979_s11 = scalar_lea.vmem %s23_s8, 128  ;;  %p3984_p11 = scmp.lt.s32.totalorder %s23_s8, %s23_s8 }
  0x1b   :  { %p3980_p10 = scmp.ne.s32.totalorder %s23_s8, %s3979_s11  ;;  %p3985_p12 = scmp.lt.s32.totalorder %s3979_s11, %s3979_s11 }
  0x1d   :  { %p3986_p13 = por %p3985_p12, %p3984_p11 }
  0x1f   :  { %p3987_p0 = pnand %p3986_p13, %p3980_p10 }
  0x21   :  { %3990 = shalt.err (!%p3987_p0)
}
  0x22   :  { %25 = dma.hbm_to_vmem [thread:$0]  %s5745_s0, 128, %s23_s8, [#allocation4]  }
  0x23   :  { %s3999_s13 = scalar_lea.vmem %s43_s10, 128  ;;  %p4004_p2 = scmp.lt.s32.totalorder %s43_s10, %s43_s10 }
  0x24   :  { %p4000_p1 = scmp.ne.s32.totalorder %s43_s10, %s3999_s13  ;;  %p4005_p3 = scmp.lt.s32.totalorder %s3999_s13, %s3999_s13 }
  0x26   :  { %p4006_p4 = por %p4005_p3, %p4004_p2 }
  0x28   :  { %p4007_p5 = pnand %p4006_p4, %p4000_p1 }
  0x2a   :  { %4010 = shalt.err (!%p4007_p5)
}
  0x2b   :  { %45 = dma.hbm_to_vmem [thread:$0]  %s5747_s2, 128, %s43_s10, [#allocation7]  }
  0x2c   :  { %s4085_s15 = smov [#allocation11]  }
  0x2d   :  { %s61_s16 = sshll.u32 %s4085_s15, 4  ;;  %s62_s16 = int_to_ptr.vmem [resolvable:$true] %s61_s16 }
  0x2e   :  { %s4019_s17 = scalar_lea.vmem %s62_s16, 1024  ;;  %p4024_p7 = scmp.lt.s32.totalorder %s62_s16, %s62_s16 }
  0x2f   :  { %p4020_p6 = scmp.ne.s32.totalorder %s62_s16, %s4019_s17  ;;  %p4025_p8 = scmp.lt.s32.totalorder %s4019_s17, %s4019_s17 }
  0x31   :  { %p4026_p9 = por %p4025_p8, %p4024_p7 }
  0x33   :  { %p4027_p10 = pnand %p4026_p9, %p4020_p6 }
  0x35   :  { %4030 = shalt.err (!%p4027_p10)
}
  0x36   :  { %s4086_s0 = smov 128   ;;  %s4087_s18 = smov 8  }
  0x37   :  { %67 = dma.hbm_to_vmem [thread:$0]  %s5749_s4, 1024, %s62_s16, [#allocation10], %s4086_s0, %s4086_s0, %s4087_s18  }
  0x38   :  { %s4088_s21 = smov [#allocation12]  }
  0x39   :  { %s73_s22 = sshll.u32 %s4088_s21, 4  ;;  %s74_s22 = int_to_ptr.vmem [resolvable:$true] %s73_s22 }
  0x3a   :  { %s4039_s2 = scalar_lea.vmem %s74_s22, 8192  ;;  %p4044_p12 = scmp.lt.s32.totalorder %s74_s22, %s74_s22 }
  0x3b   :  { %p4040_p11 = scmp.ne.s32.totalorder %s74_s22, %s4039_s2  ;;  %p4045_p13 = scmp.lt.s32.totalorder %s4039_s2, %s4039_s2 }
  0x3d   :  { %p4046_p0 = por %p4045_p13, %p4044_p12 }
  0x3f   :  { %p4047_p1 = pnand %p4046_p0, %p4040_p11 }
  0x41   :  { %4050 = shalt.err (!%p4047_p1)
}
  0x42   :  { %79 = dma.hbm_to_vmem [thread:$0]  %s5750_s5, 8192, %s74_s22, [#allocation13], %s4086_s0, %s4086_s0, %s4087_s18  }
  0x43   :  { %4071 = dma.done.wait [#allocation4], 128  }
  0x44   :  { %4072 = vsyncadd [#allocation4], 4294967168 }
  0x45   :  { %4073 = dma.done.wait [#allocation7], 256  }
  0x46   :  { %4074 = vsyncadd [#allocation7], 4294967040 }
  0x47   :  { %4075 = dma.done.wait [#allocation10], 1152  }
  0x48   :  { %4076 = vsyncadd [#allocation10], 4294966144 }
  0x49   :  { %4077 = dma.done.wait [#allocation13], 8192  }
  0x4a   :  { %4078 = vsyncadd [#allocation13], 4294959104  ;;  %vm103_vm0 = vcmask 64512   ;;  %v4147_v0 = vld [vmem:[#allocation11] sm:$0xff]  ;;  %v4149_v1 = vld [vmem:[#allocation9] sm:$0xff]  ;;  %vm4091_vm1 = vmmov 0  }
  0x4b   :  { %v4151_v2 = vld [vmem:[#allocation11 + $0x8] sm:$0xff]  ;;  %v125_v3 = vsel %vm103_vm0, %v4147_v0, -inf  ;;  %v104_v4 = vsel %vm103_vm0, %v4149_v1, -inf  ;;  %v4157_v5 = vld [vmem:[#allocation11 + $0x10] sm:$0xff]  ;;  %v4163_v8 = vld [vmem:[#allocation11 + $0x18] sm:$0xff]  ;;  %s4093_s4 = smov [#allocation14]  }
  0x4c   :  { %126 = vmax.xlane.f32.xlu1 %v125_v3  ;;  %105 = vmax.xlane.f32.xlu0 %v104_v4  ;;  %v128_v6 = vsel %vm103_vm0, %v4151_v2, -inf  ;;  %v131_v7 = vsel %vm103_vm0, %v4157_v5, -inf  ;;  %v4165_v9 = vld [vmem:[#allocation11 + $0x20] sm:$0xff]  ;;  %v134_v10 = vsel %vm103_vm0, %v4163_v8, -inf  ;;  %v4171_v12 = vld [vmem:[#allocation11 + $0x28] sm:$0xff]  ;;  %v4173_v13 = vld [vmem:[#allocation11 + $0x30] sm:$0xff] }
  0x4d   :  { %v137_v11 = vsel %vm103_vm0, %v4165_v9, -inf  ;;  %v140_v14 = vsel %vm103_vm0, %v4171_v12, -inf  ;;  %v143_v15 = vsel %vm103_vm0, %v4173_v13, -inf  ;;  %v4179_v16 = vld [vmem:[#allocation11 + $0x38] sm:$0xff]  ;;  %v4181_v17 = vld [vmem:[#allocation12] sm:$0xff]  ;;  %v4187_v20 = vld [vmem:[#allocation12 + $0x10] sm:$0xff] }
  0x4e   :  { %v146_v18 = vsel %vm103_vm0, %v4179_v16, -inf  ;;  %v357_v19 = vsel %vm103_vm0, %v4181_v17, -inf  ;;  %v4189_v21 = vld [vmem:[#allocation12 + $0x8] sm:$0xff]  ;;  %v363_v22 = vsel %vm103_vm0, %v4187_v20, -inf  ;;  %v4195_v24 = vld [vmem:[#allocation12 + $0x18] sm:$0xff]  ;;  %v4203_v28 = vld [vmem:[#allocation12 + $0x20] sm:$0xff] }
  0x4f   :  { %v360_v23 = vsel %vm103_vm0, %v4189_v21, -inf  ;;  %v4197_v25 = vld [vmem:[#allocation12 + $0x28] sm:$0xff]  ;;  %v366_v26 = vsel %vm103_vm0, %v4195_v24, -inf  ;;  %v4205_v29 = vld [vmem:[#allocation12 + $0x38] sm:$0xff]  ;;  %v369_v30 = vsel %vm103_vm0, %v4203_v28, -inf  ;;  %v4211_v32 = vld [vmem:[#allocation12 + $0x30] sm:$0xff] }
  0x50   :  { %129 = vmax.xlane.f32.xlu1 %v128_v6  ;;  %132 = vmax.xlane.f32.xlu0 %v131_v7  ;;  %v372_v27 = vsel %vm103_vm0, %v4197_v25, -inf  ;;  %v378_v31 = vsel %vm103_vm0, %v4205_v29, -inf  ;;  %v4213_v33 = vld [vmem:[#allocation12 + $0x48] sm:$0xff]  ;;  %v375_v34 = vsel %vm103_vm0, %v4211_v32, -inf  ;;  %v4219_v36 = vld [vmem:[#allocation12 + $0x40] sm:$0xff]  ;;  %v4221_v37 = vld [vmem:[#allocation12 + $0x58] sm:$0xff] }
  0x51   :  { %v384_v35 = vsel %vm103_vm0, %v4213_v33, -inf  ;;  %v381_v38 = vsel %vm103_vm0, %v4219_v36, -inf  ;;  %v390_v39 = vsel %vm103_vm0, %v4221_v37, -inf  ;;  %v4227_v40 = vld [vmem:[#allocation12 + $0x50] sm:$0xff]  ;;  %v4229_v41 = vld [vmem:[#allocation12 + $0x68] sm:$0xff]  ;;  %v4235_v44 = vld [vmem:[#allocation12 + $0x60] sm:$0xff] }
  0x52   :  { %v387_v42 = vsel %vm103_vm0, %v4227_v40, -inf  ;;  %v396_v43 = vsel %vm103_vm0, %v4229_v41, -inf  ;;  %v4237_v45 = vld [vmem:[#allocation12 + $0x78] sm:$0xff]  ;;  %v393_v46 = vsel %vm103_vm0, %v4235_v44, -inf  ;;  %v4243_v48 = vld [vmem:[#allocation12 + $0x70] sm:$0xff]  ;;  %v4245_v49 = vld [vmem:[#allocation12 + $0x88] sm:$0xff] }
  0x53   :  { %v402_v47 = vsel %vm103_vm0, %v4237_v45, -inf  ;;  %v399_v50 = vsel %vm103_vm0, %v4243_v48, -inf  ;;  %v408_v51 = vsel %vm103_vm0, %v4245_v49, -inf  ;;  %v4251_v52 = vld [vmem:[#allocation12 + $0x80] sm:$0xff]  ;;  %v4253_v53 = vld [vmem:[#allocation12 + $0x98] sm:$0xff]  ;;  %v4259_v56 = vld [vmem:[#allocation12 + $0x90] sm:$0xff] }
  0x54   :  { %135 = vmax.xlane.f32.xlu1 %v134_v10  ;;  %138 = vmax.xlane.f32.xlu0 %v137_v11  ;;  %v405_v54 = vsel %vm103_vm0, %v4251_v52, -inf  ;;  %v414_v55 = vsel %vm103_vm0, %v4253_v53, -inf  ;;  %v4261_v57 = vld [vmem:[#allocation12 + $0xa8] sm:$0xff]  ;;  %v411_v58 = vsel %vm103_vm0, %v4259_v56, -inf  ;;  %v4267_v60 = vld [vmem:[#allocation12 + $0xa0] sm:$0xff]  ;;  %v4269_v61 = vld [vmem:[#allocation12 + $0xb8] sm:$0xff] }
  0x55   :  { %v420_v59 = vsel %vm103_vm0, %v4261_v57, -inf  ;;  %v417_v62 = vsel %vm103_vm0, %v4267_v60, -inf  ;;  %v426_v63 = vsel %vm103_vm0, %v4269_v61, -inf  ;;  %v4275_v3 = vld [vmem:[#allocation12 + $0xb0] sm:$0xff]  ;;  %v4277_v4 = vld [vmem:[#allocation12 + $0xc8] sm:$0xff]  ;;  %v4283_v10 = vld [vmem:[#allocation12 + $0xc0] sm:$0xff] }
  0x56   :  { %v423_v6 = vsel %vm103_vm0, %v4275_v3, -inf  ;;  %v432_v7 = vsel %vm103_vm0, %v4277_v4, -inf  ;;  %v4285_v11 = vld [vmem:[#allocation12 + $0xd8] sm:$0xff]  ;;  %s3148_s5 = sshll.u32 %s4093_s4, 4  ;;  %s3149_s5 = int_to_ptr.vmem [resolvable:$true] %s3148_s5 }
  0x57   :  { %s4051_s25 = scalar_lea.vmem %s3149_s5, 128  ;;  %p4056_p3 = scmp.lt.s32.totalorder %s3149_s5, %s3149_s5 }
  0x58   :  { %141 = vmax.xlane.f32.xlu1 %v140_v14  ;;  %144 = vmax.xlane.f32.xlu0 %v143_v15  ;;  %v429_v14 = vsel %vm103_vm0, %v4283_v10, -inf  ;;  %v438_v15 = vsel %vm103_vm0, %v4285_v11, -inf  ;;  %p4052_p2 = scmp.ne.s32.totalorder %s3149_s5, %s4051_s25  ;;  %p4057_p4 = scmp.lt.s32.totalorder %s4051_s25, %s4051_s25 }
  0x5a   :  { %p4058_p5 = por %p4057_p4, %p4056_p3 }
  0x5c   :  { %147 = vmax.xlane.f32.xlu1 %v146_v18  ;;  %358 = vmax.xlane.f32.xlu0 %v357_v19  ;;  %v4291_v18 = vld [vmem:[#allocation12 + $0xd0] sm:$0xff]  ;;  %v4293_v19 = vld [vmem:[#allocation12 + $0xe8] sm:$0xff]  ;;  %p4059_p6 = pnand %p4058_p5, %p4052_p2 }
  0x60   :  { %364 = vmax.xlane.f32.xlu0 %v363_v22  ;;  %361 = vmax.xlane.f32.xlu1 %v360_v23  ;;  %v435_v22 = vsel %vm103_vm0, %v4291_v18, -inf  ;;  %v444_v23 = vsel %vm103_vm0, %v4293_v19, -inf }
  0x64   :  { %367 = vmax.xlane.f32.xlu0 %v366_v26  ;;  %373 = vmax.xlane.f32.xlu1 %v372_v27  ;;  %v4299_v26 = vld [vmem:[#allocation12 + $0xe0] sm:$0xff]  ;;  %v4301_v27 = vld [vmem:[#allocation12 + $0xf8] sm:$0xff] }
  0x68   :  { %370 = vmax.xlane.f32.xlu0 %v369_v30  ;;  %379 = vmax.xlane.f32.xlu1 %v378_v31  ;;  %v441_v30 = vsel %vm103_vm0, %v4299_v26, -inf  ;;  %v450_v31 = vsel %vm103_vm0, %v4301_v27, -inf }
  0x6c   :  { %376 = vmax.xlane.f32.xlu0 %v375_v34  ;;  %385 = vmax.xlane.f32.xlu1 %v384_v35  ;;  %v4307_v34 = vld [vmem:[#allocation12 + $0xf0] sm:$0xff]  ;;  %v4309_v35 = vld [vmem:[#allocation12 + $0x108] sm:$0xff] }
  0x70   :  { %382 = vmax.xlane.f32.xlu0 %v381_v38  ;;  %391 = vmax.xlane.f32.xlu1 %v390_v39  ;;  %v447_v38 = vsel %vm103_vm0, %v4307_v34, -inf  ;;  %v456_v39 = vsel %vm103_vm0, %v4309_v35, -inf }
  0x74   :  { %388 = vmax.xlane.f32.xlu0 %v387_v42  ;;  %397 = vmax.xlane.f32.xlu1 %v396_v43  ;;  %v4315_v42 = vld [vmem:[#allocation12 + $0x100] sm:$0xff]  ;;  %v4317_v43 = vld [vmem:[#allocation12 + $0x118] sm:$0xff] }
  0x75   :  { %5811 = vst [vmem:[#allocation20_spill] sm:$0xff] %v4317_v43 }
  0x78   :  { %394 = vmax.xlane.f32.xlu0 %v393_v46  ;;  %403 = vmax.xlane.f32.xlu1 %v402_v47  ;;  %v453_v46 = vsel %vm103_vm0, %v4315_v42, -inf  ;;  %v462_v47 = vsel %vm103_vm0, %v4317_v43, -inf }
  0x7c   :  { %400 = vmax.xlane.f32.xlu0 %v399_v50  ;;  %409 = vmax.xlane.f32.xlu1 %v408_v51  ;;  %v4323_v50 = vld [vmem:[#allocation12 + $0x110] sm:$0xff]  ;;  %v4325_v51 = vld [vmem:[#allocation12 + $0x140] sm:$0xff] }
  0x80   :  { %406 = vmax.xlane.f32.xlu0 %v405_v54  ;;  %415 = vmax.xlane.f32.xlu1 %v414_v55  ;;  %v459_v54 = vsel %vm103_vm0, %v4323_v50, -inf  ;;  %v477_v55 = vsel %vm103_vm0, %v4325_v51, -inf }
  0x84   :  { %412 = vmax.xlane.f32.xlu0 %v411_v58  ;;  %421 = vmax.xlane.f32.xlu1 %v420_v59  ;;  %v329_v58 = vld [vmem:[#allocation12 + $0x120] sm:$0xff]  ;;  %v4331_v59 = vld [vmem:[#allocation12 + $0x150] sm:$0xff] }
  0x85   :  { %5812 = vst [vmem:[#allocation21_spill] sm:$0xff] %v4331_v59 }
  0x88   :  { %418 = vmax.xlane.f32.xlu0 %v417_v62  ;;  %427 = vmax.xlane.f32.xlu1 %v426_v63  ;;  %v465_v62 = vsel %vm103_vm0, %v329_v58, -inf  ;;  %v483_v63 = vsel %vm103_vm0, %v4331_v59, -inf }
  0x8c   :  { %424 = vmax.xlane.f32.xlu0 %v423_v6  ;;  %433 = vmax.xlane.f32.xlu1 %v432_v7  ;;  %v4336_v6 = vld [vmem:[#allocation12 + $0x148] sm:$0xff]  ;;  %v337_v7 = vld [vmem:[#allocation12 + $0x160] sm:$0xff] }
  0x90   :  { %430 = vmax.xlane.f32.xlu0 %v429_v14  ;;  %439 = vmax.xlane.f32.xlu1 %v438_v15  ;;  %v480_v14 = vsel %vm103_vm0, %v4336_v6, -inf  ;;  %v489_v15 = vsel %vm103_vm0, %v337_v7, -inf  ;;  %v349_v7 = vld [vmem:[#allocation12 + $0x1c0] sm:$0xff] }
  0x94   :  { %436 = vmax.xlane.f32.xlu0 %v435_v22  ;;  %445 = vmax.xlane.f32.xlu1 %v444_v23  ;;  %v4341_v22 = vld [vmem:[#allocation12 + $0x158] sm:$0xff]  ;;  %v338_v23 = vld [vmem:[#allocation12 + $0x168] sm:$0xff] }
  0x95   :  { %5813 = vst [vmem:[#allocation22_spill] sm:$0xff] %v4341_v22 }
  0x98   :  { %442 = vmax.xlane.f32.xlu0 %v441_v30  ;;  %451 = vmax.xlane.f32.xlu1 %v450_v31  ;;  %v486_v30 = vsel %vm103_vm0, %v4341_v22, -inf  ;;  %v492_v31 = vsel %vm103_vm0, %v338_v23, -inf  ;;  %v341_v23 = vld [vmem:[#allocation12 + $0x180] sm:$0xff] }
  0x9c   :  { %448 = vmax.xlane.f32.xlu0 %v447_v38  ;;  %457 = vmax.xlane.f32.xlu1 %v456_v39  ;;  %v330_v38 = vld [vmem:[#allocation12 + $0x128] sm:$0xff]  ;;  %v339_v39 = vld [vmem:[#allocation12 + $0x170] sm:$0xff] }
  0xa0   :  { %454 = vmax.xlane.f32.xlu0 %v453_v46  ;;  %463 = vmax.xlane.f32.xlu1 %v462_v47  ;;  %v468_v46 = vsel %vm103_vm0, %v330_v38, -inf  ;;  %v495_v47 = vsel %vm103_vm0, %v339_v39, -inf }
  0xa4   :  { %460 = vmax.xlane.f32.xlu0 %v459_v54  ;;  %478 = vmax.xlane.f32.xlu1 %v477_v55  ;;  %v331_v54 = vld [vmem:[#allocation12 + $0x130] sm:$0xff]  ;;  %v340_v55 = vld [vmem:[#allocation12 + $0x178] sm:$0xff] }
  0xa5   :  { %v471_v58 = vsel %vm103_vm0, %v331_v54, -inf }
  0xa8   :  { %466 = vmax.xlane.f32.xlu0 %v465_v62  ;;  %484 = vmax.xlane.f32.xlu1 %v483_v63  ;;  %v498_v62 = vsel %vm103_vm0, %v340_v55, -inf  ;;  %v332_v63 = vld [vmem:[#allocation12 + $0x138] sm:$0xff] }
  0xac   :  { %481 = vmax.xlane.f32.xlu0 %v480_v14  ;;  %490 = vmax.xlane.f32.xlu1 %v489_v15  ;;  %v474_v14 = vsel %vm103_vm0, %v332_v63, -inf  ;;  %v525_v15 = vsel %vm103_vm0, %v349_v7, -inf }
  0xb0   :  { %487 = vmax.xlane.f32.xlu0 %v486_v30  ;;  %493 = vmax.xlane.f32.xlu1 %v492_v31  ;;  %v501_v30 = vsel %vm103_vm0, %v341_v23, -inf }
  0xb4   :  { %469 = vmax.xlane.f32.xlu0 %v468_v46  ;;  %496 = vmax.xlane.f32.xlu1 %v495_v47 }
  0xb8   :  { %472 = vmax.xlane.f32.xlu0 %v471_v58  ;;  %499 = vmax.xlane.f32.xlu1 %v498_v62 }
  0xbc   :  { %475 = vmax.xlane.f32.xlu0 %v474_v14  ;;  %526 = vmax.xlane.f32.xlu1 %v525_v15 }
  0xc0   :  { %502 = vmax.xlane.f32.xlu0 %v501_v30 }
  0xd5   :  { %v4353_v31 = vpop.xlane.xlu1 %126  ;;  %v4355_v38 = vpop.xlane.xlu0 %105 }
  0xd6   :  { %5814 = vst [vmem:[#allocation23_spill] sm:$0xff] %v4353_v31  ;;  %v149_v39 = vsub.f32 %v4147_v0, %v4353_v31  ;;  %v107_v46 = vsub.f32 %v4149_v1, %v4355_v38  ;;  %v343_v31 = vld [vmem:[#allocation12 + $0x190] sm:$0xff] }
  0xd8   :  { %v157_v47 = vmul.f32 1.442695, %v149_v39  ;;  %v108_v54 = vmul.f32 1.442695, %v107_v46 }
  0xd9   :  { %v4361_v55 = vpop.xlane.xlu1 %129  ;;  %v4363_v58 = vpop.xlane.xlu0 %132 }
  0xda   :  { %5815 = vst [vmem:[#allocation24_spill] sm:$0xff] %v4361_v55  ;;  %5816 = vst [vmem:[#allocation25_spill] sm:$0xff] %v4363_v58  ;;  %3542 = vpow2.f32 %v157_v47  ;;  %v150_v62 = vsub.f32 %v4151_v2, %v4361_v55  ;;  %v151_v63 = vsub.f32 %v4157_v5, %v4363_v58  ;;  %v351_v58 = vld [vmem:[#allocation12 + $0x1d0] sm:$0xff]  ;;  %v352_v55 = vld [vmem:[#allocation12 + $0x1d8] sm:$0xff] }
  0xdb   :  { %3544 = vpow2.f32 %v108_v54  ;;  %v534_v43 = vsel %vm103_vm0, %v352_v55, -inf }
  0xdc   :  { %v159_v7 = vmul.f32 1.442695, %v150_v62  ;;  %v161_v14 = vmul.f32 1.442695, %v151_v63 }
  0xdd   :  { %v4369_v0 = vpop.xlane.xlu1 %135  ;;  %v4371_v15 = vpop.xlane.xlu0 %138 }
  0xde   :  { %5817 = vst [vmem:[#allocation26_spill] sm:$0xff] %v4369_v0  ;;  %5818 = vst [vmem:[#allocation27_spill] sm:$0xff] %v4371_v15  ;;  %3546 = vpow2.f32 %v159_v7  ;;  %v152_v1 = vsub.f32 %v4163_v8, %v4369_v0  ;;  %v153_v23 = vsub.f32 %v4165_v9, %v4371_v15  ;;  %v342_v0 = vld [vmem:[#allocation12 + $0x188] sm:$0xff] }
  0xdf   :  { %3548 = vpow2.f32 %v161_v14 }
  0xe0   :  { %v163_v30 = vmul.f32 1.442695, %v152_v1  ;;  %v165_v2 = vmul.f32 1.442695, %v153_v23 }
  0xe1   :  { %v4377_v39 = vpop.xlane.xlu1 %141  ;;  %v4379_v5 = vpop.xlane.xlu0 %144 }
  0xe2   :  { %5819 = vst [vmem:[#allocation28_spill] sm:$0xff] %v4377_v39  ;;  %5820 = vst [vmem:[#allocation29_spill] sm:$0xff] %v4379_v5  ;;  %3550 = vpow2.f32 %v163_v30  ;;  %v154_v46 = vsub.f32 %v4171_v12, %v4377_v39  ;;  %v155_v47 = vsub.f32 %v4173_v13, %v4379_v5 }
  0xe3   :  { %3552 = vpow2.f32 %v165_v2 }
  0xe4   :  { %v167_v54 = vmul.f32 1.442695, %v154_v46  ;;  %v169_v8 = vmul.f32 1.442695, %v155_v47 }
  0xe5   :  { %v4385_v62 = vpop.xlane.xlu1 %147  ;;  %v4387_v9 = vpop.xlane.xlu0 %358 }
  0xe6   :  { %5821 = vst [vmem:[#allocation30_spill] sm:$0xff] %v4385_v62  ;;  %3554 = vpow2.f32 %v167_v54  ;;  %v156_v63 = vsub.f32 %v4179_v16, %v4385_v62 }
  0xe7   :  { %v3543_v7 = vpop.eup %3542  ;;  %3556 = vpow2.f32 %v169_v8 }
  0xe8   :  { %v3545_v14 = vpop.eup %3544  ;;  %v171_v1 = vmul.f32 1.442695, %v156_v63  ;;  %v173_v2 = vsel %vm103_vm0, %v3543_v7, 0.0 }
  0xe9   :  { %v110_v12 = vsel %vm103_vm0, %v3545_v14, 0.0  ;;  %v4392_v23 = vpop.xlane.xlu0 %364  ;;  %v4394_v13 = vpop.xlane.xlu1 %361 }
  0xea   :  { %5822 = vst [vmem:[#allocation31_spill] sm:$0xff] %v4394_v13  ;;  %3558 = vpow2.f32 %v171_v1  ;;  %111 = vadd.xlane.f32.xlu0 %v110_v12 }
  0xeb   :  { %v3547_v30 = vpop.eup %3546 }
  0xec   :  { %v3549_v46 = vpop.eup %3548  ;;  %v176_v47 = vsel %vm103_vm0, %v3547_v30, 0.0 }
  0xed   :  { %177 = vadd.xlane.f32.xlu1 %v176_v47  ;;  %v4398_v16 = vpop.xlane.xlu0 %367  ;;  %v4400_v54 = vpop.xlane.xlu1 %373  ;;  %v179_v63 = vsel %vm103_vm0, %v3549_v46, 0.0  ;;  %v350_v47 = vld [vmem:[#allocation12 + $0x1c8] sm:$0xff] }
  0xee   :  { %174 = vadd.xlane.f32.xlu0 %v173_v2 }
  0xef   :  { %v3551_v8 = vpop.eup %3550 }
  0xf0   :  { %v3553_v14 = vpop.eup %3552  ;;  %v182_v5 = vsel %vm103_vm0, %v3551_v8, 0.0 }
  0xf1   :  { %183 = vadd.xlane.f32.xlu1 %v182_v5  ;;  %v4404_v1 = vpop.xlane.xlu0 %370  ;;  %v4406_v12 = vpop.xlane.xlu1 %379  ;;  %v185_v30 = vsel %vm103_vm0, %v3553_v14, 0.0  ;;  %v528_v5 = vsel %vm103_vm0, %v350_v47, -inf }
  0xf2   :  { %5823 = vst [vmem:[#allocation32_spill] sm:$0xff] %v4406_v12  ;;  %180 = vadd.xlane.f32.xlu0 %v179_v63 }
  0xf3   :  { %v3555_v7 = vpop.eup %3554 }
  0xf4   :  { %v3557_v62 = vpop.eup %3556  ;;  %v188_v39 = vsel %vm103_vm0, %v3555_v7, 0.0 }
  0xf5   :  { %189 = vadd.xlane.f32.xlu1 %v188_v39  ;;  %v4410_v2 = vpop.xlane.xlu0 %376  ;;  %v4412_v46 = vpop.xlane.xlu1 %385  ;;  %v191_v15 = vsel %vm103_vm0, %v3557_v62, 0.0  ;;  %v504_v39 = vsel %vm103_vm0, %v342_v0, -inf  ;;  %v550_v62 = vsub.f32 %v4189_v21, %v4394_v13  ;;  %v344_v0 = vld [vmem:[#allocation12 + $0x198] sm:$0xff]  ;;  %v345_v13 = vld [vmem:[#allocation12 + $0x1a0] sm:$0xff] }
  0xf6   :  { %5824 = vst [vmem:[#allocation33_spill] sm:$0xff] %v4412_v46  ;;  %186 = vadd.xlane.f32.xlu0 %v185_v30  ;;  %v558_v21 = vsub.f32 %v4213_v33, %v4412_v46 }
  0xf7   :  { %v3559_v8 = vpop.eup %3558  ;;  %v615_v59 = vmul.f32 1.442695, %v550_v62 }
  0xf8   :  { %v194_v7 = vsel %vm103_vm0, %v3559_v8, 0.0  ;;  %v507_v8 = vsel %vm103_vm0, %v343_v31, -inf  ;;  %v353_v31 = vld [vmem:[#allocation12 + $0x1e0] sm:$0xff] }
  0xf9   :  { %529 = vmax.xlane.f32.xlu1 %v528_v5  ;;  %v4416_v63 = vpop.xlane.xlu0 %382  ;;  %v4418_v14 = vpop.xlane.xlu1 %391  ;;  %v531_v5 = vsel %vm103_vm0, %v351_v58, -inf  ;;  %3560 = vpow2.f32 %v615_v59  ;;  %v537_v62 = vsel %vm103_vm0, %v353_v31, -inf }
  0xfa   :  { %192 = vadd.xlane.f32.xlu0 %v191_v15  ;;  %v549_v15 = vsub.f32 %v4181_v17, %v4387_v9  ;;  %v557_v17 = vsub.f32 %v4219_v36, %v4416_v63  ;;  %v346_v36 = vld [vmem:[#allocation12 + $0x1a8] sm:$0xff] }
  0xfc   :  { %v613_v58 = vmul.f32 1.442695, %v549_v15  ;;  %v629_v33 = vmul.f32 1.442695, %v557_v17  ;;  %v513_v15 = vsel %vm103_vm0, %v345_v13, -inf  ;;  %v516_v13 = vsel %vm103_vm0, %v346_v36, -inf }
  0xfd   :  { %195 = vadd.xlane.f32.xlu1 %v194_v7  ;;  %v4422_v30 = vpop.xlane.xlu0 %388  ;;  %v4424_v47 = vpop.xlane.xlu1 %397  ;;  %v347_v17 = vld [vmem:[#allocation12 + $0x1b0] sm:$0xff]  ;;  %v348_v36 = vld [vmem:[#allocation12 + $0x1b8] sm:$0xff] }
  0xfe   :  { %505 = vmax.xlane.f32.xlu0 %v504_v39  ;;  %v510_v39 = vsel %vm103_vm0, %v344_v0, -inf  ;;  %v559_v55 = vsub.f32 %v4227_v40, %v4422_v30  ;;  %3562 = vpow2.f32 %v613_v58  ;;  %v354_v0 = vld [vmem:[#allocation12 + $0x1e8] sm:$0xff]  ;;  %v560_v40 = vsub.f32 %v4221_v37, %v4418_v14  ;;  %v355_v58 = vld [vmem:[#allocation12 + $0x1f0] sm:$0xff] }
 0x101   :  { %532 = vmax.xlane.f32.xlu1 %v531_v5  ;;  %v4432_v22 = vpop.xlane.xlu0 %394  ;;  %v4434_v7 = vpop.xlane.xlu1 %403 }
 0x102   :  { %5825 = vst [vmem:[#allocation34_spill] sm:$0xff] %v4434_v7  ;;  %508 = vmax.xlane.f32.xlu0 %v507_v8  ;;  %v631_v8 = vmul.f32 1.442695, %v558_v21  ;;  %v633_v21 = vmul.f32 1.442695, %v559_v55  ;;  %v561_v37 = vsub.f32 %v4235_v44, %v4432_v22 }
 0x103   :  { %v635_v55 = vmul.f32 1.442695, %v560_v40  ;;  %v562_v40 = vsub.f32 %v4229_v41, %v4424_v47 }
 0x104   :  { %3564 = vpow2.f32 %v631_v8 }
 0x105   :  { %535 = vmax.xlane.f32.xlu1 %v534_v43  ;;  %v4442_v5 = vpop.xlane.xlu0 %400  ;;  %v4448_v46 = vpop.xlane.xlu1 %409  ;;  %v551_v43 = vsub.f32 %v4187_v20, %v4392_v23  ;;  %3566 = vpow2.f32 %v629_v33  ;;  %v552_v20 = vsub.f32 %v4195_v24, %v4398_v16  ;;  %v543_v33 = vsel %vm103_vm0, %v355_v58, -inf }
 0x106   :  { %5826 = vst [vmem:[#allocation35_spill] sm:$0xff] %v4442_v5  ;;  %511 = vmax.xlane.f32.xlu0 %v510_v39  ;;  %5827 = vst [vmem:[#allocation36_spill] sm:$0xff] %v4448_v46  ;;  %v540_v39 = vsel %vm103_vm0, %v354_v0, -inf  ;;  %3568 = vpow2.f32 %v633_v21  ;;  %v356_v0 = vld [vmem:[#allocation12 + $0x1f8] sm:$0xff]  ;;  %v553_v24 = vsub.f32 %v4203_v28, %v4404_v1  ;;  %v637_v21 = vmul.f32 1.442695, %v561_v37 }
 0x107   :  { %v617_v31 = vmul.f32 1.442695, %v551_v43  ;;  %v619_v43 = vmul.f32 1.442695, %v552_v20  ;;  %v546_v44 = vsel %vm103_vm0, %v356_v0, -inf  ;;  %v522_v58 = vsel %vm103_vm0, %v348_v36, -inf }
 0x108   :  { %v621_v20 = vmul.f32 1.442695, %v553_v24  ;;  %v554_v28 = vsub.f32 %v4197_v25, %v4400_v54  ;;  %v639_v37 = vmul.f32 1.442695, %v562_v40  ;;  %v563_v41 = vsub.f32 %v4243_v48, %v4442_v5  ;;  %v3836_v5 = vld [vmem:[#allocation11] sm:$0xff] }
 0x109   :  { %538 = vmax.xlane.f32.xlu1 %v537_v62  ;;  %v4452_v59 = vpop.xlane.xlu0 %406  ;;  %v4462_v8 = vpop.xlane.xlu1 %415  ;;  %3570 = vpow2.f32 %v617_v31  ;;  %v555_v25 = vsub.f32 %v4211_v32, %v4410_v2  ;;  %v564_v48 = vsub.f32 %v4237_v45, %v4434_v7  ;;  %v556_v32 = vsub.f32 %v4205_v29, %v4406_v12 }
 0x10a   :  { %5828 = vst [vmem:[#allocation37_spill] sm:$0xff] %v4452_v59  ;;  %514 = vmax.xlane.f32.xlu0 %v513_v15  ;;  %5830 = vst [vmem:[#allocation39_spill] sm:$0xff] %v4462_v8  ;;  %v519_v15 = vsel %vm103_vm0, %v347_v17, -inf  ;;  %3572 = vpow2.f32 %v635_v55 }
 0x10b   :  { %3574 = vpow2.f32 %v619_v43  ;;  %v623_v43 = vmul.f32 1.442695, %v554_v28  ;;  %v643_v28 = vmul.f32 1.442695, %v564_v48 }
 0x10c   :  { %3576 = vpow2.f32 %v637_v21  ;;  %v641_v21 = vmul.f32 1.442695, %v563_v41 }
 0x10d   :  { %541 = vmax.xlane.f32.xlu1 %v540_v39  ;;  %v4460_v62 = vpop.xlane.xlu0 %412  ;;  %v4476_v17 = vpop.xlane.xlu1 %421  ;;  %3578 = vpow2.f32 %v621_v20 }
 0x10e   :  { %5829 = vst [vmem:[#allocation38_spill] sm:$0xff] %v4460_v62  ;;  %517 = vmax.xlane.f32.xlu0 %v516_v13  ;;  %v3561_v13 = vpop.eup %3560  ;;  %5832 = vst [vmem:[#allocation41_spill] sm:$0xff] %v4476_v17  ;;  %3580 = vpow2.f32 %v639_v37 }
 0x10f   :  { %v3563_v31 = vpop.eup %3562  ;;  %3582 = vpow2.f32 %v623_v43 }
 0x110   :  { %v741_v0 = vsel %vm103_vm0, %v3563_v31, 0.0  ;;  %v625_v31 = vmul.f32 1.442695, %v555_v25  ;;  %3584 = vpow2.f32 %v641_v21 }
 0x111   :  { %544 = vmax.xlane.f32.xlu1 %v543_v33  ;;  %v4470_v39 = vpop.xlane.xlu0 %418  ;;  %v744_v33 = vsel %vm103_vm0, %v3561_v13, 0.0  ;;  %v4488_v24 = vpop.xlane.xlu1 %427 }
 0x112   :  { %5831 = vst [vmem:[#allocation40_spill] sm:$0xff] %v4470_v39  ;;  %520 = vmax.xlane.f32.xlu0 %v519_v15  ;;  %v3565_v15 = vpop.eup %3564  ;;  %5834 = vst [vmem:[#allocation43_spill] sm:$0xff] %v4488_v24  ;;  %3586 = vpow2.f32 %v625_v31 }
 0x113   :  { %v3567_v36 = vpop.eup %3566  ;;  %v768_v40 = vsel %vm103_vm0, %v3565_v15, 0.0  ;;  %3588 = vpow2.f32 %v643_v28 }
 0x114   :  { %v765_v13 = vsel %vm103_vm0, %v3567_v36, 0.0 }
 0x115   :  { %547 = vmax.xlane.f32.xlu1 %v546_v44  ;;  %v4480_v55 = vpop.xlane.xlu0 %424  ;;  %v3569_v44 = vpop.eup %3568 }
 0x116   :  { %5833 = vst [vmem:[#allocation42_spill] sm:$0xff] %v4480_v55  ;;  %523 = vmax.xlane.f32.xlu0 %v522_v58  ;;  %v3571_v20 = vpop.eup %3570  ;;  %v771_v45 = vsel %vm103_vm0, %v3569_v44, 0.0  ;;  %v4503_v15 = vpop.xlane.xlu1 %433 }
 0x117   :  { %v3573_v41 = vpop.eup %3572  ;;  %5836 = vst [vmem:[#allocation45_spill] sm:$0xff] %v4503_v15  ;;  %v747_v29 = vsel %vm103_vm0, %v3571_v20, 0.0 }
 0x118   :  { %v3575_v36 = vpop.eup %3574  ;;  %v774_v43 = vsel %vm103_vm0, %v3573_v41, 0.0 }
 0x119   :  { %745 = vadd.xlane.f32.xlu1 %v744_v33  ;;  %v4494_v58 = vpop.xlane.xlu0 %430  ;;  %v565_v33 = vsub.f32 %v4251_v52, %v4452_v59  ;;  %v3577_v21 = vpop.eup %3576  ;;  %v566_v52 = vsub.f32 %v4245_v49, %v4448_v46 }
 0x11a   :  { %742 = vadd.xlane.f32.xlu0 %v741_v0  ;;  %5835 = vst [vmem:[#allocation44_spill] sm:$0xff] %v4494_v58  ;;  %v573_v37 = vsub.f32 %v4283_v10, %v4494_v58  ;;  %v627_v0 = vmul.f32 1.442695, %v556_v32  ;;  %v574_v10 = vsub.f32 %v4277_v4, %v4503_v15  ;;  %v4513_v44 = vpop.xlane.xlu1 %439  ;;  %v3579_v31 = vpop.eup %3578  ;;  %v777_v20 = vsel %vm103_vm0, %v3577_v21, 0.0 }
 0x11b   :  { %v645_v48 = vmul.f32 1.442695, %v565_v33  ;;  %5838 = vst [vmem:[#allocation47_spill] sm:$0xff] %v4513_v44  ;;  %v3581_v28 = vpop.eup %3580  ;;  %v647_v49 = vmul.f32 1.442695, %v566_v52  ;;  %v753_v33 = vsel %vm103_vm0, %v3579_v31, 0.0 }
 0x11c   :  { %v661_v25 = vmul.f32 1.442695, %v573_v37  ;;  %3590 = vpow2.f32 %v627_v0  ;;  %v663_v32 = vmul.f32 1.442695, %v574_v10  ;;  %v3583_v0 = vpop.eup %3582 }
 0x11d   :  { %769 = vadd.xlane.f32.xlu1 %v768_v40  ;;  %v4511_v40 = vpop.xlane.xlu0 %436  ;;  %v756_v21 = vsel %vm103_vm0, %v3583_v0, 0.0 }
 0x11e   :  { %766 = vadd.xlane.f32.xlu0 %v765_v13  ;;  %5837 = vst [vmem:[#allocation46_spill] sm:$0xff] %v4511_v40  ;;  %v750_v13 = vsel %vm103_vm0, %v3575_v36, 0.0  ;;  %3592 = vpow2.f32 %v661_v25  ;;  %v575_v4 = vsub.f32 %v4291_v18, %v4511_v40  ;;  %v4523_v41 = vpop.xlane.xlu1 %445  ;;  %v576_v18 = vsub.f32 %v4285_v11, %v4513_v44 }
 0x11f   :  { %3594 = vpow2.f32 %v645_v48  ;;  %5840 = vst [vmem:[#allocation49_spill] sm:$0xff] %v4523_v41 }
 0x120   :  { %3596 = vpow2.f32 %v663_v32  ;;  %v665_v36 = vmul.f32 1.442695, %v575_v4  ;;  %v667_v52 = vmul.f32 1.442695, %v576_v18  ;;  %v570_v18 = vsub.f32 %v4261_v57, %v4476_v17 }
 0x121   :  { %772 = vadd.xlane.f32.xlu1 %v771_v45  ;;  %v567_v45 = vsub.f32 %v4259_v56, %v4460_v62  ;;  %v4521_v37 = vpop.xlane.xlu0 %442  ;;  %3598 = vpow2.f32 %v647_v49  ;;  %v568_v56 = vsub.f32 %v4253_v53, %v4462_v8  ;;  %v569_v53 = vsub.f32 %v4267_v60, %v4470_v39  ;;  %v5871_v8 = vld [vmem:[#allocation20_spill] sm:$0xff] }
 0x122   :  { %748 = vadd.xlane.f32.xlu0 %v747_v29  ;;  %5839 = vst [vmem:[#allocation48_spill] sm:$0xff] %v4521_v37  ;;  %v780_v29 = vsel %vm103_vm0, %v3581_v28, 0.0  ;;  %3600 = vpow2.f32 %v665_v36  ;;  %v577_v11 = vsub.f32 %v4299_v26, %v4521_v37  ;;  %v4537_v31 = vpop.xlane.xlu1 %451  ;;  %v578_v26 = vsub.f32 %v4293_v19, %v4523_v41 }
 0x123   :  { %v649_v25 = vmul.f32 1.442695, %v567_v45  ;;  %5842 = vst [vmem:[#allocation51_spill] sm:$0xff] %v4537_v31  ;;  %v653_v60 = vmul.f32 1.442695, %v569_v53  ;;  %v571_v57 = vsub.f32 %v4275_v3, %v4480_v55  ;;  %v572_v3 = vsub.f32 %v4269_v61, %v4488_v24 }
 0x124   :  { %v669_v45 = vmul.f32 1.442695, %v577_v11  ;;  %v655_v11 = vmul.f32 1.442695, %v570_v18 }
 0x125   :  { %775 = vadd.xlane.f32.xlu1 %v774_v43  ;;  %v3585_v43 = vpop.eup %3584  ;;  %v4531_v10 = vpop.xlane.xlu0 %448  ;;  %3602 = vpow2.f32 %v649_v25  ;;  %v671_v25 = vmul.f32 1.442695, %v578_v26  ;;  %v659_v61 = vmul.f32 1.442695, %v572_v3 }
 0x126   :  { %751 = vadd.xlane.f32.xlu0 %v750_v13  ;;  %5841 = vst [vmem:[#allocation50_spill] sm:$0xff] %v4531_v10  ;;  %v3587_v48 = vpop.eup %3586  ;;  %v783_v13 = vsel %vm103_vm0, %v3585_v43, 0.0  ;;  %3604 = vpow2.f32 %v667_v52  ;;  %v4547_v36 = vpop.xlane.xlu1 %457  ;;  %v579_v19 = vsub.f32 %v4307_v34, %v4531_v10 }
 0x127   :  { %v3589_v32 = vpop.eup %3588  ;;  %v759_v4 = vsel %vm103_vm0, %v3587_v48, 0.0  ;;  %5844 = vst [vmem:[#allocation53_spill] sm:$0xff] %v4547_v36 }
 0x128   :  { %v786_v49 = vsel %vm103_vm0, %v3589_v32, 0.0  ;;  %v580_v32 = vsub.f32 %v4301_v27, %v4537_v31  ;;  %v673_v34 = vmul.f32 1.442695, %v579_v19  ;;  %v582_v27 = vsub.f32 %v4309_v35, %v4547_v36 }
 0x129   :  { %778 = vadd.xlane.f32.xlu1 %v777_v20  ;;  %v651_v20 = vmul.f32 1.442695, %v568_v56  ;;  %v3591_v28 = vpop.eup %3590 }
 0x12a   :  { %754 = vadd.xlane.f32.xlu0 %v753_v33  ;;  %v4545_v33 = vpop.xlane.xlu0 %454  ;;  %v762_v43 = vsel %vm103_vm0, %v3591_v28, 0.0  ;;  %v4563_v53 = vpop.xlane.xlu1 %463  ;;  %v675_v26 = vmul.f32 1.442695, %v580_v32  ;;  %v679_v19 = vmul.f32 1.442695, %v582_v27 }
 0x12b   :  { %5843 = vst [vmem:[#allocation52_spill] sm:$0xff] %v4545_v33  ;;  %v3593_v0 = vpop.eup %3592  ;;  %3606 = vpow2.f32 %v651_v20  ;;  %5846 = vst [vmem:[#allocation55_spill] sm:$0xff] %v4563_v53  ;;  %v584_v15 = vsub.f32 %v5871_v8, %v4563_v53 }
 0x12c   :  { %3608 = vpow2.f32 %v669_v45  ;;  %v813_v56 = vsel %vm103_vm0, %v3593_v0, 0.0  ;;  %v657_v45 = vmul.f32 1.442695, %v571_v57 }
 0x12d   :  { %781 = vadd.xlane.f32.xlu1 %v780_v29  ;;  %v3595_v29 = vpop.eup %3594  ;;  %3610 = vpow2.f32 %v653_v60 }
 0x12e   :  { %757 = vadd.xlane.f32.xlu0 %v756_v21  ;;  %v3597_v21 = vpop.eup %3596  ;;  %v789_v48 = vsel %vm103_vm0, %v3595_v29, 0.0  ;;  %3612 = vpow2.f32 %v671_v25 }
 0x12f   :  { %v3599_v52 = vpop.eup %3598  ;;  %v816_v20 = vsel %vm103_vm0, %v3597_v21, 0.0  ;;  %3614 = vpow2.f32 %v655_v11 }
 0x130   :  { %v792_v28 = vsel %vm103_vm0, %v3599_v52, 0.0  ;;  %3616 = vpow2.f32 %v673_v34 }
 0x131   :  { %784 = vadd.xlane.f32.xlu1 %v783_v13  ;;  %v4556_v13 = vpop.xlane.xlu0 %460  ;;  %3618 = vpow2.f32 %v657_v45 }
 0x132   :  { %760 = vadd.xlane.f32.xlu0 %v759_v4  ;;  %5845 = vst [vmem:[#allocation54_spill] sm:$0xff] %v4556_v13  ;;  %v3601_v4 = vpop.eup %3600  ;;  %3620 = vpow2.f32 %v675_v26  ;;  %v583_v39 = vsub.f32 %v4323_v50, %v4556_v13 }
 0x133   :  { %v819_v0 = vsel %vm103_vm0, %v3601_v4, 0.0  ;;  %3622 = vpow2.f32 %v659_v61 }
 0x134   :  { %3624 = vpow2.f32 %v679_v19 }
 0x135   :  { %787 = vadd.xlane.f32.xlu1 %v786_v49  ;;  %v3603_v49 = vpop.eup %3602  ;;  %v4571_v29 = vpop.xlane.xlu0 %466 }
 0x136   :  { %763 = vadd.xlane.f32.xlu0 %v762_v43  ;;  %5847 = vst [vmem:[#allocation56_spill] sm:$0xff] %v4571_v29  ;;  %v3605_v60 = vpop.eup %3604  ;;  %v795_v18 = vsel %vm103_vm0, %v3603_v49, 0.0  ;;  %v581_v43 = vsub.f32 %v4315_v42, %v4545_v33 }
 0x137   :  { %v822_v35 = vsel %vm103_vm0, %v3605_v60, 0.0 }
 0x138   :  { %v3607_v25 = vpop.eup %3606 }
 0x139   :  { %814 = vadd.xlane.f32.xlu1 %v813_v56  ;;  %v4576_v56 = vpop.xlane.xlu1 %478  ;;  %v3609_v21 = vpop.eup %3608  ;;  %v798_v52 = vsel %vm103_vm0, %v3607_v25, 0.0 }
 0x13a   :  { %790 = vadd.xlane.f32.xlu0 %v789_v48  ;;  %5848 = vst [vmem:[#allocation57_spill] sm:$0xff] %v4576_v56  ;;  %v677_v48 = vmul.f32 1.442695, %v581_v43  ;;  %v589_v11 = vsub.f32 %v4325_v51, %v4576_v56  ;;  %v4582_v57 = vpop.xlane.xlu0 %481  ;;  %v3611_v42 = vpop.eup %3610  ;;  %v825_v32 = vsel %vm103_vm0, %v3609_v21, 0.0 }
 0x13b   :  { %5849 = vst [vmem:[#allocation58_spill] sm:$0xff] %v4582_v57  ;;  %v590_v4 = vsub.f32 %v4336_v6, %v4582_v57  ;;  %v3834_v57 = vld [vmem:[#allocation9] sm:$0xff] }
 0x13c   :  { %3626 = vpow2.f32 %v677_v48  ;;  %v693_v34 = vmul.f32 1.442695, %v589_v11 }
 0x13d   :  { %817 = vadd.xlane.f32.xlu1 %v816_v20  ;;  %v3613_v20 = vpop.eup %3612  ;;  %v695_v3 = vmul.f32 1.442695, %v590_v4  ;;  %v4593_v25 = vpop.xlane.xlu1 %484 }
 0x13e   :  { %793 = vadd.xlane.f32.xlu0 %v792_v28  ;;  %v801_v28 = vsel %vm103_vm0, %v3611_v42, 0.0  ;;  %v3615_v49 = vpop.eup %3614  ;;  %v828_v51 = vsel %vm103_vm0, %v3613_v20, 0.0  ;;  %3628 = vpow2.f32 %v693_v34  ;;  %5850 = vst [vmem:[#allocation59_spill] sm:$0xff] %v4593_v25  ;;  %v4596_v21 = vpop.xlane.xlu0 %487 }
 0x13f   :  { %v3617_v45 = vpop.eup %3616  ;;  %v804_v26 = vsel %vm103_vm0, %v3615_v49, 0.0  ;;  %3630 = vpow2.f32 %v695_v3  ;;  %5851 = vst [vmem:[#allocation60_spill] sm:$0xff] %v4596_v21 }
 0x140   :  { %v3619_v27 = vpop.eup %3618 }
 0x141   :  { %820 = vadd.xlane.f32.xlu1 %v819_v0  ;;  %v831_v0 = vsel %vm103_vm0, %v3617_v45, 0.0  ;;  %v3621_v60 = vpop.eup %3620  ;;  %v807_v6 = vsel %vm103_vm0, %v3619_v27, 0.0  ;;  %v4600_v42 = vpop.xlane.xlu1 %490 }
 0x142   :  { %796 = vadd.xlane.f32.xlu0 %v795_v18  ;;  %v3623_v18 = vpop.eup %3622  ;;  %v834_v43 = vsel %vm103_vm0, %v3621_v60, 0.0  ;;  %5852 = vst [vmem:[#allocation61_spill] sm:$0xff] %v4600_v42  ;;  %v4603_v20 = vpop.xlane.xlu0 %469 }
 0x143   :  { %v3625_v61 = vpop.eup %3624  ;;  %5853 = vst [vmem:[#allocation62_spill] sm:$0xff] %v4603_v20 }
 0x144   :  { %v840_v48 = vsel %vm103_vm0, %v3625_v61, 0.0  ;;  %v229_v61 = vlaneseq }
 0x145   :  { %823 = vadd.xlane.f32.xlu1 %v822_v35  ;;  %v810_v35 = vsel %vm103_vm0, %v3623_v18, 0.0  ;;  %v4605_v4 = vpop.xlane.xlu1 %493 }
 0x146   :  { %799 = vadd.xlane.f32.xlu0 %v798_v52  ;;  %5854 = vst [vmem:[#allocation63_spill] sm:$0xff] %v4605_v4  ;;  %v4608_v49 = vpop.xlane.xlu0 %472 }
 0x149   :  { %826 = vadd.xlane.f32.xlu1 %v825_v32  ;;  %v3627_v19 = vpop.eup %3626 }
 0x14a   :  { %802 = vadd.xlane.f32.xlu0 %v801_v28  ;;  %v837_v52 = vsel %vm103_vm0, %v3627_v19, 0.0  ;;  %v4612_v45 = vpop.xlane.xlu0 %475 }
 0x14b   :  { %v3629_v11 = vpop.eup %3628 }
 0x14c   :  { %v861_v32 = vsel %vm103_vm0, %v3629_v11, 0.0  ;;  %v3631_v34 = vpop.eup %3630 }
 0x14d   :  { %829 = vadd.xlane.f32.xlu1 %v828_v51  ;;  %v864_v28 = vsel %vm103_vm0, %v3631_v34, 0.0  ;;  %v4610_v51 = vpop.xlane.xlu1 %496 }
 0x14e   :  { %805 = vadd.xlane.f32.xlu0 %v804_v26  ;;  %v4616_v26 = vpop.xlane.xlu0 %502 }
 0x151   :  { %832 = vadd.xlane.f32.xlu1 %v831_v0  ;;  %v4614_v3 = vpop.xlane.xlu1 %499 }
 0x152   :  { %808 = vadd.xlane.f32.xlu0 %v807_v6 }
 0x155   :  { %835 = vadd.xlane.f32.xlu1 %v834_v43  ;;  %v4618_v27 = vpop.xlane.xlu1 %526 }
 0x156   :  { %811 = vadd.xlane.f32.xlu0 %v810_v35 }
 0x159   :  { %841 = vadd.xlane.f32.xlu1 %v840_v48  ;;  %v4632_v48 = vshrl.u32 %v229_v61, 7 }
 0x15a   :  { %838 = vadd.xlane.f32.xlu0 %v837_v52 }
 0x15b   :  { %5857 = vst [vmem:[#allocation66_spill] sm:$0xff] %v4632_v48  ;;  %v4643_v56 = vsub.s32 0, %v4632_v48  ;;  %v4652_v10 = vsub.s32 2, %v4632_v48  ;;  %v4664_v41 = vsub.s32 3, %v4632_v48  ;;  %v4667_v55 = vsub.s32 6, %v4632_v48 }
 0x15c   :  { %v4676_v37 = vsub.s32 5, %v4632_v48 }
 0x15e   :  { %862 = vadd.xlane.f32.xlu0 %v861_v32 }
 0x162   :  { %865 = vadd.xlane.f32.xlu0 %v864_v28 }
 0x173   :  { %v112_v0 = vpop.xlane.xlu0 %111 }
 0x174   :  { %3632 = vlog2.f32 %v112_v0  ;;  %v4640_v0 = vsub.s32 1, %v4632_v48 }
 0x176   :  { %v4620_v60 = vpop.xlane.xlu1 %177 }
 0x177   :  { %v4622_v6 = vpop.xlane.xlu0 %174 }
 0x17a   :  { %v4624_v18 = vpop.xlane.xlu1 %183 }
 0x17b   :  { %v4626_v43 = vpop.xlane.xlu0 %180 }
 0x17e   :  { %v4628_v19 = vpop.xlane.xlu1 %189 }
 0x17f   :  { %5855 = vst [vmem:[#allocation64_spill] sm:$0xff] %v4628_v19  ;;  %v4630_v35 = vpop.xlane.xlu0 %186 }
 0x180   :  { %5856 = vst [vmem:[#allocation65_spill] sm:$0xff] %v4630_v35 }
 0x181   :  { %v3633_v52 = vpop.eup %3632 }
 0x182   :  { %v114_v11 = vmul.f32 0.6931472, %v3633_v52  ;;  %v4634_v32 = vpop.xlane.xlu1 %529 }
 0x183   :  { %5858 = vst [vmem:[#allocation67_spill] sm:$0xff] %v4634_v32  ;;  %v4636_v34 = vpop.xlane.xlu0 %192  ;;  %v5898_v32 = vld [vmem:[#allocation23_spill] sm:$0xff] }
 0x184   :  { %5859 = vst [vmem:[#allocation68_spill] sm:$0xff] %v4636_v34  ;;  %v115_v28 = vadd.f32 %v114_v11, %v4355_v38  ;;  %v4655_v38 = vsub.s32 4, %v4632_v48 }
 0x186   :  { %v116_v36 = vsub.f32 %v3834_v57, %v115_v28  ;;  %v4645_v33 = vpop.xlane.xlu1 %195 }
 0x187   :  { %5860 = vst [vmem:[#allocation69_spill] sm:$0xff] %v4645_v33  ;;  %v4647_v61 = vpop.xlane.xlu0 %505 }
 0x188   :  { %v239_v52 = vrot.slane %v116_v36, %v4640_v0  ;;  %v232_v31 = vrot.slane %v116_v36, %v4643_v56  ;;  %v246_v57 = vrot.slane %v116_v36, %v4652_v10  ;;  %v260_v28 = vrot.slane %v116_v36, %v4655_v38 }
 0x189   :  { %v274_v33 = vrot.slane %v116_v36, %v4667_v55 }
 0x18a   :  { %241 = vbcast.lane.b32.xlu1 %v239_v52, 256  ;;  %234 = vbcast.lane.b32.xlu0 %v232_v31, 256  ;;  %v4657_v11 = vpop.xlane.xlu1 %532  ;;  %v253_v31 = vrot.slane %v116_v36, %v4664_v41 }
 0x18b   :  { %5861 = vst [vmem:[#allocation70_spill] sm:$0xff] %v4657_v11  ;;  %v4659_v24 = vpop.xlane.xlu0 %508 }
 0x18c   :  { %5862 = vst [vmem:[#allocation71_spill] sm:$0xff] %v4659_v24 }
 0x18e   :  { %248 = vbcast.lane.b32.xlu1 %v246_v57, 256  ;;  %262 = vbcast.lane.b32.xlu0 %v260_v28, 256  ;;  %v4669_v34 = vpop.xlane.xlu1 %535  ;;  %v267_v57 = vrot.slane %v116_v36, %v4676_v37  ;;  %v4684_v28 = vsub.s32 7, %v4632_v48  ;;  %v681_v48 = vmul.f32 1.442695, %v583_v39  ;;  %v5875_v39 = vld [vmem:[#allocation22_spill] sm:$0xff] }
 0x18f   :  { %5863 = vst [vmem:[#allocation72_spill] sm:$0xff] %v4669_v34  ;;  %v4671_v52 = vpop.xlane.xlu0 %511  ;;  %v592_v53 = vsub.f32 %v5875_v39, %v4596_v21 }
 0x190   :  { %5864 = vst [vmem:[#allocation73_spill] sm:$0xff] %v4671_v52  ;;  %3634 = vpow2.f32 %v681_v48 }
 0x192   :  { %255 = vbcast.lane.b32.xlu1 %v253_v31, 256  ;;  %276 = vbcast.lane.b32.xlu0 %v274_v33, 256  ;;  %v4678_v17 = vpop.xlane.xlu1 %538  ;;  %v281_v31 = vrot.slane %v116_v36, %v4684_v28  ;;  %v5874_v36 = vld [vmem:[#allocation21_spill] sm:$0xff] }
 0x193   :  { %5865 = vst [vmem:[#allocation74_spill] sm:$0xff] %v4678_v17  ;;  %v4680_v19 = vpop.xlane.xlu0 %514 }
 0x194   :  { %5866 = vst [vmem:[#allocation75_spill] sm:$0xff] %v4680_v19 }
 0x196   :  { %269 = vbcast.lane.b32.xlu1 %v267_v57, 256  ;;  %v4686_v35 = vpop.xlane.xlu1 %541 }
 0x197   :  { %5867 = vst [vmem:[#allocation76_spill] sm:$0xff] %v4686_v35  ;;  %v4688_v44 = vpop.xlane.xlu0 %517  ;;  %v683_v35 = vmul.f32 1.442695, %v584_v15 }
 0x198   :  { %5868 = vst [vmem:[#allocation77_spill] sm:$0xff] %v4688_v44 }
 0x199   :  { %3636 = vpow2.f32 %v683_v35 }
 0x19a   :  { %283 = vbcast.lane.b32.xlu1 %v281_v31, 256  ;;  %v4693_v33 = vpop.xlane.xlu1 %544  ;;  %v591_v31 = vsub.f32 %v5874_v36, %v4593_v25 }
 0x19b   :  { %5869 = vst [vmem:[#allocation78_spill] sm:$0xff] %v4693_v33  ;;  %v4695_v40 = vpop.xlane.xlu0 %520 }
 0x19c   :  { %5870 = vst [vmem:[#allocation79_spill] sm:$0xff] %v4695_v40  ;;  %v697_v8 = vmul.f32 1.442695, %v591_v31 }
 0x19d   :  { %v3635_v48 = vpop.eup %3634 }
 0x19e   :  { %v4699_v17 = vpop.xlane.xlu1 %547  ;;  %3638 = vpow2.f32 %v697_v8  ;;  %v843_v36 = vsel %vm103_vm0, %v3635_v48, 0.0 }
 0x19f   :  { %5872 = vst [vmem:[#allocation20_spill] sm:$0xff] %v4699_v17  ;;  %v4701_v57 = vpop.xlane.xlu0 %523 }
 0x1a0   :  { %5873 = vst [vmem:[#allocation80_spill] sm:$0xff] %v4701_v57  ;;  %v699_v57 = vmul.f32 1.442695, %v592_v53 }
 0x1a2   :  { %v4703_v62 = vpop.xlane.xlu1 %745  ;;  %3640 = vpow2.f32 %v699_v57 }
 0x1a3   :  { %v4705_v50 = vpop.xlane.xlu0 %742  ;;  %3642 = vlog2.f32 %v4620_v60 }
 0x1a4   :  { %3644 = vlog2.f32 %v4622_v6 }
 0x1a6   :  { %v4709_v13 = vpop.xlane.xlu1 %769  ;;  %v3637_v25 = vpop.eup %3636 }
 0x1a7   :  { %v4711_v33 = vpop.xlane.xlu0 %766  ;;  %v846_v39 = vsel %vm103_vm0, %v3637_v25, 0.0 }
 0x1aa   :  { %v4715_v17 = vpop.xlane.xlu1 %772 }
 0x1ab   :  { %v4717_v15 = vpop.xlane.xlu0 %748  ;;  %v3639_v53 = vpop.eup %3638 }
 0x1ac   :  { %v867_v48 = vsel %vm103_vm0, %v3639_v53, 0.0 }
 0x1ae   :  { %v4719_v40 = vpop.xlane.xlu1 %775 }
 0x1af   :  { %v4721_v35 = vpop.xlane.xlu0 %751  ;;  %v3641_v57 = vpop.eup %3640 }
 0x1b0   :  { %v870_v46 = vsel %vm103_vm0, %v3641_v57, 0.0 }
 0x1b1   :  { %844 = vadd.xlane.f32.xlu0 %v843_v36 }
 0x1b2   :  { %v4724_v31 = vpop.xlane.xlu1 %778 }
 0x1b3   :  { %v4726_v44 = vpop.xlane.xlu0 %754 }
 0x1b5   :  { %847 = vadd.xlane.f32.xlu0 %v846_v39 }
 0x1b6   :  { %v4729_v21 = vpop.xlane.xlu1 %781 }
 0x1b7   :  { %v4731_v8 = vpop.xlane.xlu0 %757 }
 0x1ba   :  { %v4735_v34 = vpop.xlane.xlu1 %784 }
 0x1bb   :  { %v4733_v58 = vpop.xlane.xlu0 %760  ;;  %5876 = vst [vmem:[#allocation21_spill] sm:$0xff] %v4735_v34 }
 0x1be   :  { %868 = vadd.xlane.f32.xlu1 %v867_v48  ;;  %v4741_v19 = vpop.xlane.xlu1 %787 }
 0x1bf   :  { %v4738_v36 = vpop.xlane.xlu0 %763  ;;  %5878 = vst [vmem:[#allocation81_spill] sm:$0xff] %v4741_v19 }
 0x1c0   :  { %5877 = vst [vmem:[#allocation22_spill] sm:$0xff] %v4738_v36 }
 0x1c2   :  { %871 = vadd.xlane.f32.xlu1 %v870_v46  ;;  %v4747_v7 = vpop.xlane.xlu1 %814 }
 0x1c3   :  { %v4743_v25 = vpop.xlane.xlu0 %790  ;;  %5881 = vst [vmem:[#allocation84_spill] sm:$0xff] %v4747_v7 }
 0x1c4   :  { %5879 = vst [vmem:[#allocation82_spill] sm:$0xff] %v4743_v25 }
 0x1c6   :  { %v4751_v59 = vpop.xlane.xlu1 %817 }
 0x1c7   :  { %v4745_v39 = vpop.xlane.xlu0 %793  ;;  %5883 = vst [vmem:[#allocation86_spill] sm:$0xff] %v4751_v59 }
 0x1c8   :  { %5880 = vst [vmem:[#allocation83_spill] sm:$0xff] %v4745_v39  ;;  %v5897_v39 = vld [vmem:[#allocation24_spill] sm:$0xff] }
 0x1ca   :  { %v4755_v48 = vpop.xlane.xlu1 %820 }
 0x1cb   :  { %v4749_v11 = vpop.xlane.xlu0 %796  ;;  %5885 = vst [vmem:[#allocation88_spill] sm:$0xff] %v4755_v48 }
 0x1cc   :  { %5882 = vst [vmem:[#allocation85_spill] sm:$0xff] %v4749_v11 }
 0x1ce   :  { %v4759_v57 = vpop.xlane.xlu1 %823 }
 0x1cf   :  { %v4753_v53 = vpop.xlane.xlu0 %799  ;;  %5887 = vst [vmem:[#allocation90_spill] sm:$0xff] %v4759_v57 }
 0x1d0   :  { %5884 = vst [vmem:[#allocation87_spill] sm:$0xff] %v4753_v53 }
 0x1d2   :  { %v4763_v46 = vpop.xlane.xlu1 %826 }
 0x1d3   :  { %v4757_v52 = vpop.xlane.xlu0 %802  ;;  %5889 = vst [vmem:[#allocation92_spill] sm:$0xff] %v4763_v46 }
 0x1d4   :  { %5886 = vst [vmem:[#allocation89_spill] sm:$0xff] %v4757_v52  ;;  %v3643_v52 = vpop.eup %3642 }
 0x1d5   :  { %v3645_v57 = vpop.eup %3644  ;;  %v200_v46 = vmul.f32 0.6931472, %v3643_v52 }
 0x1d6   :  { %v4769_v11 = vpop.xlane.xlu1 %829 }
 0x1d7   :  { %v4761_v19 = vpop.xlane.xlu0 %805  ;;  %5891 = vst [vmem:[#allocation94_spill] sm:$0xff] %v4769_v11  ;;  %v214_v60 = vadd.f32 %v200_v46, %v5897_v39  ;;  %v3838_v46 = vld [vmem:[#allocation12 + $0x160] sm:$0xff] }
 0x1d8   :  { %5888 = vst [vmem:[#allocation91_spill] sm:$0xff] %v4761_v19 }
 0x1da   :  { %v4773_v53 = vpop.xlane.xlu1 %832 }
 0x1db   :  { %v4765_v25 = vpop.xlane.xlu0 %808  ;;  %5893 = vst [vmem:[#allocation96_spill] sm:$0xff] %v4773_v53 }
 0x1dc   :  { %5890 = vst [vmem:[#allocation93_spill] sm:$0xff] %v4765_v25  ;;  %v198_v25 = vmul.f32 0.6931472, %v3645_v57 }
 0x1de   :  { %v4777_v7 = vpop.xlane.xlu1 %835  ;;  %v213_v6 = vadd.f32 %v198_v25, %v5898_v32 }
 0x1df   :  { %v4771_v59 = vpop.xlane.xlu0 %811  ;;  %5895 = vst [vmem:[#allocation98_spill] sm:$0xff] %v4777_v7 }
 0x1e0   :  { %5892 = vst [vmem:[#allocation95_spill] sm:$0xff] %v4771_v59  ;;  %v3835_v59 = vld [vmem:[#allocation11 + $0x8] sm:$0xff] }
 0x1e1   :  { %v222_v53 = vsub.f32 %v3835_v59, %v214_v60  ;;  %v593_v60 = vsub.f32 %v3838_v46, %v4600_v42 }
 0x1e2   :  { %v4783_v12 = vpop.xlane.xlu1 %841 }
 0x1e3   :  { %v4775_v48 = vpop.xlane.xlu0 %838 }
 0x1e4   :  { %5894 = vst [vmem:[#allocation97_spill] sm:$0xff] %v4775_v48  ;;  %v221_v48 = vsub.f32 %v3836_v5, %v213_v6 }
 0x1e7   :  { %v4779_v19 = vpop.xlane.xlu0 %862 }
 0x1e8   :  { %5896 = vst [vmem:[#allocation99_spill] sm:$0xff] %v4779_v19 }
 0x1eb   :  { %v4785_v11 = vpop.xlane.xlu0 %865 }
 0x1ec   :  { %5899 = vst [vmem:[#allocation24_spill] sm:$0xff] %v4785_v11 }
 0x1fc   :  { %v242_v24 = vpop.permute.xlu1 %241  ;;  %v235_v36 = vpop.permute.xlu0 %234 }
 0x1fd   :  { %v4787_v34 = vadd.f32 %v242_v24, %v222_v53  ;;  %v4789_v7 = vadd.f32 %v235_v36, %v221_v48  ;;  %v3837_v48 = vld [vmem:[#allocation12 + $0x120] sm:$0xff] }
 0x1fe   :  { %v585_v57 = vsub.f32 %v3837_v48, %v4571_v29  ;;  %v3840_v48 = vld [vmem:[#allocation12 + $0x168] sm:$0xff] }
 0x1ff   :  { %v1248_v52 = vrot.slane %v4787_v34, %v4643_v56  ;;  %v1192_v32 = vrot.slane %v4789_v7, %v4643_v56  ;;  %v1199_v25 = vrot.slane %v4789_v7, %v4640_v0  ;;  %v1255_v5 = vrot.slane %v4787_v34, %v4640_v0 }
 0x200   :  { %v1206_v59 = vrot.slane %v4789_v7, %v4652_v10  ;;  %v1213_v24 = vrot.slane %v4789_v7, %v4664_v41  ;;  %v1262_v36 = vrot.slane %v4787_v34, %v4652_v10  ;;  %v1220_v39 = vrot.slane %v4789_v7, %v4655_v38 }
 0x201   :  { %1250 = vbcast.lane.b32.xlu0 %v1248_v52, 256  ;;  %1194 = vbcast.lane.b32.xlu1 %v1192_v32, 256  ;;  %v1269_v53 = vrot.slane %v4787_v34, %v4664_v41  ;;  %v685_v6 = vmul.f32 1.442695, %v585_v57  ;;  %v701_v52 = vmul.f32 1.442695, %v593_v60  ;;  %v594_v57 = vsub.f32 %v3840_v48, %v4605_v4 }
 0x202   :  { %v5905_v4 = vld [vmem:[#allocation31_spill] sm:$0xff] }
 0x203   :  { %3646 = vpow2.f32 %v685_v6  ;;  %v703_v60 = vmul.f32 1.442695, %v594_v57  ;;  %v4819_v6 = vpop.permute.xlu1 %248 }
 0x204   :  { %3648 = vpow2.f32 %v701_v52 }
 0x205   :  { %1201 = vbcast.lane.b32.xlu0 %v1199_v25, 256  ;;  %1257 = vbcast.lane.b32.xlu1 %v1255_v5, 256 }
 0x207   :  { %v4822_v52 = vpop.permute.xlu1 %255 }
 0x209   :  { %1208 = vbcast.lane.b32.xlu0 %v1206_v59, 256  ;;  %1215 = vbcast.lane.b32.xlu1 %v1213_v24, 256  ;;  %v1227_v24 = vrot.slane %v4789_v7, %v4676_v37 }
 0x20d   :  { %1264 = vbcast.lane.b32.xlu0 %v1262_v36, 256  ;;  %1222 = vbcast.lane.b32.xlu1 %v1220_v39, 256  ;;  %v1276_v36 = vrot.slane %v4787_v34, %v4655_v38  ;;  %v3839_v39 = vld [vmem:[#allocation12 + $0x128] sm:$0xff] }
 0x210   :  { %v3647_v32 = vpop.eup %3646 }
 0x211   :  { %1271 = vbcast.lane.b32.xlu0 %v1269_v53, 256  ;;  %v3649_v25 = vpop.eup %3648  ;;  %v849_v5 = vsel %vm103_vm0, %v3647_v32, 0.0  ;;  %v586_v53 = vsub.f32 %v3839_v39, %v4603_v20  ;;  %v4827_v32 = vpop.permute.xlu0 %262  ;;  %v5904_v20 = vld [vmem:[#allocation33_spill] sm:$0xff] }
 0x212   :  { %v873_v59 = vsel %vm103_vm0, %v3649_v25, 0.0  ;;  %v4829_v25 = vpop.permute.xlu1 %269 }
 0x213   :  { %v687_v46 = vmul.f32 1.442695, %v586_v53 }
 0x215   :  { %3650 = vpow2.f32 %v687_v46 }
 0x216   :  { %3652 = vpow2.f32 %v703_v60 }
 0x217   :  { %3654 = vlog2.f32 %v4705_v50 }
 0x218   :  { %3656 = vlog2.f32 %v4711_v33  ;;  %v4837_v33 = vpop.permute.xlu1 %283 }
 0x219   :  { %3658 = vlog2.f32 %v4703_v62 }
 0x21a   :  { %3660 = vlog2.f32 %v4709_v13 }
 0x21b   :  { %3662 = vlog2.f32 %v4717_v15 }
 0x21c   :  { %3664 = vlog2.f32 %v4721_v35 }
 0x21d   :  { %3666 = vlog2.f32 %v4715_v17 }
 0x21e   :  { %3668 = vlog2.f32 %v4726_v44 }
 0x21f   :  { %3670 = vlog2.f32 %v4719_v40  ;;  %v3841_v40 = vld [vmem:[#allocation12] sm:$0xff] }
 0x230   :  { %850 = vadd.xlane.f32.xlu0 %v849_v5  ;;  %v3651_v5 = vpop.eup %3650 }
 0x231   :  { %874 = vadd.xlane.f32.xlu1 %v873_v59  ;;  %v3653_v59 = vpop.eup %3652  ;;  %v852_v50 = vsel %vm103_vm0, %v3651_v5, 0.0 }
 0x232   :  { %v876_v62 = vsel %vm103_vm0, %v3653_v59, 0.0  ;;  %v3655_v13 = vpop.eup %3654 }
 0x233   :  { %v934_v48 = vmul.f32 0.6931472, %v3655_v13 }
 0x235   :  { %v1061_v5 = vadd.f32 %v934_v48, %v4387_v9 }
 0x242   :  { %1229 = vbcast.lane.b32.xlu1 %v1227_v24, 256  ;;  %v4835_v24 = vpop.permute.xlu0 %276 }
 0x246   :  { %1278 = vbcast.lane.b32.xlu0 %v1276_v36, 256  ;;  %v3657_v36 = vpop.eup %3656  ;;  %v4841_v39 = vpop.xlane.xlu0 %844 }
 0x247   :  { %v3659_v15 = vpop.eup %3658  ;;  %5900 = vst [vmem:[#allocation23_spill] sm:$0xff] %v4841_v39  ;;  %v4843_v35 = vpop.xlane.xlu1 %868  ;;  %v950_v17 = vmul.f32 0.6931472, %v3657_v36 }
 0x248   :  { %5901 = vst [vmem:[#allocation100_spill] sm:$0xff] %v4843_v35  ;;  %v3661_v53 = vpop.eup %3660  ;;  %v936_v57 = vmul.f32 0.6931472, %v3659_v15  ;;  %v1125_v15 = vsub.f32 %v3841_v40, %v1061_v5 }
 0x249   :  { %v952_v46 = vmul.f32 0.6931472, %v3661_v53  ;;  %v3663_v60 = vpop.eup %3662  ;;  %v1069_v59 = vadd.f32 %v950_v17, %v4416_v63  ;;  %v3842_v53 = vld [vmem:[#allocation12 + $0x40] sm:$0xff] }
 0x24a   :  { %v3665_v44 = vpop.eup %3664  ;;  %v1062_v19 = vadd.f32 %v936_v57, %v5905_v4  ;;  %v938_v36 = vmul.f32 0.6931472, %v3663_v60  ;;  %v3844_v4 = vld [vmem:[#allocation12 + $0x48] sm:$0xff] }
 0x24b   :  { %v1070_v29 = vadd.f32 %v952_v46, %v5904_v20  ;;  %v3667_v13 = vpop.eup %3666  ;;  %v940_v42 = vmul.f32 0.6931472, %v3665_v44  ;;  %v1133_v35 = vsub.f32 %v3842_v53, %v1069_v59 }
 0x24c   :  { %v3669_v39 = vpop.eup %3668  ;;  %v954_v11 = vmul.f32 0.6931472, %v3667_v13  ;;  %v1063_v5 = vadd.f32 %v938_v36, %v4392_v23 }
 0x24d   :  { %v942_v46 = vmul.f32 0.6931472, %v3669_v39  ;;  %v1134_v57 = vsub.f32 %v3844_v4, %v1070_v29  ;;  %v1064_v60 = vadd.f32 %v940_v42, %v4398_v16  ;;  %v3671_v59 = vpop.eup %3670  ;;  %v3845_v29 = vld [vmem:[#allocation12 + $0x18] sm:$0xff]  ;;  %v3846_v42 = vld [vmem:[#allocation12 + $0x10] sm:$0xff] }
 0x24e   :  { %v1071_v39 = vadd.f32 %v954_v11, %v4422_v30  ;;  %v1127_v23 = vsub.f32 %v3846_v42, %v1063_v5  ;;  %v3847_v30 = vld [vmem:[#allocation12 + $0x20] sm:$0xff]  ;;  %v3850_v5 = vld [vmem:[#allocation12 + $0x170] sm:$0xff]  ;;  %v1241_v42 = vrot.slane %v4789_v7, %v4684_v28 }
 0x24f   :  { %v1128_v16 = vsub.f32 %v3845_v29, %v1064_v60 }
 0x265   :  { %853 = vadd.xlane.f32.xlu0 %v852_v50  ;;  %v4848_v50 = vpop.xlane.xlu0 %847 }
 0x266   :  { %877 = vadd.xlane.f32.xlu1 %v876_v62  ;;  %5902 = vst [vmem:[#allocation101_spill] sm:$0xff] %v4848_v50  ;;  %v4850_v62 = vpop.xlane.xlu1 %871  ;;  %v3843_v50 = vld [vmem:[#allocation12 + $0x8] sm:$0xff] }
 0x267   :  { %5903 = vst [vmem:[#allocation102_spill] sm:$0xff] %v4850_v62  ;;  %v1234_v62 = vrot.slane %v4789_v7, %v4667_v55  ;;  %v1126_v20 = vsub.f32 %v3843_v50, %v1062_v19  ;;  %v1283_v19 = vrot.slane %v4787_v34, %v4676_v37  ;;  %v956_v50 = vmul.f32 0.6931472, %v3671_v59 }
 0x268   :  { %v595_v59 = vsub.f32 %v3850_v5, %v4610_v51  ;;  %v3856_v5 = vld [vmem:[#allocation12 + $0x28] sm:$0xff] }
 0x273   :  { %v1195_v9 = vpop.permute.xlu1 %1194  ;;  %v1251_v48 = vpop.permute.xlu0 %1250 }
 0x274   :  { %v1637_v63 = vadd.f32 %v1195_v9, %v1125_v15  ;;  %v1645_v17 = vadd.f32 %v1251_v48, %v1133_v35  ;;  %v3848_v48 = vld [vmem:[#allocation12 + $0x50] sm:$0xff] }
 0x276   :  { %1701 = vst.msk [vmem:[#allocation2] sm:$0xff] %vm103_vm0, %v1637_v63  ;;  %1709 = vst.msk [vmem:[#allocation2 + $0x40] sm:$0xff] %vm103_vm0, %v1645_v17  ;;  %v1135_v63 = vsub.f32 %v3848_v48, %v1071_v39  ;;  %v1072_v17 = vadd.f32 %v956_v50, %v4418_v14  ;;  %v705_v14 = vmul.f32 1.442695, %v595_v59 }
 0x277   :  { %1236 = vbcast.lane.b32.xlu1 %v1234_v62, 256  ;;  %v1258_v35 = vpop.permute.xlu1 %1257  ;;  %v1202_v44 = vpop.permute.xlu0 %1201  ;;  %v1065_v62 = vadd.f32 %v942_v46, %v4404_v1  ;;  %v3849_v1 = vld [vmem:[#allocation12 + $0x130] sm:$0xff] }
 0x278   :  { %v1646_v13 = vadd.f32 %v1258_v35, %v1134_v57  ;;  %v1638_v40 = vadd.f32 %v1202_v44, %v1126_v20  ;;  %v587_v46 = vsub.f32 %v3849_v1, %v4608_v49  ;;  %v3851_v35 = vld [vmem:[#allocation12 + $0x58] sm:$0xff] }
 0x279   :  { %v1129_v11 = vsub.f32 %v3847_v30, %v1065_v62  ;;  %v1136_v44 = vsub.f32 %v3851_v35, %v1072_v17  ;;  %v3854_v17 = vld [vmem:[#allocation12 + $0x180] sm:$0xff] }
 0x27a   :  { %1710 = vst.msk [vmem:[#allocation2 + $0x48] sm:$0xff] %vm103_vm0, %v1646_v13  ;;  %1702 = vst.msk [vmem:[#allocation2 + $0x8] sm:$0xff] %vm103_vm0, %v1638_v40 }
 0x27b   :  { %1285 = vbcast.lane.b32.xlu0 %v1283_v19, 256  ;;  %v1216_v36 = vpop.permute.xlu1 %1215  ;;  %v1209_v15 = vpop.permute.xlu0 %1208  ;;  %v689_v19 = vmul.f32 1.442695, %v587_v46 }
 0x27c   :  { %v1640_v53 = vadd.f32 %v1216_v36, %v1128_v16  ;;  %v1639_v9 = vadd.f32 %v1209_v15, %v1127_v23  ;;  %v1290_v23 = vrot.slane %v4787_v34, %v4667_v55 }
 0x27d   :  { %3672 = vpow2.f32 %v689_v19 }
 0x27e   :  { %1704 = vst.msk [vmem:[#allocation2 + $0x18] sm:$0xff] %vm103_vm0, %v1640_v53  ;;  %1703 = vst.msk [vmem:[#allocation2 + $0x10] sm:$0xff] %vm103_vm0, %v1639_v9  ;;  %3674 = vpow2.f32 %v705_v14  ;;  %v3852_v9 = vld [vmem:[#allocation12 + $0x138] sm:$0xff] }
 0x27f   :  { %v1223_v20 = vpop.permute.xlu1 %1222  ;;  %v1265_v4 = vpop.permute.xlu0 %1264  ;;  %3676 = vlog2.f32 %v4724_v31  ;;  %v588_v30 = vsub.f32 %v3852_v9, %v4612_v45 }
 0x280   :  { %v1641_v57 = vadd.f32 %v1223_v20, %v1129_v11  ;;  %v1647_v60 = vadd.f32 %v1265_v4, %v1135_v63  ;;  %3678 = vlog2.f32 %v4731_v8  ;;  %v3853_v11 = vld [vmem:[#allocation12 + $0x178] sm:$0xff]  ;;  %v597_v20 = vsub.f32 %v3854_v17, %v4616_v26 }
 0x281   :  { %v596_v31 = vsub.f32 %v3853_v11, %v4614_v3  ;;  %v691_v63 = vmul.f32 1.442695, %v588_v30  ;;  %v1297_v30 = vrot.slane %v4787_v34, %v4684_v28 }
 0x282   :  { %1705 = vst.msk [vmem:[#allocation2 + $0x20] sm:$0xff] %vm103_vm0, %v1641_v57  ;;  %1711 = vst.msk [vmem:[#allocation2 + $0x50] sm:$0xff] %vm103_vm0, %v1647_v60  ;;  %v3855_v60 = vld [vmem:[#allocation12 + $0x60] sm:$0xff]  ;;  %v709_v35 = vmul.f32 1.442695, %v597_v20 }
 0x283   :  { %v1272_v13 = vpop.permute.xlu0 %1271  ;;  %v707_v57 = vmul.f32 1.442695, %v596_v31  ;;  %3680 = vpow2.f32 %v691_v63  ;;  %v3859_v63 = vld [vmem:[#allocation12 + $0x1c0] sm:$0xff] }
 0x284   :  { %v1648_v40 = vadd.f32 %v1272_v13, %v1136_v44  ;;  %v605_v17 = vsub.f32 %v3859_v63, %v4618_v27 }
 0x285   :  { %3682 = vpow2.f32 %v707_v57 }
 0x286   :  { %1712 = vst.msk [vmem:[#allocation2 + $0x58] sm:$0xff] %vm103_vm0, %v1648_v40  ;;  %3684 = vlog2.f32 %v4626_v43  ;;  %v3857_v43 = vld [vmem:[#allocation11 + $0x10] sm:$0xff] }
 0x287   :  { %3686 = vpow2.f32 %v709_v35 }
 0x288   :  { %3688 = vlog2.f32 %v4729_v21  ;;  %v3858_v21 = vld [vmem:[#allocation12 + $0x188] sm:$0xff] }
 0x289   :  { %3690 = vlog2.f32 %v4733_v58 }
 0x28a   :  { %v3673_v39 = vpop.eup %3672 }
 0x28b   :  { %v3675_v50 = vpop.eup %3674  ;;  %v855_v29 = vsel %vm103_vm0, %v3673_v39, 0.0 }
 0x28c   :  { %v879_v16 = vsel %vm103_vm0, %v3675_v50, 0.0  ;;  %v3677_v62 = vpop.eup %3676 }
 0x28d   :  { %v3679_v36 = vpop.eup %3678  ;;  %v958_v15 = vmul.f32 0.6931472, %v3677_v62 }
 0x28e   :  { %v944_v53 = vmul.f32 0.6931472, %v3679_v36 }
 0x28f   :  { %v1073_v8 = vadd.f32 %v958_v15, %v4432_v22 }
 0x290   :  { %v1066_v7 = vadd.f32 %v944_v53, %v4400_v54  ;;  %v3681_v54 = vpop.eup %3680 }
 0x291   :  { %v1137_v1 = vsub.f32 %v3855_v60, %v1073_v8  ;;  %v858_v14 = vsel %vm103_vm0, %v3681_v54, 0.0  ;;  %v598_v8 = vsub.f32 %v3858_v21, %v4647_v61  ;;  %v3860_v60 = vld [vmem:[#allocation12 + $0x68] sm:$0xff]  ;;  %v5911_v21 = vld [vmem:[#allocation35_spill] sm:$0xff] }
 0x292   :  { %v1130_v59 = vsub.f32 %v3856_v5, %v1066_v7  ;;  %v3683_v40 = vpop.eup %3682 }
 0x293   :  { %v3685_v19 = vpop.eup %3684  ;;  %v882_v50 = vsel %vm103_vm0, %v3683_v40, 0.0  ;;  %v711_v57 = vmul.f32 1.442695, %v598_v8 }
 0x294   :  { %v3687_v39 = vpop.eup %3686 }
 0x295   :  { %v3689_v53 = vpop.eup %3688  ;;  %3692 = vpow2.f32 %v711_v57 }
 0x296   :  { %v3691_v9 = vpop.eup %3690  ;;  %v960_v11 = vmul.f32 0.6931472, %v3689_v53 }
 0x297   :  { %v946_v31 = vmul.f32 0.6931472, %v3691_v9 }
 0x298   :  { %v1074_v58 = vadd.f32 %v960_v11, %v4424_v47  ;;  %v5910_v11 = vld [vmem:[#allocation71_spill] sm:$0xff] }
 0x29a   :  { %856 = vadd.xlane.f32.xlu0 %v855_v29  ;;  %v202_v29 = vmul.f32 0.6931472, %v3685_v19  ;;  %v1138_v34 = vsub.f32 %v3860_v60, %v1074_v58 }
 0x29b   :  { %880 = vadd.xlane.f32.xlu1 %v879_v16  ;;  %v885_v16 = vsel %vm103_vm0, %v3687_v39, 0.0  ;;  %v5908_v39 = vld [vmem:[#allocation22_spill] sm:$0xff] }
 0x2ac   :  { %1243 = vbcast.lane.b32.xlu1 %v1241_v42, 256  ;;  %v5906_v42 = vld [vmem:[#allocation25_spill] sm:$0xff] }
 0x2b0   :  { %1292 = vbcast.lane.b32.xlu0 %v1290_v23, 256  ;;  %v215_v23 = vadd.f32 %v202_v29, %v5906_v42 }
 0x2b2   :  { %v223_v62 = vsub.f32 %v3857_v43, %v215_v23 }
 0x2b4   :  { %v4901_v36 = vadd.f32 %v4819_v6, %v223_v62  ;;  %v1067_v6 = vadd.f32 %v946_v31, %v4410_v2  ;;  %v3693_v2 = vpop.eup %3692 }
 0x2b6   :  { %v1304_v15 = vrot.slane %v4901_v36, %v4643_v56 }
 0x2b9   :  { %v4885_v48 = vpop.xlane.xlu0 %850 }
 0x2ba   :  { %v4889_v4 = vpop.xlane.xlu1 %874 }
 0x2bd   :  { %v1279_v46 = vpop.permute.xlu0 %1278 }
 0x2be   :  { %v1649_v44 = vadd.f32 %v1279_v46, %v1137_v1  ;;  %v1230_v22 = vpop.permute.xlu1 %1229  ;;  %v3861_v46 = vld [vmem:[#allocation12 + $0x30] sm:$0xff] }
 0x2bf   :  { %v1642_v13 = vadd.f32 %v1230_v22, %v1130_v59  ;;  %v1131_v5 = vsub.f32 %v3861_v46, %v1067_v6  ;;  %v725_v59 = vmul.f32 1.442695, %v605_v17  ;;  %v5912_v6 = vld [vmem:[#allocation32_spill] sm:$0xff] }
 0x2c0   :  { %1713 = vst.msk [vmem:[#allocation2 + $0x60] sm:$0xff] %vm103_vm0, %v1649_v44  ;;  %v3864_v17 = vld [vmem:[#allocation12 + $0x1c8] sm:$0xff] }
 0x2c1   :  { %1706 = vst.msk [vmem:[#allocation2 + $0x28] sm:$0xff] %vm103_vm0, %v1642_v13  ;;  %3694 = vpow2.f32 %v725_v59  ;;  %v888_v13 = vsel %vm103_vm0, %v3693_v2, 0.0  ;;  %v3866_v59 = vld [vmem:[#allocation12 + $0x38] sm:$0xff] }
 0x2c2   :  { %3696 = vlog2.f32 %v4624_v18  ;;  %v3862_v18 = vld [vmem:[#allocation11 + $0x18] sm:$0xff] }
 0x2ce   :  { %v3695_v22 = vpop.eup %3694 }
 0x2cf   :  { %859 = vadd.xlane.f32.xlu0 %v858_v14  ;;  %v909_v54 = vsel %vm103_vm0, %v3695_v22, 0.0  ;;  %v3697_v40 = vpop.eup %3696  ;;  %v5907_v14 = vld [vmem:[#allocation21_spill] sm:$0xff] }
 0x2d0   :  { %883 = vadd.xlane.f32.xlu1 %v882_v50  ;;  %v204_v19 = vmul.f32 0.6931472, %v3697_v40  ;;  %3698 = vlog2.f32 %v5907_v14  ;;  %v5909_v50 = vld [vmem:[#allocation26_spill] sm:$0xff] }
 0x2d1   :  { %3700 = vlog2.f32 %v5908_v39  ;;  %v5914_v14 = vld [vmem:[#allocation82_spill] sm:$0xff]  ;;  %v5915_v39 = vld [vmem:[#allocation81_spill] sm:$0xff] }
 0x2d2   :  { %v216_v29 = vadd.f32 %v204_v19, %v5909_v50  ;;  %v1318_v50 = vrot.slane %v4901_v36, %v4652_v10 }
 0x2d3   :  { %886 = vadd.xlane.f32.xlu0 %v885_v16  ;;  %v1311_v16 = vrot.slane %v4901_v36, %v4640_v0 }
 0x2d4   :  { %v224_v42 = vsub.f32 %v3862_v18, %v216_v29 }
 0x2d6   :  { %v4926_v23 = vadd.f32 %v4822_v52, %v224_v42  ;;  %v5913_v52 = vld [vmem:[#allocation67_spill] sm:$0xff] }
 0x2d7   :  { %v606_v57 = vsub.f32 %v3864_v17, %v5913_v52 }
 0x2dd   :  { %v3699_v43 = vpop.eup %3698 }
 0x2de   :  { %v3701_v62 = vpop.eup %3700  ;;  %v962_v53 = vmul.f32 0.6931472, %v3699_v43  ;;  %v3867_v43 = vld [vmem:[#allocation12 + $0x198] sm:$0xff] }
 0x2df   :  { %v948_v9 = vmul.f32 0.6931472, %v3701_v62  ;;  %v5916_v62 = vld [vmem:[#allocation73_spill] sm:$0xff] }
 0x2e0   :  { %v1075_v8 = vadd.f32 %v962_v53, %v5911_v21  ;;  %v3868_v21 = vld [vmem:[#allocation12 + $0x1d0] sm:$0xff] }
 0x2e1   :  { %1306 = vbcast.lane.b32.xlu1 %v1304_v15, 256  ;;  %v1360_v15 = vrot.slane %v4926_v23, %v4643_v56  ;;  %v1068_v63 = vadd.f32 %v948_v9, %v5912_v6 }
 0x2e9   :  { %1299 = vbcast.lane.b32.xlu0 %v1297_v30, 256  ;;  %v3863_v30 = vld [vmem:[#allocation12 + $0x190] sm:$0xff] }
 0x2ea   :  { %v599_v31 = vsub.f32 %v3863_v30, %v5910_v11  ;;  %v5917_v30 = vld [vmem:[#allocation37_spill] sm:$0xff] }
 0x2ee   :  { %v4909_v7 = vpop.xlane.xlu0 %853 }
 0x2ef   :  { %v4913_v20 = vpop.xlane.xlu1 %877 }
 0x2f2   :  { %v1286_v1 = vpop.permute.xlu0 %1285 }
 0x2f3   :  { %v1650_v35 = vadd.f32 %v1286_v1, %v1138_v34  ;;  %v1237_v44 = vpop.permute.xlu1 %1236  ;;  %v713_v34 = vmul.f32 1.442695, %v599_v31  ;;  %v3865_v1 = vld [vmem:[#allocation12 + $0x70] sm:$0xff] }
 0x2f4   :  { %v1643_v47 = vadd.f32 %v1237_v44, %v1131_v5  ;;  %v1139_v46 = vsub.f32 %v3865_v1, %v1075_v8  ;;  %v727_v44 = vmul.f32 1.442695, %v606_v57  ;;  %v5918_v8 = vld [vmem:[#allocation70_spill] sm:$0xff] }
 0x2f5   :  { %1714 = vst.msk [vmem:[#allocation2 + $0x68] sm:$0xff] %vm103_vm0, %v1650_v35  ;;  %v1132_v35 = vsub.f32 %v3866_v59, %v1068_v63  ;;  %3702 = vpow2.f32 %v713_v34  ;;  %v607_v6 = vsub.f32 %v3868_v21, %v5918_v8  ;;  %v5919_v57 = vld [vmem:[#allocation34_spill] sm:$0xff]  ;;  %v5923_v21 = vld [vmem:[#allocation36_spill] sm:$0xff] }
 0x2f6   :  { %1707 = vst.msk [vmem:[#allocation2 + $0x30] sm:$0xff] %vm103_vm0, %v1643_v47  ;;  %3704 = vpow2.f32 %v727_v44 }
 0x2f7   :  { %3706 = vlog2.f32 %v5914_v14  ;;  %v729_v59 = vmul.f32 1.442695, %v607_v6 }
 0x2f8   :  { %3708 = vlog2.f32 %v5915_v39  ;;  %v5920_v39 = vld [vmem:[#allocation83_spill] sm:$0xff] }
 0x305   :  { %889 = vadd.xlane.f32.xlu1 %v888_v13  ;;  %v3703_v13 = vpop.eup %3702 }
 0x306   :  { %v891_v40 = vsel %vm103_vm0, %v3703_v13, 0.0 }
 0x308   :  { %910 = vadd.xlane.f32.xlu0 %v909_v54  ;;  %v3705_v54 = vpop.eup %3704 }
 0x309   :  { %v912_v19 = vsel %vm103_vm0, %v3705_v54, 0.0  ;;  %v3707_v29 = vpop.eup %3706 }
 0x30a   :  { %v3709_v18 = vpop.eup %3708  ;;  %v966_v42 = vmul.f32 0.6931472, %v3707_v29  ;;  %v1325_v29 = vrot.slane %v4901_v36, %v4664_v41 }
 0x30b   :  { %v964_v53 = vmul.f32 0.6931472, %v3709_v18  ;;  %v1374_v18 = vrot.slane %v4926_v23, %v4652_v10 }
 0x30c   :  { %v1077_v31 = vadd.f32 %v966_v42, %v5917_v30 }
 0x30d   :  { %v1076_v34 = vadd.f32 %v964_v53, %v5919_v57  ;;  %v5922_v53 = vld [vmem:[#allocation75_spill] sm:$0xff]  ;;  %v5924_v57 = vld [vmem:[#allocation72_spill] sm:$0xff] }
 0x316   :  { %1313 = vbcast.lane.b32.xlu1 %v1311_v16, 256  ;;  %v1367_v16 = vrot.slane %v4926_v23, %v4640_v0 }
 0x31e   :  { %1362 = vbcast.lane.b32.xlu0 %v1360_v15, 256  ;;  %v600_v15 = vsub.f32 %v3867_v43, %v5916_v62 }
 0x320   :  { %v715_v17 = vmul.f32 1.442695, %v600_v15  ;;  %v3871_v15 = vld [vmem:[#allocation12 + $0x1a0] sm:$0xff] }
 0x321   :  { %v601_v30 = vsub.f32 %v3871_v15, %v5922_v53  ;;  %v1332_v15 = vrot.slane %v4901_v36, %v4655_v38 }
 0x322   :  { %3710 = vpow2.f32 %v715_v17  ;;  %v3872_v17 = vld [vmem:[#allocation12 + $0x1d8] sm:$0xff] }
 0x323   :  { %v4932_v58 = vpop.xlane.xlu0 %856  ;;  %3712 = vpow2.f32 %v729_v59  ;;  %v5925_v59 = vld [vmem:[#allocation44_spill] sm:$0xff] }
 0x324   :  { %v4936_v60 = vpop.xlane.xlu1 %880  ;;  %3714 = vlog2.f32 %v5920_v39 }
 0x327   :  { %v1293_v5 = vpop.permute.xlu0 %1292 }
 0x328   :  { %v1651_v47 = vadd.f32 %v1293_v5, %v1139_v46  ;;  %v1244_v2 = vpop.permute.xlu1 %1243  ;;  %v3869_v46 = vld [vmem:[#allocation12 + $0x80] sm:$0xff] }
 0x329   :  { %v1644_v22 = vadd.f32 %v1244_v2, %v1132_v35  ;;  %v1141_v5 = vsub.f32 %v3869_v46, %v1077_v31 }
 0x32a   :  { %1715 = vst.msk [vmem:[#allocation2 + $0x70] sm:$0xff] %vm103_vm0, %v1651_v47  ;;  %v3870_v47 = vld [vmem:[#allocation12 + $0x78] sm:$0xff] }
 0x32b   :  { %1708 = vst.msk [vmem:[#allocation2 + $0x38] sm:$0xff] %vm103_vm0, %v1644_v22  ;;  %v1140_v2 = vsub.f32 %v3870_v47, %v1076_v34  ;;  %v608_v34 = vsub.f32 %v3872_v17, %v5924_v57  ;;  %v3873_v47 = vld [vmem:[#allocation12 + $0x88] sm:$0xff] }
 0x32c   :  { %v3875_v17 = vld [vmem:[#allocation12 + $0x1a8] sm:$0xff] }
 0x32f   :  { %v3711_v54 = vpop.eup %3710 }
 0x33a   :  { %892 = vadd.xlane.f32.xlu1 %v891_v40  ;;  %v3713_v40 = vpop.eup %3712 }
 0x33b   :  { %v915_v14 = vsel %vm103_vm0, %v3713_v40, 0.0  ;;  %v3874_v40 = vld [vmem:[#allocation12 + $0xc0] sm:$0xff] }
 0x33d   :  { %913 = vadd.xlane.f32.xlu0 %v912_v19  ;;  %v894_v19 = vsel %vm103_vm0, %v3711_v54, 0.0 }
 0x34b   :  { %1320 = vbcast.lane.b32.xlu1 %v1318_v50, 256  ;;  %v5921_v50 = vld [vmem:[#allocation84_spill] sm:$0xff] }
 0x34c   :  { %3716 = vlog2.f32 %v5921_v50 }
 0x353   :  { %1369 = vbcast.lane.b32.xlu0 %v1367_v16, 256  ;;  %v3715_v16 = vpop.eup %3714 }
 0x354   :  { %v968_v43 = vmul.f32 0.6931472, %v3715_v16 }
 0x356   :  { %v1078_v6 = vadd.f32 %v968_v43, %v5923_v21  ;;  %v5927_v43 = vld [vmem:[#allocation86_spill] sm:$0xff] }
 0x358   :  { %v4949_v9 = vpop.xlane.xlu0 %859 }
 0x359   :  { %v4953_v63 = vpop.xlane.xlu1 %883  ;;  %v3717_v42 = vpop.eup %3716 }
 0x35a   :  { %v982_v31 = vmul.f32 0.6931472, %v3717_v42  ;;  %v5926_v42 = vld [vmem:[#allocation85_spill] sm:$0xff] }
 0x35c   :  { %v4956_v1 = vpop.xlane.xlu0 %886 }
 0x35d   :  { %v1307_v35 = vpop.permute.xlu1 %1306 }
 0x35e   :  { %v1653_v44 = vadd.f32 %v1307_v35, %v1141_v5  ;;  %v717_v5 = vmul.f32 1.442695, %v601_v30  ;;  %v1085_v35 = vadd.f32 %v982_v31, %v5925_v59  ;;  %v1381_v31 = vrot.slane %v4926_v23, %v4664_v41 }
 0x360   :  { %1717 = vst.msk [vmem:[#allocation2 + $0x80] sm:$0xff] %vm103_vm0, %v1653_v44  ;;  %v1300_v22 = vpop.permute.xlu0 %1299  ;;  %3718 = vpow2.f32 %v717_v5 }
 0x361   :  { %v1652_v13 = vadd.f32 %v1300_v22, %v1140_v2  ;;  %v1142_v2 = vsub.f32 %v3873_v47, %v1078_v6  ;;  %v731_v22 = vmul.f32 1.442695, %v608_v34  ;;  %v5928_v34 = vld [vmem:[#allocation77_spill] sm:$0xff] }
 0x362   :  { %v602_v5 = vsub.f32 %v3875_v17, %v5928_v34  ;;  %v3885_v34 = vld [vmem:[#allocation12 + $0xa0] sm:$0xff] }
 0x363   :  { %1716 = vst.msk [vmem:[#allocation2 + $0x78] sm:$0xff] %vm103_vm0, %v1652_v13  ;;  %3720 = vpow2.f32 %v731_v22  ;;  %v5930_v22 = vld [vmem:[#allocation74_spill] sm:$0xff] }
 0x364   :  { %3722 = vlog2.f32 %v5926_v42 }
 0x365   :  { %3724 = vlog2.f32 %v5927_v43  ;;  %v3878_v43 = vld [vmem:[#allocation12 + $0xc8] sm:$0xff] }
 0x36d   :  { %v3719_v50 = vpop.eup %3718 }
 0x36e   :  { %v897_v16 = vsel %vm103_vm0, %v3719_v50, 0.0  ;;  %v3877_v50 = vld [vmem:[#allocation12 + $0x90] sm:$0xff] }
 0x36f   :  { %895 = vadd.xlane.f32.xlu1 %v894_v19  ;;  %v1149_v19 = vsub.f32 %v3874_v40, %v1085_v35  ;;  %v5929_v35 = vld [vmem:[#allocation38_spill] sm:$0xff]  ;;  %v719_v40 = vmul.f32 1.442695, %v602_v5 }
 0x371   :  { %3726 = vpow2.f32 %v719_v40 }
 0x372   :  { %916 = vadd.xlane.f32.xlu0 %v915_v14 }
 0x380   :  { %1327 = vbcast.lane.b32.xlu1 %v1325_v29, 256  ;;  %v3721_v29 = vpop.eup %3720 }
 0x381   :  { %v3723_v30 = vpop.eup %3722 }
 0x382   :  { %v3725_v21 = vpop.eup %3724  ;;  %v970_v6 = vmul.f32 0.6931472, %v3723_v30 }
 0x383   :  { %v984_v59 = vmul.f32 0.6931472, %v3725_v21  ;;  %v3727_v21 = vpop.eup %3726 }
 0x384   :  { %v1079_v47 = vadd.f32 %v970_v6, %v5929_v35  ;;  %v900_v17 = vsel %vm103_vm0, %v3727_v21, 0.0  ;;  %v5933_v35 = vld [vmem:[#allocation88_spill] sm:$0xff] }
 0x388   :  { %1376 = vbcast.lane.b32.xlu0 %v1374_v18, 256  ;;  %v918_v18 = vsel %vm103_vm0, %v3721_v29, 0.0  ;;  %v1143_v29 = vsub.f32 %v3877_v50, %v1079_v47  ;;  %v1339_v47 = vrot.slane %v4901_v36, %v4676_v37  ;;  %v5934_v50 = vld [vmem:[#allocation79_spill] sm:$0xff] }
 0x38e   :  { %v4971_v46 = vpop.xlane.xlu1 %889 }
 0x391   :  { %v4974_v44 = vpop.xlane.xlu0 %910 }
 0x392   :  { %v1314_v13 = vpop.permute.xlu1 %1313 }
 0x393   :  { %v1654_v54 = vadd.f32 %v1314_v13, %v1142_v2  ;;  %v3876_v2 = vld [vmem:[#allocation12 + $0x1e0] sm:$0xff] }
 0x394   :  { %v609_v13 = vsub.f32 %v3876_v2, %v5930_v22 }
 0x395   :  { %1718 = vst.msk [vmem:[#allocation2 + $0x88] sm:$0xff] %vm103_vm0, %v1654_v54  ;;  %v1363_v14 = vpop.permute.xlu0 %1362 }
 0x396   :  { %v1661_v39 = vadd.f32 %v1363_v14, %v1149_v19  ;;  %v5931_v19 = vld [vmem:[#allocation45_spill] sm:$0xff] }
 0x397   :  { %v1086_v14 = vadd.f32 %v984_v59, %v5931_v19  ;;  %v5932_v59 = vld [vmem:[#allocation87_spill] sm:$0xff] }
 0x398   :  { %1725 = vst.msk [vmem:[#allocation2 + $0xc0] sm:$0xff] %vm103_vm0, %v1661_v39 }
 0x3a4   :  { %898 = vadd.xlane.f32.xlu1 %v897_v16  ;;  %v733_v16 = vmul.f32 1.442695, %v609_v13  ;;  %v1388_v13 = vrot.slane %v4926_v23, %v4655_v38 }
 0x3a6   :  { %3728 = vpow2.f32 %v733_v16 }
 0x3a7   :  { %919 = vadd.xlane.f32.xlu0 %v918_v18  ;;  %3730 = vlog2.f32 %v5932_v59  ;;  %v3881_v59 = vld [vmem:[#allocation12 + $0x98] sm:$0xff] }
 0x3a8   :  { %3732 = vlog2.f32 %v5933_v35 }
 0x3b3   :  { %v3729_v6 = vpop.eup %3728 }
 0x3b4   :  { %v921_v5 = vsel %vm103_vm0, %v3729_v6, 0.0  ;;  %v3731_v2 = vpop.eup %3730  ;;  %v5937_v6 = vld [vmem:[#allocation46_spill] sm:$0xff] }
 0x3b5   :  { %1334 = vbcast.lane.b32.xlu1 %v1332_v15, 256  ;;  %v1150_v15 = vsub.f32 %v3878_v43, %v1086_v14  ;;  %v3733_v40 = vpop.eup %3732  ;;  %v972_v19 = vmul.f32 0.6931472, %v3731_v2  ;;  %v3879_v14 = vld [vmem:[#allocation12 + $0x1b0] sm:$0xff]  ;;  %v3880_v43 = vld [vmem:[#allocation12 + $0x1e8] sm:$0xff] }
 0x3b6   :  { %v986_v16 = vmul.f32 0.6931472, %v3733_v40 }
 0x3bd   :  { %1383 = vbcast.lane.b32.xlu0 %v1381_v31, 256 }
 0x3c3   :  { %v4989_v54 = vpop.xlane.xlu1 %892 }
 0x3c6   :  { %v4992_v39 = vpop.xlane.xlu0 %913 }
 0x3c7   :  { %v1321_v18 = vpop.permute.xlu1 %1320 }
 0x3c8   :  { %v1655_v42 = vadd.f32 %v1321_v18, %v1143_v29  ;;  %v603_v29 = vsub.f32 %v3879_v14, %v5934_v50  ;;  %v5935_v18 = vld [vmem:[#allocation39_spill] sm:$0xff]  ;;  %v3882_v14 = vld [vmem:[#allocation12 + $0xd0] sm:$0xff] }
 0x3ca   :  { %1719 = vst.msk [vmem:[#allocation2 + $0x90] sm:$0xff] %vm103_vm0, %v1655_v42  ;;  %v1370_v30 = vpop.permute.xlu0 %1369  ;;  %v1080_v42 = vadd.f32 %v972_v19, %v5935_v18  ;;  %v721_v21 = vmul.f32 1.442695, %v603_v29 }
 0x3cb   :  { %v1662_v31 = vadd.f32 %v1370_v30, %v1150_v15  ;;  %v5936_v15 = vld [vmem:[#allocation76_spill] sm:$0xff] }
 0x3cc   :  { %v610_v30 = vsub.f32 %v3880_v43, %v5936_v15  ;;  %v1144_v35 = vsub.f32 %v3881_v59, %v1080_v42  ;;  %3734 = vpow2.f32 %v721_v21  ;;  %v5939_v21 = vld [vmem:[#allocation90_spill] sm:$0xff]  ;;  %v1395_v59 = vrot.slane %v4926_v23, %v4676_v37 }
 0x3cd   :  { %1726 = vst.msk [vmem:[#allocation2 + $0xc8] sm:$0xff] %vm103_vm0, %v1662_v31 }
 0x3d9   :  { %901 = vadd.xlane.f32.xlu1 %v900_v17  ;;  %v1087_v17 = vadd.f32 %v986_v16, %v5937_v6  ;;  %v3735_v29 = vpop.eup %3734  ;;  %v1346_v6 = vrot.slane %v4901_v36, %v4667_v55 }
 0x3da   :  { %v903_v16 = vsel %vm103_vm0, %v3735_v29, 0.0  ;;  %v3884_v29 = vld [vmem:[#allocation12 + $0x1f0] sm:$0xff] }
 0x3db   :  { %v1151_v40 = vsub.f32 %v3882_v14, %v1087_v17 }
 0x3dc   :  { %922 = vadd.xlane.f32.xlu0 %v921_v5 }
 0x3ea   :  { %1341 = vbcast.lane.b32.xlu1 %v1339_v47, 256  ;;  %v735_v47 = vmul.f32 1.442695, %v610_v30  ;;  %v5938_v30 = vld [vmem:[#allocation89_spill] sm:$0xff] }
 0x3ec   :  { %3736 = vpow2.f32 %v735_v47 }
 0x3ed   :  { %3738 = vlog2.f32 %v5938_v30 }
 0x3ee   :  { %3740 = vlog2.f32 %v5939_v21  ;;  %v5943_v21 = vld [vmem:[#allocation47_spill] sm:$0xff] }
 0x3f2   :  { %1390 = vbcast.lane.b32.xlu0 %v1388_v13, 256 }
 0x3f8   :  { %v5007_v31 = vpop.xlane.xlu1 %895 }
 0x3f9   :  { %v3737_v43 = vpop.eup %3736 }
 0x3fa   :  { %v924_v42 = vsel %vm103_vm0, %v3737_v43, 0.0  ;;  %v3739_v17 = vpop.eup %3738  ;;  %v5942_v43 = vld [vmem:[#allocation78_spill] sm:$0xff] }
 0x3fb   :  { %v5010_v5 = vpop.xlane.xlu0 %916  ;;  %v974_v47 = vmul.f32 0.6931472, %v3739_v17 }
 0x3fc   :  { %v1328_v2 = vpop.permute.xlu1 %1327 }
 0x3fd   :  { %v1656_v13 = vadd.f32 %v1328_v2, %v1144_v35  ;;  %v3741_v35 = vpop.eup %3740  ;;  %v3883_v2 = vld [vmem:[#allocation12 + $0x1b8] sm:$0xff] }
 0x3ff   :  { %1720 = vst.msk [vmem:[#allocation2 + $0x98] sm:$0xff] %vm103_vm0, %v1656_v13  ;;  %v1377_v19 = vpop.permute.xlu0 %1376  ;;  %v5940_v13 = vld [vmem:[#allocation80_spill] sm:$0xff] }
 0x400   :  { %v1663_v18 = vadd.f32 %v1377_v19, %v1151_v40  ;;  %v604_v14 = vsub.f32 %v3883_v2, %v5940_v13  ;;  %v988_v40 = vmul.f32 0.6931472, %v3741_v35  ;;  %v5941_v19 = vld [vmem:[#allocation40_spill] sm:$0xff]  ;;  %v3886_v2 = vld [vmem:[#allocation12 + $0xd8] sm:$0xff]  ;;  %v3894_v13 = vld [vmem:[#allocation11 + $0x30] sm:$0xff] }
 0x402   :  { %1727 = vst.msk [vmem:[#allocation2 + $0xd0] sm:$0xff] %vm103_vm0, %v1663_v18  ;;  %v1081_v18 = vadd.f32 %v974_v47, %v5941_v19  ;;  %v723_v30 = vmul.f32 1.442695, %v604_v14  ;;  %v5944_v14 = vld [vmem:[#allocation65_spill] sm:$0xff] }
 0x404   :  { %3742 = vpow2.f32 %v723_v30 }
 0x40e   :  { %904 = vadd.xlane.f32.xlu1 %v903_v16  ;;  %v611_v16 = vsub.f32 %v3884_v29, %v5942_v43 }
 0x410   :  { %v737_v53 = vmul.f32 1.442695, %v611_v16 }
 0x411   :  { %925 = vadd.xlane.f32.xlu0 %v924_v42 }
 0x412   :  { %3744 = vpow2.f32 %v737_v53  ;;  %v5947_v53 = vld [vmem:[#allocation92_spill] sm:$0xff] }
 0x413   :  { %3746 = vlog2.f32 %v5944_v14 }
 0x41f   :  { %1348 = vbcast.lane.b32.xlu1 %v1346_v6, 256  ;;  %v1088_v6 = vadd.f32 %v988_v40, %v5943_v21  ;;  %v3743_v40 = vpop.eup %3742 }
 0x420   :  { %v3745_v29 = vpop.eup %3744  ;;  %v906_v21 = vsel %vm103_vm0, %v3743_v40, 0.0  ;;  %v1409_v40 = vrot.slane %v4926_v23, %v4684_v28 }
 0x421   :  { %v1152_v35 = vsub.f32 %v3886_v2, %v1088_v6  ;;  %v3747_v16 = vpop.eup %3746  ;;  %v5948_v6 = vld [vmem:[#allocation27_spill] sm:$0xff]  ;;  %v1353_v2 = vrot.slane %v4901_v36, %v4684_v28 }
 0x422   :  { %v206_v30 = vmul.f32 0.6931472, %v3747_v16  ;;  %v3888_v16 = vld [vmem:[#allocation11 + $0x28] sm:$0xff] }
 0x427   :  { %1397 = vbcast.lane.b32.xlu0 %v1395_v59, 256  ;;  %v1145_v59 = vsub.f32 %v3885_v34, %v1081_v18  ;;  %v5945_v34 = vld [vmem:[#allocation64_spill] sm:$0xff]  ;;  %v927_v18 = vsel %vm103_vm0, %v3745_v29, 0.0 }
 0x428   :  { %3748 = vlog2.f32 %v5945_v34  ;;  %v5949_v29 = vld [vmem:[#allocation28_spill] sm:$0xff] }
 0x42d   :  { %v5025_v42 = vpop.xlane.xlu1 %898 }
 0x430   :  { %v5028_v50 = vpop.xlane.xlu0 %919 }
 0x431   :  { %v1335_v17 = vpop.permute.xlu1 %1334 }
 0x432   :  { %v1657_v62 = vadd.f32 %v1335_v17, %v1145_v59  ;;  %v217_v59 = vadd.f32 %v206_v30, %v5948_v6 }
 0x434   :  { %1721 = vst.msk [vmem:[#allocation2 + $0xa0] sm:$0xff] %vm103_vm0, %v1657_v62  ;;  %v1384_v47 = vpop.permute.xlu0 %1383  ;;  %v5946_v62 = vld [vmem:[#allocation91_spill] sm:$0xff] }
 0x435   :  { %v1664_v19 = vadd.f32 %v1384_v47, %v1152_v35  ;;  %3750 = vlog2.f32 %v5946_v62  ;;  %v3749_v17 = vpop.eup %3748  ;;  %v3887_v47 = vld [vmem:[#allocation11 + $0x20] sm:$0xff] }
 0x436   :  { %3752 = vlog2.f32 %v5947_v53  ;;  %v208_v35 = vmul.f32 0.6931472, %v3749_v17  ;;  %v5950_v17 = vld [vmem:[#allocation41_spill] sm:$0xff] }
 0x437   :  { %1728 = vst.msk [vmem:[#allocation2 + $0xd8] sm:$0xff] %vm103_vm0, %v1664_v19  ;;  %v225_v19 = vsub.f32 %v3887_v47, %v217_v59 }
 0x439   :  { %v5042_v14 = vadd.f32 %v4827_v32, %v225_v19 }
 0x43b   :  { %v1416_v36 = vrot.slane %v5042_v14, %v4643_v56  ;;  %v1423_v6 = vrot.slane %v5042_v14, %v4640_v0 }
 0x442   :  { %v3751_v34 = vpop.eup %3750 }
 0x443   :  { %907 = vadd.xlane.f32.xlu1 %v906_v21  ;;  %v218_v21 = vadd.f32 %v208_v35, %v5949_v29  ;;  %v3753_v62 = vpop.eup %3752  ;;  %v976_v32 = vmul.f32 0.6931472, %v3751_v34  ;;  %v3889_v35 = vld [vmem:[#allocation12 + $0x1f8] sm:$0xff]  ;;  %v5952_v29 = vld [vmem:[#allocation48_spill] sm:$0xff] }
 0x444   :  { %v990_v59 = vmul.f32 0.6931472, %v3753_v62 }
 0x445   :  { %v226_v30 = vsub.f32 %v3888_v16, %v218_v21 }
 0x446   :  { %928 = vadd.xlane.f32.xlu0 %v927_v18  ;;  %v1402_v18 = vrot.slane %v4926_v23, %v4667_v55  ;;  %v5951_v23 = vld [vmem:[#allocation20_spill] sm:$0xff]  ;;  %v1089_v21 = vadd.f32 %v990_v59, %v5952_v29 }
 0x447   :  { %v290_v53 = vadd.f32 %v4829_v25, %v226_v30  ;;  %v612_v47 = vsub.f32 %v3889_v35, %v5951_v23  ;;  %v3890_v25 = vld [vmem:[#allocation12 + $0xa8] sm:$0xff]  ;;  %v1430_v30 = vrot.slane %v5042_v14, %v4652_v10 }
 0x454   :  { %1355 = vbcast.lane.b32.xlu1 %v1353_v2, 256  ;;  %v1082_v2 = vadd.f32 %v976_v32, %v5950_v17  ;;  %v5953_v32 = vld [vmem:[#allocation69_spill] sm:$0xff] }
 0x455   :  { %3754 = vlog2.f32 %v5953_v32  ;;  %v1514_v32 = vrot.slane %v290_v53, %v4667_v55 }
 0x458   :  { %1411 = vbcast.lane.b32.xlu1 %v1409_v40, 256  ;;  %v1479_v40 = vrot.slane %v290_v53, %v4640_v0 }
 0x45c   :  { %1404 = vbcast.lane.b32.xlu0 %v1402_v18, 256  ;;  %1418 = vbcast.lane.b32.xlu1 %v1416_v36, 256  ;;  %v1146_v18 = vsub.f32 %v3890_v25, %v1082_v2  ;;  %v739_v36 = vmul.f32 1.442695, %v612_v47  ;;  %v1437_v2 = vrot.slane %v5042_v14, %v4664_v41  ;;  %v1493_v47 = vrot.slane %v290_v53, %v4664_v41 }
 0x45e   :  { %3756 = vpow2.f32 %v739_v36 }
 0x460   :  { %1425 = vbcast.lane.b32.xlu1 %v1423_v6, 256  ;;  %v3891_v6 = vld [vmem:[#allocation12 + $0xe0] sm:$0xff] }
 0x461   :  { %v1153_v17 = vsub.f32 %v3891_v6, %v1089_v21  ;;  %v1500_v21 = vrot.slane %v290_v53, %v4655_v38  ;;  %v3892_v6 = vld [vmem:[#allocation11 + $0x38] sm:$0xff] }
 0x462   :  { %v5056_v19 = vpop.xlane.xlu1 %901  ;;  %v3755_v29 = vpop.eup %3754 }
 0x464   :  { %1481 = vbcast.lane.b32.xlu1 %v1479_v40, 256  ;;  %v1486_v40 = vrot.slane %v290_v53, %v4652_v10 }
 0x465   :  { %v5060_v34 = vpop.xlane.xlu0 %922 }
 0x466   :  { %v1342_v16 = vpop.permute.xlu1 %1341 }
 0x467   :  { %v1658_v62 = vadd.f32 %v1342_v16, %v1146_v18  ;;  %v212_v18 = vmul.f32 0.6931472, %v3755_v29  ;;  %v1507_v16 = vrot.slane %v290_v53, %v4676_v37 }
 0x468   :  { %1432 = vbcast.lane.b32.xlu1 %v1430_v30, 256  ;;  %v5954_v30 = vld [vmem:[#allocation30_spill] sm:$0xff] }
 0x469   :  { %1722 = vst.msk [vmem:[#allocation2 + $0xa8] sm:$0xff] %vm103_vm0, %v1658_v62  ;;  %v1391_v35 = vpop.permute.xlu0 %1390  ;;  %v220_v62 = vadd.f32 %v212_v18, %v5954_v30 }
 0x46a   :  { %v1665_v59 = vadd.f32 %v1391_v35, %v1153_v17  ;;  %v5955_v35 = vld [vmem:[#allocation93_spill] sm:$0xff] }
 0x46b   :  { %v3757_v25 = vpop.eup %3756  ;;  %v228_v17 = vsub.f32 %v3892_v6, %v220_v62  ;;  %3758 = vlog2.f32 %v5955_v35 }
 0x46c   :  { %1729 = vst.msk [vmem:[#allocation2 + $0xe0] sm:$0xff] %vm103_vm0, %v1665_v59  ;;  %1488 = vbcast.lane.b32.xlu1 %v1486_v40, 256  ;;  %v930_v36 = vsel %vm103_vm0, %v3757_v25, 0.0  ;;  %v1521_v40 = vrot.slane %v290_v53, %v4684_v28 }
 0x46d   :  { %v292_v59 = vadd.f32 %v4837_v33, %v228_v17 }
 0x46f   :  { %v1584_v29 = vrot.slane %v292_v59, %v4643_v56  ;;  %v1598_v25 = vrot.slane %v292_v59, %v4652_v10  ;;  %v1605_v62 = vrot.slane %v292_v59, %v4664_v41  ;;  %v1612_v35 = vrot.slane %v292_v59, %v4655_v38 }
 0x470   :  { %1439 = vbcast.lane.b32.xlu1 %v1437_v2, 256  ;;  %v5956_v2 = vld [vmem:[#allocation68_spill] sm:$0xff] }
 0x471   :  { %3760 = vlog2.f32 %v5956_v2 }
 0x474   :  { %1495 = vbcast.lane.b32.xlu1 %v1493_v47, 256  ;;  %v5957_v47 = vld [vmem:[#allocation94_spill] sm:$0xff] }
 0x475   :  { %3762 = vlog2.f32 %v5957_v47 }
 0x478   :  { %1502 = vbcast.lane.b32.xlu1 %v1500_v21, 256  ;;  %v1591_v21 = vrot.slane %v292_v59, %v4640_v0  ;;  %v3759_v18 = vpop.eup %3758 }
 0x479   :  { %v978_v30 = vmul.f32 0.6931472, %v3759_v18 }
 0x47b   :  { %931 = vadd.xlane.f32.xlu0 %v930_v36  ;;  %v1472_v36 = vrot.slane %v290_v53, %v4643_v56  ;;  %v1451_v53 = vrot.slane %v5042_v14, %v4676_v37 }
 0x47c   :  { %1509 = vbcast.lane.b32.xlu1 %v1507_v16, 256 }
 0x47e   :  { %v3761_v33 = vpop.eup %3760 }
 0x47f   :  { %v210_v6 = vmul.f32 0.6931472, %v3761_v33  ;;  %v3893_v33 = vld [vmem:[#allocation12 + $0xb0] sm:$0xff] }
 0x480   :  { %1516 = vbcast.lane.b32.xlu1 %v1514_v32, 256  ;;  %v1444_v32 = vrot.slane %v5042_v14, %v4655_v38 }
 0x482   :  { %v3763_v16 = vpop.eup %3762 }
 0x483   :  { %v992_v17 = vmul.f32 0.6931472, %v3763_v16 }
 0x484   :  { %1523 = vbcast.lane.b32.xlu1 %v1521_v40, 256  ;;  %v5958_v40 = vld [vmem:[#allocation42_spill] sm:$0xff] }
 0x485   :  { %v1083_v2 = vadd.f32 %v978_v30, %v5958_v40  ;;  %v1458_v30 = vrot.slane %v5042_v14, %v4667_v55 }
 0x487   :  { %v1147_v16 = vsub.f32 %v3893_v33, %v1083_v2 }
 0x488   :  { %1586 = vbcast.lane.b32.xlu1 %v1584_v29, 256  ;;  %v5959_v29 = vld [vmem:[#allocation29_spill] sm:$0xff] }
 0x48c   :  { %1593 = vbcast.lane.b32.xlu1 %v1591_v21, 256  ;;  %v219_v21 = vadd.f32 %v210_v6, %v5959_v29 }
 0x48e   :  { %v227_v11 = vsub.f32 %v3894_v13, %v219_v21  ;;  %v1633_v13 = vrot.slane %v292_v59, %v4684_v28 }
 0x490   :  { %1600 = vbcast.lane.b32.xlu1 %v1598_v25, 256  ;;  %v5960_v25 = vld [vmem:[#allocation49_spill] sm:$0xff]  ;;  %v291_v2 = vadd.f32 %v4835_v24, %v227_v11 }
 0x491   :  { %1474 = vbcast.lane.b32.xlu0 %v1472_v36, 256  ;;  %v1090_v18 = vadd.f32 %v992_v17, %v5960_v25  ;;  %v1465_v25 = vrot.slane %v5042_v14, %v4684_v28  ;;  %v5961_v14 = vld [vmem:[#allocation95_spill] sm:$0xff] }
 0x492   :  { %v1528_v21 = vrot.slane %v291_v2, %v4643_v56  ;;  %v1542_v33 = vrot.slane %v291_v2, %v4652_v10  ;;  %v1549_v24 = vrot.slane %v291_v2, %v4664_v41  ;;  %v1556_v11 = vrot.slane %v291_v2, %v4655_v38  ;;  %v5964_v10 = vld [vmem:[#allocation97_spill] sm:$0xff] }
 0x493   :  { %3764 = vlog2.f32 %v5961_v14  ;;  %v1577_v41 = vrot.slane %v291_v2, %v4684_v28  ;;  %v5968_v28 = vld [vmem:[#allocation100_spill] sm:$0xff] }
 0x494   :  { %1607 = vbcast.lane.b32.xlu1 %v1605_v62, 256  ;;  %v1619_v62 = vrot.slane %v292_v59, %v4676_v37 }
 0x495   :  { %1446 = vbcast.lane.b32.xlu0 %v1444_v32, 256 }
 0x497   :  { %v5090_v47 = vpop.xlane.xlu1 %904 }
 0x498   :  { %1614 = vbcast.lane.b32.xlu1 %v1612_v35, 256  ;;  %v3895_v35 = vld [vmem:[#allocation12 + $0xe8] sm:$0xff] }
 0x499   :  { %1453 = vbcast.lane.b32.xlu0 %v1451_v53, 256  ;;  %v1154_v6 = vsub.f32 %v3895_v35, %v1090_v18  ;;  %v1626_v53 = vrot.slane %v292_v59, %v4667_v55  ;;  %v1535_v18 = vrot.slane %v291_v2, %v4640_v0  ;;  %v1563_v59 = vrot.slane %v291_v2, %v4676_v37 }
 0x49a   :  { %v5096_v36 = vpop.xlane.xlu0 %925  ;;  %v1570_v0 = vrot.slane %v291_v2, %v4667_v55 }
 0x49b   :  { %v1349_v32 = vpop.permute.xlu1 %1348 }
 0x49c   :  { %v1659_v40 = vadd.f32 %v1349_v32, %v1147_v16  ;;  %1621 = vbcast.lane.b32.xlu1 %v1619_v62, 256  ;;  %v5962_v16 = vld [vmem:[#allocation96_spill] sm:$0xff]  ;;  %v5963_v62 = vld [vmem:[#allocation98_spill] sm:$0xff] }
 0x49d   :  { %1460 = vbcast.lane.b32.xlu0 %v1458_v30, 256  ;;  %3766 = vlog2.f32 %v5962_v16  ;;  %v5971_v16 = vld [vmem:[#allocation101_spill] sm:$0xff] }
 0x49e   :  { %1723 = vst.msk [vmem:[#allocation2 + $0xb0] sm:$0xff] %vm103_vm0, %v1659_v40  ;;  %v1398_v17 = vpop.permute.xlu0 %1397  ;;  %3768 = vlog2.f32 %v5963_v62  ;;  %v5965_v40 = vld [vmem:[#allocation24_spill] sm:$0xff] }
 0x49f   :  { %v1666_v29 = vadd.f32 %v1398_v17, %v1154_v6  ;;  %3770 = vlog2.f32 %v5964_v10  ;;  %v5966_v17 = vld [vmem:[#allocation23_spill] sm:$0xff] }
 0x4a0   :  { %1628 = vbcast.lane.b32.xlu1 %v1626_v53, 256  ;;  %3772 = vlog2.f32 %v4783_v12  ;;  %v3765_v38 = vpop.eup %3764  ;;  %v5967_v53 = vld [vmem:[#allocation43_spill] sm:$0xff]  ;;  %v5969_v12 = vld [vmem:[#allocation50_spill] sm:$0xff] }
 0x4a1   :  { %1730 = vst.msk [vmem:[#allocation2 + $0xe8] sm:$0xff] %vm103_vm0, %v1666_v29  ;;  %1467 = vbcast.lane.b32.xlu0 %v1465_v25, 256  ;;  %v980_v30 = vmul.f32 0.6931472, %v3765_v38  ;;  %3774 = vlog2.f32 %v5965_v40  ;;  %v3898_v40 = vld [vmem:[#allocation12 + $0xf8] sm:$0xff] }
 0x4a2   :  { %3776 = vlog2.f32 %v5966_v17 }
 0x4a3   :  { %v1084_v55 = vadd.f32 %v980_v30, %v5967_v53  ;;  %3778 = vlog2.f32 %v5968_v28 }
 0x4a4   :  { %1635 = vbcast.lane.b32.xlu1 %v1633_v13, 256  ;;  %v2060_v13 = vld [vmem:[#allocation2 + $0x40] sm:$0xff]  ;;  %3780 = vlog2.f32 %v5971_v16 }
 0x4a5   :  { %1530 = vbcast.lane.b32.xlu0 %v1528_v21, 256 }
 0x4a9   :  { %1537 = vbcast.lane.b32.xlu0 %v1535_v18, 256 }
 0x4aa   :  { %v3767_v32 = vpop.eup %3766 }
 0x4ab   :  { %v3769_v37 = vpop.eup %3768  ;;  %v994_v35 = vmul.f32 0.6931472, %v3767_v32 }
 0x4ac   :  { %v996_v6 = vmul.f32 0.6931472, %v3769_v37  ;;  %v3771_v29 = vpop.eup %3770 }
 0x4ad   :  { %1544 = vbcast.lane.b32.xlu0 %v1542_v33, 256  ;;  %v1091_v2 = vadd.f32 %v994_v35, %v5969_v12  ;;  %v998_v21 = vmul.f32 0.6931472, %v3771_v29  ;;  %v3896_v33 = vld [vmem:[#allocation12 + $0xb8] sm:$0xff]  ;;  %v5972_v35 = vld [vmem:[#allocation52_spill] sm:$0xff] }
 0x4af   :  { %v1093_v17 = vadd.f32 %v998_v21, %v5972_v35  ;;  %v4089_v35 = vmov 0.0  }
 0x4b0   :  { %3376 = vmatprep.subr.mxu0 %v4089_v35  ;;  %3395 = vmatprep.subr.mxu1 %v4089_v35 }
 0x4b1   :  { %1551 = vbcast.lane.b32.xlu0 %v1549_v24, 256  ;;  %v1148_v24 = vsub.f32 %v3896_v33, %v1084_v55  ;;  %v5973_v55 = vld [vmem:[#allocation102_spill] sm:$0xff]  ;;  %3392 = vmatprep.mubr.msk.f32.mxu0 %vm4091_vm1, %v4089_v35 }
 0x4b2   :  { %3782 = vlog2.f32 %v5973_v55  ;;  %v4090_v55 = vmov 1966171168   ;;  %3411 = vmatprep.mubr.msk.f32.mxu1 %vm4091_vm1, %v4089_v35 }
 0x4b3   :  { %3784 = vlog2.f32 %v4889_v4  ;;  %v3900_v4 = vld [vmem:[#allocation12 + $0x108] sm:$0xff] }
 0x4b4   :  { %3786 = vlog2.f32 %v4913_v20 }
 0x4b5   :  { %1558 = vbcast.lane.b32.xlu0 %v1556_v11, 256  ;;  %v5970_v11 = vld [vmem:[#allocation51_spill] sm:$0xff]  ;;  %3788 = vlog2.f32 %v4936_v60  ;;  %v3902_v60 = vld [vmem:[#allocation12 + $0x110] sm:$0xff] }
 0x4b6   :  { %v1092_v14 = vadd.f32 %v996_v6, %v5970_v11  ;;  %3790 = vlog2.f32 %v4953_v63 }
 0x4b7   :  { %3792 = vlog2.f32 %v4974_v44 }
 0x4b8   :  { %v1156_v37 = vsub.f32 %v3898_v40, %v1092_v14 }
 0x4b9   :  { %1565 = vbcast.lane.b32.xlu0 %v1563_v59, 256  ;;  %v3773_v59 = vpop.eup %3772 }
 0x4ba   :  { %v1000_v32 = vmul.f32 0.6931472, %v3773_v59  ;;  %v3775_v53 = vpop.eup %3774  ;;  %v2063_v59 = vld [vmem:[#allocation2 + $0x58] sm:$0xff] }
 0x4bb   :  { %v1016_v12 = vmul.f32 0.6931472, %v3775_v53  ;;  %v3777_v21 = vpop.eup %3776 }
 0x4bd   :  { %1572 = vbcast.lane.b32.xlu0 %v1570_v0, 256  ;;  %v2061_v0 = vld [vmem:[#allocation2 + $0x48] sm:$0xff] }
 0x4c1   :  { %1579 = vbcast.lane.b32.xlu0 %v1577_v41, 256  ;;  %v3897_v41 = vld [vmem:[#allocation12 + $0xf0] sm:$0xff] }
 0x4c2   :  { %v1155_v38 = vsub.f32 %v3897_v41, %v1091_v2  ;;  %v3899_v2 = vld [vmem:[#allocation12 + $0x100] sm:$0xff]  ;;  %v5975_v41 = vld [vmem:[#allocation58_spill] sm:$0xff] }
 0x4c3   :  { %v1157_v33 = vsub.f32 %v3899_v2, %v1093_v17  ;;  %v5976_v2 = vld [vmem:[#allocation54_spill] sm:$0xff] }
 0x4cc   :  { %v5124_v25 = vpop.xlane.xlu1 %907 }
 0x4cd   :  { %2222 = vxpose.xlu1.b32.start [1/8] (short) (narrow) %v2060_v13, 8  ;;  %v2062_v13 = vld [vmem:[#allocation2 + $0x50] sm:$0xff] }
 0x4cf   :  { %v5128_v18 = vpop.xlane.xlu0 %928 }
 0x4d0   :  { %v1356_v62 = vpop.permute.xlu1 %1355 }
 0x4d1   :  { %v1660_v10 = vadd.f32 %v1356_v62, %v1148_v24  ;;  %2223 = vxpose.xlu1.b32.cont [2/8] (short) (narrow) %v2061_v0, 8  ;;  %v5974_v24 = vld [vmem:[#allocation53_spill] sm:$0xff]  ;;  %v3779_v62 = vpop.eup %3778  ;;  %v1002_v0 = vmul.f32 0.6931472, %v3777_v21 }
 0x4d2   :  { %v1094_v11 = vadd.f32 %v1000_v32, %v5974_v24  ;;  %v1775_v32 = vld [vmem:[#allocation6] sm:$0xff]  ;;  %v3781_v53 = vpop.eup %3780 }
 0x4d3   :  { %1724 = vst.msk [vmem:[#allocation2 + $0xb8] sm:$0xff] %vm103_vm0, %v1660_v10  ;;  %v1405_v30 = vpop.permute.xlu0 %1404  ;;  %v1004_v21 = vmul.f32 0.6931472, %v3781_v53  ;;  %v2066_v53 = vld [vmem:[#allocation2 + $0x70] sm:$0xff] }
 0x4d4   :  { %v1667_v6 = vadd.f32 %v1405_v30, %v1155_v38  ;;  %v1412_v29 = vpop.permute.xlu1 %1411  ;;  %v1158_v10 = vsub.f32 %v3900_v4, %v1094_v11  ;;  %v1102_v38 = vadd.f32 %v1016_v12, %v5975_v41  ;;  %v1774_v30 = vld [vmem:[#allocation3] sm:$0xff]  ;;  %v2053_v41 = vld [vmem:[#allocation2 + $0x8] sm:$0xff] }
 0x4d5   :  { %v1668_v28 = vadd.f32 %v1412_v29, %v1156_v37  ;;  %2224 = vxpose.xlu1.b32.cont [3/8] (short) (narrow) %v2062_v13, 8  ;;  %v2064_v37 = vld [vmem:[#allocation2 + $0x60] sm:$0xff]  ;;  %v1777_v17 = vmul.u32 8, %v1774_v30  ;;  %v1018_v29 = vmul.f32 0.6931472, %v3779_v62  ;;  %v5977_v62 = vld [vmem:[#allocation66_spill] sm:$0xff] }
 0x4d6   :  { %1731 = vst.msk [vmem:[#allocation2 + $0xf0] sm:$0xff] %vm103_vm0, %v1667_v6  ;;  %v1781_v6 = vunpack.c.l.s4 %v4090_v55  ;;  %v2052_v13 = vld [vmem:[#allocation2] sm:$0xff] }
 0x4d7   :  { %1732 = vst.msk [vmem:[#allocation2 + $0xf8] sm:$0xff] %vm103_vm0, %v1668_v28  ;;  %v3901_v28 = vld [vmem:[#allocation12 + $0x148] sm:$0xff]  ;;  %v5146_v24 = vadd.s32 %v1777_v17, %v1775_v32 }
 0x4d8   :  { %v1419_v14 = vpop.permute.xlu1 %1418  ;;  %v1166_v12 = vsub.f32 %v3901_v28, %v1102_v38  ;;  %v1782_v11 = vunpack.c.0.s8 %v1781_v6 }
 0x4d9   :  { %v1669_v16 = vadd.f32 %v1419_v14, %v1157_v33  ;;  %2225 = vxpose.xlu1.b32.cont [4/8] (short) (narrow) %v2063_v59, 8  ;;  %v1095_v33 = vadd.f32 %v1002_v0, %v5976_v2  ;;  %v2065_v59 = vld [vmem:[#allocation2 + $0x68] sm:$0xff]  ;;  %v5978_v0 = vld [vmem:[#allocation59_spill] sm:$0xff]  ;;  %v2054_v2 = vld [vmem:[#allocation2 + $0x10] sm:$0xff] }
 0x4da   :  { %v1103_v38 = vadd.f32 %v1018_v29, %v5978_v0  ;;  %v5162_v29 = vadd.s32 56, %v5977_v62  ;;  %v3904_v0 = vld [vmem:[#allocation12 + $0x118] sm:$0xff] }
 0x4db   :  { %1733 = vst.msk [vmem:[#allocation2 + $0x100] sm:$0xff] %vm103_vm0, %v1669_v16  ;;  %v3783_v16 = vpop.eup %3782 }
 0x4dc   :  { %v1426_v40 = vpop.permute.xlu1 %1425  ;;  %v3785_v30 = vpop.eup %3784  ;;  %v1020_v32 = vmul.f32 0.6931472, %v3783_v16 }
 0x4dd   :  { %v1670_v20 = vadd.f32 %v1426_v40, %v1158_v10  ;;  %2226 = vxpose.xlu1.b32.cont [5/8] (short) (narrow) %v2064_v37, 8  ;;  %v5150_v10 = vsub.s32 %v1782_v11, %v5977_v62  ;;  %v1159_v40 = vsub.f32 %v3902_v60, %v1095_v33  ;;  %v3903_v33 = vld [vmem:[#allocation12 + $0x150] sm:$0xff] }
 0x4de   :  { %v1167_v11 = vsub.f32 %v3903_v33, %v1103_v38  ;;  %v5980_v38 = vld [vmem:[#allocation60_spill] sm:$0xff]  ;;  %v5210_v33 = vadd.s32 24, %v5977_v62 }
 0x4df   :  { %1734 = vst.msk [vmem:[#allocation2 + $0x108] sm:$0xff] %vm103_vm0, %v1670_v20  ;;  %2116 = vxpose.xlu0.b32.start [1/8] (short) (narrow) %v2052_v13, 8  ;;  %v1786_v37 = vrot.slane %v5146_v24, %v5150_v10  ;;  %v5979_v20 = vld [vmem:[#allocation55_spill] sm:$0xff]  ;;  %v1104_v60 = vadd.f32 %v1020_v32, %v5980_v38 }
 0x4e0   :  { %v1482_v14 = vpop.permute.xlu1 %1481  ;;  %v1096_v55 = vadd.f32 %v1004_v21, %v5979_v20  ;;  %v5981_v20 = vld [vmem:[#allocation61_spill] sm:$0xff] }
 0x4e1   :  { %v1678_v4 = vadd.f32 %v1482_v14, %v1166_v12  ;;  %2227 = vxpose.xlu1.b32.cont [6/8] (short) (narrow) %v2065_v59, 8  ;;  %v5165_v13 = vrot.slane %v1786_v37, %v5150_v10  ;;  %v1794_v28 = vcombine.high %v1786_v37, %v1786_v37  ;;  %v1022_v12 = vmul.f32 0.6931472, %v3785_v30  ;;  %v3787_v59 = vpop.eup %3786 }
 0x4e2   :  { %v5168_v14 = vadd.s32 48, %v5977_v62  ;;  %v1160_v30 = vsub.f32 %v3904_v0, %v1096_v55  ;;  %v4092_v55 = vmov 1.0   ;;  %v3906_v0 = vld [vmem:[#allocation12 + $0x160] sm:$0xff] }
 0x4e3   :  { %1742 = vst.msk [vmem:[#allocation2 + $0x148] sm:$0xff] %vm103_vm0, %v1678_v4  ;;  %2117 = vxpose.xlu0.b32.cont [2/8] (short) (narrow) %v2053_v41, 8  ;;  %v5174_v21 = vrot.slane %v5165_v13, %v4643_v56  ;;  %v1816_v16 = vrot.slane %v1794_v28, %v5150_v10  ;;  %v2067_v41 = vld [vmem:[#allocation2 + $0x78] sm:$0xff]  ;;  %v1824_v32 = vcombine.high %v5165_v13, %v5165_v13  ;;  %v5202_v13 = vadd.s32 32, %v5977_v62  ;;  %v5982_v28 = vld [vmem:[#allocation99_spill] sm:$0xff] }
 0x4e4   :  { %v1433_v17 = vpop.permute.xlu1 %1432  ;;  %3794 = vlog2.f32 %v5982_v28 }
 0x4e5   :  { %v1671_v6 = vadd.f32 %v1433_v17, %v1159_v40  ;;  %2228 = vxpose.xlu1.b32.cont [7/8] (short) (narrow) %v2066_v53, 8  ;;  %v5179_v40 = vadd.s32 40, %v5977_v62  ;;  %vm1867_vm2 = vcmp.eq.s32.totalorder %v5162_v29, %v5174_v21  ;;  %v5185_v37 = vrot.slane %v1816_v16, %v4643_v56  ;;  %v2055_v53 = vld [vmem:[#allocation2 + $0x18] sm:$0xff] }
 0x4e6   :  { %v1024_v17 = vmul.f32 0.6931472, %v3787_v59  ;;  %3377 = vmatpush3.msk.msra.mxu0 %vm1867_vm2, %v4092_v55  ;;  %vm1866_vm3 = vcmp.eq.s32.totalorder %v5168_v14, %v5174_v21  ;;  %v1826_v44 = vcombine.high %v1816_v16, %v1816_v16  ;;  %v3905_v59 = vld [vmem:[#allocation12 + $0x158] sm:$0xff]  ;;  %3796 = vlog2.f32 %v4885_v48 }
 0x4e7   :  { %1735 = vst.msk [vmem:[#allocation2 + $0x110] sm:$0xff] %vm103_vm0, %v1671_v6  ;;  %2118 = vxpose.xlu0.b32.cont [3/8] (short) (narrow) %v2054_v2, 8  ;;  %v5188_v6 = vadd.f32 %v1022_v12, %v5981_v20  ;;  %3378 = vmatprep.subr.mxu0 %v4089_v35  ;;  %vm1875_vm4 = vcmp.eq.s32.totalorder %v5162_v29, %v5185_v37  ;;  %v2076_v2 = vld [vmem:[#allocation2 + $0xc0] sm:$0xff]  ;;  %3798 = vlog2.f32 %v4992_v39  ;;  %v5248_v39 = vadd.s32 16, %v5977_v62 }
 0x4e8   :  { %v1489_v4 = vpop.permute.xlu1 %1488  ;;  %vm1874_vm5 = vcmp.eq.s32.totalorder %v5168_v14, %v5185_v37  ;;  %3396 = vmatpush3.msk.msra.mxu1 %vm1875_vm4, %v4092_v55  ;;  %3379 = vmatpush3.msk.msra.mxu0 %vm1866_vm3, %v4092_v55  ;;  %vm1865_vm6 = vcmp.eq.s32.totalorder %v5179_v40, %v5174_v21  ;;  %v1168_v16 = vsub.f32 %v3905_v59, %v1104_v60  ;;  %3800 = vlog2.f32 %v5010_v5  ;;  %v2058_v59 = vld [vmem:[#allocation2 + $0x30] sm:$0xff] }
 0x4e9   :  { %v1679_v63 = vadd.f32 %v1489_v4, %v1167_v11  ;;  %2229 = vxpose.xlu1.b32.end [8/8] (short) (narrow) %v2067_v41, 8  ;;  %3397 = vmatprep.subr.mxu1 %v4089_v35  ;;  %v3789_v4 = vpop.eup %3788  ;;  %v2056_v41 = vld [vmem:[#allocation2 + $0x20] sm:$0xff]  ;;  %v1169_v38 = vsub.f32 %v3906_v0, %v5188_v6  ;;  %vm1873_vm7 = vcmp.eq.s32.totalorder %v5179_v40, %v5185_v37  ;;  %v5273_v5 = vadd.s32 8, %v5977_v62 }
 0x4ea   :  { %3380 = vmatprep.subr.mxu0 %v4089_v35  ;;  %3398 = vmatpush3.msk.msra.mxu1 %vm1874_vm5, %v4092_v55  ;;  %vm1864_vm8 = vcmp.eq.s32.totalorder %v5202_v13, %v5174_v21  ;;  %v5234_v48 = vrot.slane %v1824_v32, %v4643_v56  ;;  %vm1872_vm9 = vcmp.eq.s32.totalorder %v5202_v13, %v5185_v37  ;;  %v1026_v20 = vmul.f32 0.6931472, %v3789_v4  ;;  %v2057_v32 = vld [vmem:[#allocation2 + $0x28] sm:$0xff] }
 0x4eb   :  { %1743 = vst.msk [vmem:[#allocation2 + $0x150] sm:$0xff] %vm103_vm0, %v1679_v63  ;;  %2119 = vxpose.xlu0.b32.cont [4/8] (short) (narrow) %v2055_v53, 8  ;;  %v5983_v63 = vld [vmem:[#allocation63_spill] sm:$0xff]  ;;  %3381 = vmatpush3.msk.msra.mxu0 %vm1865_vm6, %v4092_v55  ;;  %vm1863_vm10 = vcmp.eq.s32.totalorder %v5210_v33, %v5174_v21  ;;  %vm1871_vm11 = vcmp.eq.s32.totalorder %v5210_v33, %v5185_v37  ;;  %3802 = vlog2.f32 %v4909_v7  ;;  %vm2148_vm4 = vcmask 523264  }
 0x4ec   :  { %v1440_v12 = vpop.permute.xlu1 %1439  ;;  %v5216_v53 = vadd.f32 %v1024_v17, %v5983_v63  ;;  %v2077_v17 = vld [vmem:[#allocation2 + $0xc8] sm:$0xff]  ;;  %3399 = vmatprep.subr.mxu1 %v4089_v35  ;;  %3382 = vmatprep.subr.mxu0 %v4089_v35  ;;  %vm1883_vm12 = vcmp.eq.s32.totalorder %v5162_v29, %v5234_v48  ;;  %vm1882_vm14 = vcmp.eq.s32.totalorder %v5168_v14, %v5234_v48  ;;  %3804 = vlog2.f32 %v5028_v50 }
 0x4ed   :  { %v1672_v11 = vadd.f32 %v1440_v12, %v1160_v30  ;;  %2432 = vxpose.xlu1.b32.start [1/8] (short) (narrow) %v2076_v2, 8  ;;  %v5237_v30 = vrot.slane %v1826_v44, %v4643_v56  ;;  %3400 = vmatpush3.msk.msra.mxu1 %vm1873_vm7, %v4092_v55  ;;  %vm1881_vm2 = vcmp.eq.s32.totalorder %v5179_v40, %v5234_v48  ;;  %v3791_v44 = vpop.eup %3790  ;;  %v2078_v12 = vld [vmem:[#allocation2 + $0xd0] sm:$0xff]  ;;  %3806 = vlog2.f32 %v4932_v58 }
 0x4ee   :  { %3383 = vmatpush3.msk.msra.mxu0 %vm1864_vm8, %v4092_v55  ;;  %3401 = vmatprep.subr.mxu1 %v4089_v35  ;;  %vm1862_vm6 = vcmp.eq.s32.totalorder %v5248_v39, %v5174_v21  ;;  %v1107_v7 = vadd.f32 %v1026_v20, %v4610_v51  ;;  %v1779_v63 = vcombine.high %v5146_v24, %v5146_v24  ;;  %v2059_v24 = vld [vmem:[#allocation2 + $0x38] sm:$0xff]  ;;  %3808 = vlog2.f32 %v5060_v34 }
 0x4ef   :  { %1736 = vst.msk [vmem:[#allocation2 + $0x118] sm:$0xff] %vm103_vm0, %v1672_v11  ;;  %2120 = vxpose.xlu0.b32.cont [5/8] (short) (narrow) %v2056_v41, 8  ;;  %vm1891_vm13 = vcmp.eq.s32.totalorder %v5162_v29, %v5237_v30  ;;  %vm1890_vm15 = vcmp.eq.s32.totalorder %v5168_v14, %v5237_v30  ;;  %3384 = vmatprep.subr.mxu0 %v4089_v35  ;;  %v3793_v11 = vpop.eup %3792  ;;  %v1028_v41 = vmul.f32 0.6931472, %v3791_v44  ;;  %3810 = vlog2.f32 %v4949_v9 }
 0x4f0   :  { %v1496_v60 = vpop.permute.xlu1 %1495  ;;  %vm1889_vm3 = vcmp.eq.s32.totalorder %v5179_v40, %v5237_v30  ;;  %vm1888_vm5 = vcmp.eq.s32.totalorder %v5202_v13, %v5237_v30  ;;  %3402 = vmatpush3.msk.msra.mxu1 %vm1872_vm9, %v4092_v55  ;;  %3385 = vmatpush3.msk.msra.mxu0 %vm1863_vm10, %v4092_v55  ;;  %vm1887_vm8 = vcmp.eq.s32.totalorder %v5210_v33, %v5237_v30  ;;  %3812 = vlog2.f32 %v5096_v36 }
 0x4f1   :  { %v1680_v6 = vadd.f32 %v1496_v60, %v1168_v16  ;;  %2433 = vxpose.xlu1.b32.cont [2/8] (short) (narrow) %v2077_v17, 8  ;;  %3403 = vmatprep.subr.mxu1 %v4089_v35  ;;  %v3907_v16 = vld [vmem:[#allocation12 + $0x168] sm:$0xff]  ;;  %vm1870_vm9 = vcmp.eq.s32.totalorder %v5248_v39, %v5185_v37  ;;  %vm1861_vm10 = vcmp.eq.s32.totalorder %v5273_v5, %v5174_v21  ;;  %v3795_v50 = vpop.eup %3794  ;;  %v3908_v17 = vld [vmem:[#allocation12 + $0x170] sm:$0xff]  ;;  %3814 = vlog2.f32 %v4956_v1 }
 0x4f2   :  { %v1170_v4 = vsub.f32 %v3907_v16, %v5216_v53  ;;  %3386 = vmatprep.subr.mxu0 %v4089_v35  ;;  %3404 = vmatpush3.msk.msra.mxu1 %vm1871_vm11, %v4092_v55  ;;  %v1046_v53 = vmul.f32 0.6931472, %v3793_v11  ;;  %vm1869_vm11 = vcmp.eq.s32.totalorder %v5273_v5, %v5185_v37  ;;  %v1171_v20 = vsub.f32 %v3908_v17, %v1107_v7 }
 0x4f3   :  { %1744 = vst.msk [vmem:[#allocation2 + $0x158] sm:$0xff] %vm103_vm0, %v1680_v6  ;;  %2121 = vxpose.xlu0.b32.cont [6/8] (short) (narrow) %v2057_v32, 8  ;;  %3387 = vmatpush3.msk.msra.mxu0 %vm1862_vm6, %v4092_v55  ;;  %vm1860_vm6 = vcmp.eq.s32.totalorder %v5977_v62, %v5174_v21  ;;  %v3797_v60 = vpop.eup %3796  ;;  %v1108_v6 = vadd.f32 %v1028_v41, %v4614_v3  ;;  %v1014_v32 = vmul.f32 0.6931472, %v3795_v50  ;;  %v5984_v41 = vld [vmem:[#allocation57_spill] sm:$0xff]  ;;  %v3910_v50 = vld [vmem:[#allocation12 + $0x1c0] sm:$0xff]  ;;  %3816 = vlog2.f32 %v5128_v18 }
 0x4f4   :  { %v1503_v28 = vpop.permute.xlu1 %1502  ;;  %3405 = vmatprep.subr.mxu1 %v4089_v35  ;;  %3388 = vmatprep.subr.mxu0 %v4089_v35  ;;  %v3799_v58 = vpop.eup %3798  ;;  %v1793_v3 = vrot.slane %v1779_v63, %v5150_v10  ;;  %v1006_v63 = vmul.f32 0.6931472, %v3797_v60  ;;  %v3911_v18 = vld [vmem:[#allocation12 + $0x140] sm:$0xff]  ;;  %3818 = vlog2.f32 %v4971_v46  ;;  %v2083_v46 = vld [vmem:[#allocation2 + $0xf8] sm:$0xff] }
 0x4f5   :  { %v1681_v2 = vadd.f32 %v1503_v28, %v1169_v38  ;;  %2434 = vxpose.xlu1.b32.cont [3/8] (short) (narrow) %v2078_v12, 8  ;;  %v2079_v38 = vld [vmem:[#allocation2 + $0xd8] sm:$0xff]  ;;  %3406 = vmatpush3.msk.msra.mxu1 %vm1870_vm9, %v4092_v55  ;;  %vm1868_vm9 = vcmp.eq.s32.totalorder %v5977_v62, %v5185_v37  ;;  %v2080_v28 = vld [vmem:[#allocation2 + $0xe0] sm:$0xff]  ;;  %v1117_v12 = vadd.f32 %v1046_v53, %v4618_v27  ;;  %v3801_v11 = vpop.eup %3800 }
 0x4f6   :  { %3389 = vmatpush3.msk.msra.mxu0 %vm1861_vm10, %v4092_v55  ;;  %3407 = vmatprep.subr.mxu1 %v4089_v35  ;;  %v5350_v37 = vrot.slane %v1793_v3, %v5150_v10  ;;  %v1795_v21 = vcombine.high %v1793_v3, %v1793_v3  ;;  %v3909_v27 = vld [vmem:[#allocation12 + $0x178] sm:$0xff]  ;;  %v1101_v7 = vadd.f32 %v1014_v32, %v5984_v41  ;;  %v1050_v1 = vmul.f32 0.6931472, %v3801_v11  ;;  %v2082_v32 = vld [vmem:[#allocation2 + $0xf0] sm:$0xff]  ;;  %v3912_v11 = vld [vmem:[#allocation12 + $0x1c8] sm:$0xff] }
 0x4f7   :  { %1745 = vst.msk [vmem:[#allocation2 + $0x160] sm:$0xff] %vm103_vm0, %v1681_v2  ;;  %2122 = vxpose.xlu0.b32.cont [7/8] (short) (narrow) %v2058_v59, 8  ;;  %3390 = vmatprep.subr.mxu0 %v4089_v35  ;;  %v2068_v2 = vld [vmem:[#allocation2 + $0x80] sm:$0xff]  ;;  %v1048_v59 = vmul.f32 0.6931472, %v3799_v58  ;;  %v1172_v16 = vsub.f32 %v3909_v27, %v1108_v6  ;;  %v1181_v53 = vsub.f32 %v3910_v50, %v1117_v12  ;;  %v2070_v3 = vld [vmem:[#allocation2 + $0x90] sm:$0xff] }
 0x4f8   :  { %v1510_v0 = vpop.permute.xlu1 %1509  ;;  %3408 = vmatpush3.msk.msra.mxu1 %vm1869_vm11, %v4092_v55  ;;  %3391 = vmatpush3.msk.msra.mxu0 %vm1860_vm6, %v4092_v55  ;;  %v3803_v60 = vpop.eup %3802  ;;  %v1119_v27 = vadd.f32 %v1050_v1, %v5918_v8  ;;  %v3913_v50 = vld [vmem:[#allocation12 + $0x120] sm:$0xff]  ;;  %v3914_v8 = vld [vmem:[#allocation12 + $0x1d0] sm:$0xff] }
 0x4f9   :  { %v1682_v51 = vadd.f32 %v1510_v0, %v1170_v4  ;;  %2435 = vxpose.xlu1.b32.cont [4/8] (short) (narrow) %v2079_v38, 8  ;;  %3409 = vmatprep.subr.mxu1 %v4089_v35  ;;  %v2081_v4 = vld [vmem:[#allocation2 + $0xe8] sm:$0xff]  ;;  %v5358_v0 = vrot.slane %v5350_v37, %v4643_v56  ;;  %v5361_v38 = vrot.slane %v1795_v21, %v5150_v10 }
 0x4fa   :  { %3410 = vmatpush3.msk.msra.mxu1 %vm1868_vm9, %v4092_v55  ;;  %3414 = vmatprep.subr.mxu0 %v4089_v35  ;;  %v1118_v17 = vadd.f32 %v1048_v59, %v5913_v52  ;;  %v1183_v1 = vsub.f32 %v3914_v8, %v1119_v27 }
 0x4fb   :  { %1746 = vst.msk [vmem:[#allocation2 + $0x168] sm:$0xff] %vm103_vm0, %v1682_v51  ;;  %2123 = vxpose.xlu0.b32.end [8/8] (short) (narrow) %v2059_v24, 8  ;;  %3433 = vmatprep.subr.mxu1 %v4089_v35  ;;  %v2069_v51 = vld [vmem:[#allocation2 + $0x88] sm:$0xff]  ;;  %v5368_v24 = vrot.slane %v5361_v38, %v4643_v56 }
 0x4fc   :  { %v1517_v44 = vpop.permute.xlu1 %1516  ;;  %v1182_v59 = vsub.f32 %v3912_v11, %v1118_v17 }
 0x4fd   :  { %v1683_v34 = vadd.f32 %v1517_v44, %v1171_v20  ;;  %2436 = vxpose.xlu1.b32.cont [5/8] (short) (narrow) %v2080_v28, 8  ;;  %v3805_v20 = vpop.eup %3804  ;;  %v1165_v44 = vsub.f32 %v3911_v18, %v1101_v7  ;;  %v1008_v28 = vmul.f32 0.6931472, %v3803_v60 }
 0x4fe   :  { %v1052_v21 = vmul.f32 0.6931472, %v3805_v20 }
 0x4ff   :  { %1747 = vst.msk [vmem:[#allocation2 + $0x170] sm:$0xff] %vm103_vm0, %v1683_v34  ;;  %2327 = vxpose.xlu0.b32.start [1/8] (short) (narrow) %v2068_v2, 8  ;;  %v5985_v34 = vld [vmem:[#allocation56_spill] sm:$0xff]  ;;  %v3807_v2 = vpop.eup %3806 }
 0x500   :  { %v1524_v9 = vpop.permute.xlu1 %1523  ;;  %v1097_v12 = vadd.f32 %v1006_v63, %v5985_v34  ;;  %v1010_v63 = vmul.f32 0.6931472, %v3807_v2  ;;  %v1120_v17 = vadd.f32 %v1052_v21, %v5924_v57  ;;  %v2072_v34 = vld [vmem:[#allocation2 + $0xa0] sm:$0xff]  ;;  %v3916_v57 = vld [vmem:[#allocation12 + $0x1d8] sm:$0xff] }
 0x501   :  { %v1684_v36 = vadd.f32 %v1524_v9, %v1172_v16  ;;  %2437 = vxpose.xlu1.b32.cont [6/8] (short) (narrow) %v2081_v4, 8  ;;  %v3809_v16 = vpop.eup %3808 }
 0x502   :  { %v3811_v20 = vpop.eup %3810  ;;  %v1099_v2 = vadd.f32 %v1010_v63, %v4608_v49  ;;  %v1184_v21 = vsub.f32 %v3916_v57, %v1120_v17  ;;  %v3917_v63 = vld [vmem:[#allocation12 + $0x130] sm:$0xff]  ;;  %v2075_v57 = vld [vmem:[#allocation2 + $0xb8] sm:$0xff] }
 0x503   :  { %1748 = vst.msk [vmem:[#allocation2 + $0x178] sm:$0xff] %vm103_vm0, %v1684_v36  ;;  %2328 = vxpose.xlu0.b32.cont [2/8] (short) (narrow) %v2069_v51, 8  ;;  %v2071_v36 = vld [vmem:[#allocation2 + $0x98] sm:$0xff] }
 0x504   :  { %v1587_v6 = vpop.permute.xlu1 %1586  ;;  %v932_v58 = vpop.xlane.xlu0 %931  ;;  %v5986_v51 = vld [vmem:[#allocation62_spill] sm:$0xff] }
 0x505   :  { %v1693_v52 = vadd.f32 %v1587_v6, %v1181_v53  ;;  %2438 = vxpose.xlu1.b32.cont [7/8] (short) (narrow) %v2082_v32, 8  ;;  %3820 = vlog2.f32 %v932_v58  ;;  %v1161_v53 = vsub.f32 %v3913_v50, %v1097_v12  ;;  %v1098_v60 = vadd.f32 %v1008_v28, %v5986_v51  ;;  %v3813_v58 = vpop.eup %3812  ;;  %v3915_v12 = vld [vmem:[#allocation12 + $0x128] sm:$0xff] }
 0x506   :  { %3822 = vlog2.f32 %v4989_v54  ;;  %v1054_v6 = vmul.f32 0.6931472, %v3809_v16  ;;  %v1012_v28 = vmul.f32 0.6931472, %v3811_v20  ;;  %v1056_v11 = vmul.f32 0.6931472, %v3813_v58 }
 0x507   :  { %1757 = vst.msk [vmem:[#allocation2 + $0x1c0] sm:$0xff] %vm103_vm0, %v1693_v52  ;;  %2329 = vxpose.xlu0.b32.cont [3/8] (short) (narrow) %v2070_v3, 8  ;;  %v3815_v3 = vpop.eup %3814  ;;  %v1162_v54 = vsub.f32 %v3915_v12, %v1098_v60  ;;  %3824 = vlog2.f32 %v5007_v31  ;;  %v1163_v31 = vsub.f32 %v3917_v63, %v1099_v2  ;;  %v2074_v58 = vld [vmem:[#allocation2 + $0xb0] sm:$0xff]  ;;  %v2084_v63 = vld [vmem:[#allocation2 + $0x100] sm:$0xff] }
 0x508   :  { %v1594_v9 = vpop.permute.xlu1 %1593  ;;  %v1475_v4 = vpop.permute.xlu0 %1474  ;;  %3826 = vlog2.f32 %v5025_v42  ;;  %v1122_v60 = vadd.f32 %v1056_v11, %v5936_v15  ;;  %v3919_v42 = vld [vmem:[#allocation12 + $0x138] sm:$0xff]  ;;  %v3920_v15 = vld [vmem:[#allocation12 + $0x1e8] sm:$0xff] }
 0x509   :  { %v1694_v41 = vadd.f32 %v1594_v9, %v1182_v59  ;;  %v1677_v7 = vadd.f32 %v1475_v4, %v1165_v44  ;;  %2439 = vxpose.xlu1.b32.end [8/8] (short) (narrow) %v2083_v46, 8  ;;  %v1121_v59 = vadd.f32 %v1054_v6, %v5930_v22  ;;  %v3817_v27 = vpop.eup %3816  ;;  %v3918_v22 = vld [vmem:[#allocation12 + $0x1e0] sm:$0xff]  ;;  %3828 = vlog2.f32 %v5056_v19 }
 0x50a   :  { %v3819_v50 = vpop.eup %3818  ;;  %3830 = vlog2.f32 %v5090_v47 }
 0x50b   :  { %1758 = vst.msk [vmem:[#allocation2 + $0x1c8] sm:$0xff] %vm103_vm0, %v1694_v41  ;;  %1741 = vst.msk [vmem:[#allocation2 + $0x140] sm:$0xff] %vm103_vm0, %v1677_v7  ;;  %2330 = vxpose.xlu0.b32.cont [4/8] (short) (narrow) %v2071_v36, 8  ;;  %v1030_v41 = vmul.f32 0.6931472, %v3815_v3  ;;  %v2073_v7 = vld [vmem:[#allocation2 + $0xa8] sm:$0xff]  ;;  %v1100_v36 = vadd.f32 %v1012_v28, %v4612_v45  ;;  %v1185_v51 = vsub.f32 %v3918_v22, %v1121_v59  ;;  %3832 = vlog2.f32 %v5124_v25 }
 0x50c   :  { %v1601_v32 = vpop.permute.xlu1 %1600  ;;  %v1447_v52 = vpop.permute.xlu0 %1446  ;;  %v1032_v45 = vmul.f32 0.6931472, %v3819_v50  ;;  %v1186_v3 = vsub.f32 %v3920_v15, %v1122_v60 }
 0x50d   :  { %v1695_v18 = vadd.f32 %v1601_v32, %v1183_v1  ;;  %v1673_v44 = vadd.f32 %v1447_v52, %v1161_v53  ;;  %v1058_v53 = vmul.f32 0.6931472, %v3817_v27  ;;  %v2093_v32 = vld [vmem:[#allocation2 + $0x148] sm:$0xff]  ;;  %v1164_v52 = vsub.f32 %v3919_v42, %v1100_v36 }
 0x50e   :  { %v1110_v59 = vadd.f32 %v1032_v45, %v4647_v61  ;;  %v1825_v61 = vcombine.high %v5350_v37, %v5350_v37  ;;  %v3923_v36 = vld [vmem:[#allocation12 + $0x188] sm:$0xff]  ;;  %v3924_v37 = vld [vmem:[#allocation12 + $0x1f8] sm:$0xff]  ;;  %v2096_v45 = vld [vmem:[#allocation2 + $0x160] sm:$0xff] }
 0x50f   :  { %1759 = vst.msk [vmem:[#allocation2 + $0x1d0] sm:$0xff] %vm103_vm0, %v1695_v18  ;;  %1737 = vst.msk [vmem:[#allocation2 + $0x120] sm:$0xff] %vm103_vm0, %v1673_v44  ;;  %2331 = vxpose.xlu0.b32.cont [5/8] (short) (narrow) %v2072_v34, 8  ;;  %v1109_v18 = vadd.f32 %v1030_v41, %v4616_v26  ;;  %v1123_v28 = vadd.f32 %v1058_v53, %v5942_v43  ;;  %v2094_v26 = vld [vmem:[#allocation2 + $0x150] sm:$0xff] }
 0x510   :  { %v1608_v16 = vpop.permute.xlu1 %1607  ;;  %v1454_v9 = vpop.permute.xlu0 %1453  ;;  %v3922_v43 = vld [vmem:[#allocation12 + $0x1f0] sm:$0xff]  ;;  %v1174_v50 = vsub.f32 %v3923_v36, %v1110_v59  ;;  %v2087_v59 = vld [vmem:[#allocation2 + $0x118] sm:$0xff] }
 0x511   :  { %v1696_v4 = vadd.f32 %v1608_v16, %v1184_v21  ;;  %v1674_v46 = vadd.f32 %v1454_v9, %v1162_v54  ;;  %v3921_v21 = vld [vmem:[#allocation12 + $0x180] sm:$0xff]  ;;  %v1187_v16 = vsub.f32 %v3922_v43, %v1123_v28  ;;  %v2086_v28 = vld [vmem:[#allocation2 + $0x110] sm:$0xff] }
 0x512   :  { %v2092_v49 = vld [vmem:[#allocation2 + $0x140] sm:$0xff]  ;;  %v3821_v20 = vpop.eup %3820  ;;  %v1173_v19 = vsub.f32 %v3921_v21, %v1109_v18 }
 0x513   :  { %1760 = vst.msk [vmem:[#allocation2 + $0x1d8] sm:$0xff] %vm103_vm0, %v1696_v4  ;;  %1738 = vst.msk [vmem:[#allocation2 + $0x128] sm:$0xff] %vm103_vm0, %v1674_v46  ;;  %2332 = vxpose.xlu0.b32.cont [6/8] (short) (narrow) %v2073_v7, 8  ;;  %2642 = vxpose.xlu1.b32.start [1/8] (short) (narrow) %v2092_v49, 8  ;;  %v1060_v44 = vmul.f32 0.6931472, %v3821_v20  ;;  %v3823_v34 = vpop.eup %3822  ;;  %v1827_v7 = vcombine.high %v5361_v38, %v5361_v38 }
 0x514   :  { %v1615_v6 = vpop.permute.xlu1 %1614  ;;  %v1461_v8 = vpop.permute.xlu0 %1460  ;;  %v1034_v27 = vmul.f32 0.6931472, %v3823_v34  ;;  %v2097_v34 = vld [vmem:[#allocation2 + $0x168] sm:$0xff] }
 0x515   :  { %v1697_v1 = vadd.f32 %v1615_v6, %v1185_v51  ;;  %v1675_v17 = vadd.f32 %v1461_v8, %v1163_v31  ;;  %v1124_v9 = vadd.f32 %v1060_v44, %v5951_v23  ;;  %v3825_v4 = vpop.eup %3824  ;;  %v2095_v31 = vld [vmem:[#allocation2 + $0x158] sm:$0xff]  ;;  %v5425_v53 = vrot.slane %v1827_v7, %v4643_v56  ;;  %v5987_v51 = vld [vmem:[#allocation71_spill] sm:$0xff] }
 0x516   :  { %v5428_v23 = vrot.slane %v1825_v61, %v4643_v56  ;;  %v1036_v22 = vmul.f32 0.6931472, %v3825_v4  ;;  %v1111_v60 = vadd.f32 %v1034_v27, %v5987_v51  ;;  %v3827_v20 = vpop.eup %3826  ;;  %v2098_v27 = vld [vmem:[#allocation2 + $0x170] sm:$0xff]  ;;  %v2108_v51 = vld [vmem:[#allocation2 + $0x1c0] sm:$0xff] }
 0x517   :  { %1761 = vst.msk [vmem:[#allocation2 + $0x1e0] sm:$0xff] %vm103_vm0, %v1697_v1  ;;  %1739 = vst.msk [vmem:[#allocation2 + $0x130] sm:$0xff] %vm103_vm0, %v1675_v17  ;;  %2333 = vxpose.xlu0.b32.cont [7/8] (short) (narrow) %v2074_v58, 8  ;;  %2643 = vxpose.xlu1.b32.cont [2/8] (short) (narrow) %v2093_v32, 8  ;;  %v1188_v38 = vsub.f32 %v3924_v37, %v1124_v9  ;;  %vm1920_vm11 = vcmp.eq.s32.totalorder %v5202_v13, %v5425_v53  ;;  %v2085_v17 = vld [vmem:[#allocation2 + $0x108] sm:$0xff]  ;;  %v3925_v32 = vld [vmem:[#allocation12 + $0x190] sm:$0xff]  ;;  %v3829_v44 = vpop.eup %3828 }
 0x518   :  { %v1622_v12 = vpop.permute.xlu1 %1621  ;;  %v1468_v54 = vpop.permute.xlu0 %1467  ;;  %vm1915_vm10 = vcmp.eq.s32.totalorder %v5162_v29, %v5428_v23  ;;  %vm1919_vm9 = vcmp.eq.s32.totalorder %v5210_v33, %v5425_v53  ;;  %vm1913_vm6 = vcmp.eq.s32.totalorder %v5179_v40, %v5428_v23  ;;  %vm1912_vm7 = vcmp.eq.s32.totalorder %v5202_v13, %v5428_v23  ;;  %v5990_v4 = vld [vmem:[#allocation77_spill] sm:$0xff] }
 0x519   :  { %v1698_v2 = vadd.f32 %v1622_v12, %v1186_v3  ;;  %v1676_v11 = vadd.f32 %v1468_v54, %v1164_v52  ;;  %v1038_v58 = vmul.f32 0.6931472, %v3827_v20  ;;  %v1175_v42 = vsub.f32 %v3925_v32, %v1111_v60  ;;  %v5988_v52 = vld [vmem:[#allocation73_spill] sm:$0xff]  ;;  %v3926_v54 = vld [vmem:[#allocation12 + $0x198] sm:$0xff] }
 0x51a   :  { %v1112_v18 = vadd.f32 %v1036_v22, %v5988_v52  ;;  %v1040_v12 = vmul.f32 0.6931472, %v3829_v44  ;;  %v2089_v60 = vld [vmem:[#allocation2 + $0x128] sm:$0xff]  ;;  %v3929_v20 = vld [vmem:[#allocation12 + $0x1b0] sm:$0xff]  ;;  %v3930_v32 = vld [vmem:[#allocation12 + $0x1b8] sm:$0xff] }
 0x51b   :  { %1762 = vst.msk [vmem:[#allocation2 + $0x1e8] sm:$0xff] %vm103_vm0, %v1698_v2  ;;  %1740 = vst.msk [vmem:[#allocation2 + $0x138] sm:$0xff] %vm103_vm0, %v1676_v11  ;;  %2334 = vxpose.xlu0.b32.end [8/8] (short) (narrow) %v2075_v57, 8  ;;  %2644 = vxpose.xlu1.b32.cont [3/8] (short) (narrow) %v2094_v26, 8  ;;  %v5989_v11 = vld [vmem:[#allocation75_spill] sm:$0xff]  ;;  %v3831_v26 = vpop.eup %3830  ;;  %v2110_v44 = vld [vmem:[#allocation2 + $0x1d0] sm:$0xff] }
 0x51c   :  { %v1629_v46 = vpop.permute.xlu1 %1628  ;;  %v1531_v41 = vpop.permute.xlu0 %1530  ;;  %v1176_v2 = vsub.f32 %v3926_v54, %v1112_v18  ;;  %v1113_v57 = vadd.f32 %v1038_v58, %v5989_v11  ;;  %v1042_v43 = vmul.f32 0.6931472, %v3831_v26 }
 0x51d   :  { %v1699_v47 = vadd.f32 %v1629_v46, %v1187_v16  ;;  %v1685_v49 = vadd.f32 %v1531_v41, %v1173_v19  ;;  %v3927_v16 = vld [vmem:[#allocation12 + $0x1a0] sm:$0xff]  ;;  %v1114_v46 = vadd.f32 %v1040_v12, %v5990_v4  ;;  %v3833_v41 = vpop.eup %3832 }
 0x51e   :  { %v1177_v9 = vsub.f32 %v3927_v16, %v1113_v57  ;;  %v2090_v58 = vld [vmem:[#allocation2 + $0x130] sm:$0xff] }
 0x51f   :  { %1763 = vst.msk [vmem:[#allocation2 + $0x1f0] sm:$0xff] %vm103_vm0, %v1699_v47  ;;  %1749 = vst.msk [vmem:[#allocation2 + $0x180] sm:$0xff] %vm103_vm0, %v1685_v49  ;;  %2537 = vxpose.xlu0.b32.start [1/8] (short) (narrow) %v2084_v63, 8  ;;  %2645 = vxpose.xlu1.b32.cont [4/8] (short) (narrow) %v2095_v31, 8  ;;  %v2099_v47 = vld [vmem:[#allocation2 + $0x178] sm:$0xff]  ;;  %v2088_v49 = vld [vmem:[#allocation2 + $0x120] sm:$0xff] }
 0x520   :  { %v1636_v6 = vpop.permute.xlu1 %1635  ;;  %v1538_v8 = vpop.permute.xlu0 %1537  ;;  %v1044_v63 = vmul.f32 0.6931472, %v3833_v41  ;;  %v3928_v31 = vld [vmem:[#allocation12 + $0x1a8] sm:$0xff] }
 0x521   :  { %v1700_v25 = vadd.f32 %v1636_v6, %v1188_v38  ;;  %v1686_v1 = vadd.f32 %v1538_v8, %v1174_v50  ;;  %v1178_v36 = vsub.f32 %v3928_v31, %v1114_v46  ;;  %v5991_v50 = vld [vmem:[#allocation79_spill] sm:$0xff]  ;;  %v5992_v8 = vld [vmem:[#allocation80_spill] sm:$0xff] }
 0x522   :  { %v1115_v22 = vadd.f32 %v1042_v43, %v5991_v50  ;;  %v2113_v54 = vld [vmem:[#allocation2 + $0x1e8] sm:$0xff] }
 0x523   :  { %1764 = vst.msk [vmem:[#allocation2 + $0x1f8] sm:$0xff] %vm103_vm0, %v1700_v25  ;;  %1750 = vst.msk [vmem:[#allocation2 + $0x188] sm:$0xff] %vm103_vm0, %v1686_v1  ;;  %2538 = vxpose.xlu0.b32.cont [2/8] (short) (narrow) %v2085_v17, 8  ;;  %2646 = vxpose.xlu1.b32.cont [5/8] (short) (narrow) %v2096_v45, 8  ;;  %v1116_v25 = vadd.f32 %v1044_v63, %v5992_v8  ;;  %v2109_v45 = vld [vmem:[#allocation2 + $0x1c8] sm:$0xff] }
 0x524   :  { %v1545_v15 = vpop.permute.xlu0 %1544  ;;  %v1179_v6 = vsub.f32 %v3929_v20, %v1115_v22 }
 0x525   :  { %v1687_v3 = vadd.f32 %v1545_v15, %v1175_v42  ;;  %v1180_v42 = vsub.f32 %v3930_v32, %v1116_v25  ;;  %v2091_v15 = vld [vmem:[#allocation2 + $0x138] sm:$0xff] }
 0x526   :  { %v2114_v57 = vld [vmem:[#allocation2 + $0x1f0] sm:$0xff] }
 0x527   :  { %1751 = vst.msk [vmem:[#allocation2 + $0x190] sm:$0xff] %vm103_vm0, %v1687_v3  ;;  %2539 = vxpose.xlu0.b32.cont [3/8] (short) (narrow) %v2086_v28, 8  ;;  %2647 = vxpose.xlu1.b32.cont [6/8] (short) (narrow) %v2097_v34, 8  ;;  %v2111_v3 = vld [vmem:[#allocation2 + $0x1d8] sm:$0xff]  ;;  %v2100_v28 = vld [vmem:[#allocation2 + $0x180] sm:$0xff] }
 0x528   :  { %v1552_v21 = vpop.permute.xlu0 %1551  ;;  %v2112_v34 = vld [vmem:[#allocation2 + $0x1e0] sm:$0xff] }
 0x529   :  { %v1688_v19 = vadd.f32 %v1552_v21, %v1176_v2 }
 0x52a   :  { %v2101_v12 = vld [vmem:[#allocation2 + $0x188] sm:$0xff]  ;;  %v2115_v21 = vld [vmem:[#allocation2 + $0x1f8] sm:$0xff] }
 0x52b   :  { %1752 = vst.msk [vmem:[#allocation2 + $0x198] sm:$0xff] %vm103_vm0, %v1688_v19  ;;  %2540 = vxpose.xlu0.b32.cont [4/8] (short) (narrow) %v2087_v59, 8  ;;  %2648 = vxpose.xlu1.b32.cont [7/8] (short) (narrow) %v2098_v27, 8 }
 0x52c   :  { %v1559_v7 = vpop.permute.xlu0 %1558 }
 0x52d   :  { %v1689_v61 = vadd.f32 %v1559_v7, %v1177_v9 }
 0x52e   :  { %v2102_v2 = vld [vmem:[#allocation2 + $0x190] sm:$0xff] }
 0x52f   :  { %1753 = vst.msk [vmem:[#allocation2 + $0x1a0] sm:$0xff] %vm103_vm0, %v1689_v61  ;;  %2649 = vxpose.xlu1.b32.end [8/8] (short) (narrow) %v2099_v47, 8  ;;  %2541 = vxpose.xlu0.b32.cont [5/8] (short) (narrow) %v2088_v49, 8 }
 0x530   :  { %v1566_v37 = vpop.permute.xlu0 %1565 }
 0x531   :  { %v1690_v38 = vadd.f32 %v1566_v37, %v1178_v36 }
 0x532   :  { %v2103_v26 = vld [vmem:[#allocation2 + $0x198] sm:$0xff] }
 0x533   :  { %1754 = vst.msk [vmem:[#allocation2 + $0x1a8] sm:$0xff] %vm103_vm0, %v1690_v38  ;;  %2852 = vxpose.xlu1.b32.start [1/8] (short) (narrow) %v2108_v51, 8  ;;  %2542 = vxpose.xlu0.b32.cont [6/8] (short) (narrow) %v2089_v60, 8 }
 0x534   :  { %v1573_v1 = vpop.permute.xlu0 %1572 }
 0x535   :  { %v1691_v17 = vadd.f32 %v1573_v1, %v1179_v6 }
 0x536   :  { %v2104_v19 = vld [vmem:[#allocation2 + $0x1a0] sm:$0xff] }
 0x537   :  { %1755 = vst.msk [vmem:[#allocation2 + $0x1b0] sm:$0xff] %vm103_vm0, %v1691_v17  ;;  %2853 = vxpose.xlu1.b32.cont [2/8] (short) (narrow) %v2109_v45, 8  ;;  %2543 = vxpose.xlu0.b32.cont [7/8] (short) (narrow) %v2090_v58, 8 }
 0x538   :  { %v1580_v52 = vpop.permute.xlu0 %1579 }
 0x539   :  { %v1692_v18 = vadd.f32 %v1580_v52, %v1180_v42 }
 0x53a   :  { %v2105_v59 = vld [vmem:[#allocation2 + $0x1a8] sm:$0xff] }
 0x53b   :  { %1756 = vst.msk [vmem:[#allocation2 + $0x1b8] sm:$0xff] %vm103_vm0, %v1692_v18  ;;  %2854 = vxpose.xlu1.b32.cont [3/8] (short) (narrow) %v2110_v44, 8  ;;  %2544 = vxpose.xlu0.b32.end [8/8] (short) (narrow) %v2091_v15, 8  ;;  %vm1886_vm0 = vcmp.eq.s32.totalorder %v5248_v39, %v5237_v30 }
 0x53e   :  { %v2106_v27 = vld [vmem:[#allocation2 + $0x1b0] sm:$0xff] }
 0x53f   :  { %2855 = vxpose.xlu1.b32.cont [4/8] (short) (narrow) %v2111_v3, 8  ;;  %2747 = vxpose.xlu0.b32.start [1/8] (short) (narrow) %v2100_v28, 8 }
 0x542   :  { %v2107_v43 = vld [vmem:[#allocation2 + $0x1b8] sm:$0xff] }
 0x543   :  { %2856 = vxpose.xlu1.b32.cont [5/8] (short) (narrow) %v2112_v34, 8  ;;  %2748 = vxpose.xlu0.b32.cont [2/8] (short) (narrow) %v2101_v12, 8 }
 0x547   :  { %2857 = vxpose.xlu1.b32.cont [6/8] (short) (narrow) %v2113_v54, 8  ;;  %2749 = vxpose.xlu0.b32.cont [3/8] (short) (narrow) %v2102_v2, 8 }
 0x549   :  { %v2238_v11 = vpop.trf.xlu1 }
 0x54a   :  { %3412 = vmatmul.mubr.msk.f32.vlgmr.msra.gmra.mxu1 %vm2148_vm4, %v2238_v11 }
 0x54b   :  { %2858 = vxpose.xlu1.b32.cont [7/8] (short) (narrow) %v2114_v57, 8  ;;  %2750 = vxpose.xlu0.b32.cont [4/8] (short) (narrow) %v2103_v26, 8 }
 0x54c   :  { %3434 = vmatpush3.msk.msra.mxu1 %vm1891_vm13, %v4092_v55  ;;  %3449 = vmatprep.mubr.msk.f32.mxu1 %vm4091_vm1, %v4089_v35  ;;  %vm1885_vm13 = vcmp.eq.s32.totalorder %v5273_v5, %v5237_v30 }
 0x54d   :  { %3435 = vmatprep.subr.mxu1 %v4089_v35 }
 0x54e   :  { %3436 = vmatpush3.msk.msra.mxu1 %vm1890_vm15, %v4092_v55  ;;  %vm1884_vm15 = vcmp.eq.s32.totalorder %v5977_v62, %v5237_v30 }
 0x54f   :  { %2859 = vxpose.xlu1.b32.end [8/8] (short) (narrow) %v2115_v21, 8  ;;  %2751 = vxpose.xlu0.b32.cont [5/8] (short) (narrow) %v2104_v19, 8 }
 0x550   :  { %3437 = vmatprep.subr.mxu1 %v4089_v35 }
 0x551   :  { %3438 = vmatpush3.msk.msra.mxu1 %vm1889_vm3, %v4092_v55  ;;  %vm1878_vm3 = vcmp.eq.s32.totalorder %v5248_v39, %v5234_v48 }
 0x552   :  { %3439 = vmatprep.subr.mxu1 %v4089_v35 }
 0x553   :  { %2752 = vxpose.xlu0.b32.cont [6/8] (short) (narrow) %v2105_v59, 8  ;;  %3440 = vmatpush3.msk.msra.mxu1 %vm1888_vm5, %v4092_v55  ;;  %vm1876_vm5 = vcmp.eq.s32.totalorder %v5977_v62, %v5234_v48 }
 0x554   :  { %3441 = vmatprep.subr.mxu1 %v4089_v35 }
 0x555   :  { %3442 = vmatpush3.msk.msra.mxu1 %vm1887_vm8, %v4092_v55  ;;  %vm5995_vm8 = vcmp.eq.s32.totalorder %v5162_v29, %v5368_v24 }
 0x556   :  { %3443 = vmatprep.subr.mxu1 %v4089_v35 }
 0x557   :  { %2753 = vxpose.xlu0.b32.cont [7/8] (short) (narrow) %v2106_v27, 8  ;;  %3444 = vmatpush3.msk.msra.mxu1 %vm1886_vm0, %v4092_v55  ;;  %vm5996_vm0 = vcmp.eq.s32.totalorder %v5168_v14, %v5368_v24 }
 0x558   :  { %3445 = vmatprep.subr.mxu1 %v4089_v35 }
 0x559   :  { %3446 = vmatpush3.msk.msra.mxu1 %vm1885_vm13, %v4092_v55  ;;  %vm5997_vm13 = vcmp.eq.s32.totalorder %v5179_v40, %v5368_v24 }
 0x55a   :  { %3447 = vmatprep.subr.mxu1 %v4089_v35 }
 0x55b   :  { %2754 = vxpose.xlu0.b32.end [8/8] (short) (narrow) %v2107_v43, 8  ;;  %v2132_v16 = vpop.trf.xlu0  ;;  %3448 = vmatpush3.msk.msra.mxu1 %vm1884_vm15, %v4092_v55  ;;  %vm5998_vm15 = vcmp.eq.s32.totalorder %v5202_v13, %v5368_v24 }
 0x55c   :  { %3393 = vmatmul.mubr.msk.f32.vlgmr.msra.gmra.mxu0 %vm2148_vm4, %v2132_v16  ;;  %3471 = vmatprep.subr.mxu1 %v4089_v35 }
 0x55d   :  { %3415 = vmatpush3.msk.msra.mxu0 %vm1883_vm12, %v4092_v55  ;;  %3430 = vmatprep.mubr.msk.f32.mxu0 %vm4091_vm1, %v4089_v35  ;;  %vm5993_vm12 = vcmp.eq.s32.totalorder %v5202_v13, %v5234_v48 }
 0x55e   :  { %3416 = vmatprep.subr.mxu0 %v4089_v35 }
 0x55f   :  { %3417 = vmatpush3.msk.msra.mxu0 %vm1882_vm14, %v4092_v55  ;;  %vm5994_vm14 = vcmp.eq.s32.totalorder %v5210_v33, %v5234_v48 }
 0x560   :  { %3418 = vmatprep.subr.mxu0 %v4089_v35 }
 0x561   :  { %3419 = vmatpush3.msk.msra.mxu0 %vm1881_vm2, %v4092_v55  ;;  %vm1877_vm2 = vcmp.eq.s32.totalorder %v5273_v5, %v5234_v48 }
 0x562   :  { %3420 = vmatprep.subr.mxu0 %v4089_v35 }
 0x563   :  { %3421 = vmatpush3.msk.msra.mxu0 %vm5993_vm12, %v4092_v55  ;;  %vm1902_vm12 = vcmp.eq.s32.totalorder %v5248_v39, %v5368_v24 }
 0x564   :  { %3422 = vmatprep.subr.mxu0 %v4089_v35 }
 0x565   :  { %3423 = vmatpush3.msk.msra.mxu0 %vm5994_vm14, %v4092_v55  ;;  %vm1901_vm14 = vcmp.eq.s32.totalorder %v5273_v5, %v5368_v24 }
 0x566   :  { %3424 = vmatprep.subr.mxu0 %v4089_v35 }
 0x567   :  { %3425 = vmatpush3.msk.msra.mxu0 %vm1878_vm3, %v4092_v55  ;;  %vm5999_vm3 = vcmp.eq.s32.totalorder %v5210_v33, %v5368_v24 }
 0x568   :  { %3426 = vmatprep.subr.mxu0 %v4089_v35 }
 0x569   :  { %3427 = vmatpush3.msk.msra.mxu0 %vm1877_vm2, %v4092_v55  ;;  %v2448_v30 = vpop.trf.xlu1  ;;  %vm1900_vm2 = vcmp.eq.s32.totalorder %v5977_v62, %v5368_v24 }
 0x56a   :  { %3428 = vmatprep.subr.mxu0 %v4089_v35  ;;  %3450 = vmatmul.mubr.msk.f32.vlgmr.msra.gmra.mxu1 %vm2148_vm4, %v2448_v30 }
 0x56b   :  { %3429 = vmatpush3.msk.msra.mxu0 %vm1876_vm5, %v4092_v55  ;;  %3472 = vmatpush3.msk.msra.mxu1 %vm5995_vm8, %v4092_v55  ;;  %vm6000_vm5 = vcmp.eq.s32.totalorder %v5162_v29, %v5358_v0  ;;  %vm6001_vm8 = vcmp.eq.s32.totalorder %v5168_v14, %v5358_v0 }
 0x56c   :  { %3452 = vmatprep.subr.mxu0 %v4089_v35  ;;  %3473 = vmatprep.subr.mxu1 %v4089_v35 }
 0x56d   :  { %3474 = vmatpush3.msk.msra.mxu1 %vm5996_vm0, %v4092_v55  ;;  %3487 = vmatprep.mubr.msk.f32.mxu1 %vm4091_vm1, %v4089_v35  ;;  %vm6002_vm0 = vcmp.eq.s32.totalorder %v5179_v40, %v5358_v0 }
 0x56e   :  { %3475 = vmatprep.subr.mxu1 %v4089_v35 }
 0x56f   :  { %3476 = vmatpush3.msk.msra.mxu1 %vm5997_vm13, %v4092_v55  ;;  %vm6003_vm13 = vcmp.eq.s32.totalorder %v5202_v13, %v5358_v0 }
 0x570   :  { %3477 = vmatprep.subr.mxu1 %v4089_v35 }
 0x571   :  { %3478 = vmatpush3.msk.msra.mxu1 %vm5998_vm15, %v4092_v55  ;;  %vm1894_vm15 = vcmp.eq.s32.totalorder %v5248_v39, %v5358_v0 }
 0x572   :  { %3479 = vmatprep.subr.mxu1 %v4089_v35 }
 0x573   :  { %3480 = vmatpush3.msk.msra.mxu1 %vm5999_vm3, %v4092_v55  ;;  %vm1893_vm3 = vcmp.eq.s32.totalorder %v5273_v5, %v5358_v0 }
 0x574   :  { %3481 = vmatprep.subr.mxu1 %v4089_v35 }
 0x575   :  { %3482 = vmatpush3.msk.msra.mxu1 %vm1902_vm12, %v4092_v55  ;;  %vm6004_vm12 = vcmp.eq.s32.totalorder %v5210_v33, %v5358_v0 }
 0x576   :  { %3483 = vmatprep.subr.mxu1 %v4089_v35 }
 0x577   :  { %3484 = vmatpush3.msk.msra.mxu1 %vm1901_vm14, %v4092_v55  ;;  %vm1892_vm14 = vcmp.eq.s32.totalorder %v5977_v62, %v5358_v0 }
 0x578   :  { %3485 = vmatprep.subr.mxu1 %v4089_v35 }
 0x579   :  { %3486 = vmatpush3.msk.msra.mxu1 %vm1900_vm2, %v4092_v55  ;;  %vm6005_vm2 = vcmp.eq.s32.totalorder %v5162_v29, %v5425_v53 }
 0x57a   :  { %3509 = vmatprep.subr.mxu1 %v4089_v35 }
 0x57b   :  { %v2343_v48 = vpop.trf.xlu0 }
 0x57c   :  { %3431 = vmatmul.mubr.msk.f32.vlgmr.msra.gmra.mxu0 %vm2148_vm4, %v2343_v48 }
 0x57d   :  { %3453 = vmatpush3.msk.msra.mxu0 %vm6000_vm5, %v4092_v55  ;;  %3468 = vmatprep.mubr.msk.f32.mxu0 %vm4091_vm1, %v4089_v35  ;;  %vm6006_vm5 = vcmp.eq.s32.totalorder %v5168_v14, %v5425_v53 }
 0x57e   :  { %3454 = vmatprep.subr.mxu0 %v4089_v35 }
 0x57f   :  { %3455 = vmatpush3.msk.msra.mxu0 %vm6001_vm8, %v4092_v55  ;;  %vm6007_vm8 = vcmp.eq.s32.totalorder %v5179_v40, %v5425_v53  ;;  %v5707_v40 = vld [vmem:[#allocation8] sm:$0xff] }
 0x580   :  { %3456 = vmatprep.subr.mxu0 %v4089_v35  ;;  %v2964_v13 = vrot.slane %v5707_v40, %v5150_v10 }
 0x581   :  { %3457 = vmatpush3.msk.msra.mxu0 %vm6002_vm0, %v4092_v55  ;;  %vm1918_vm0 = vcmp.eq.s32.totalorder %v5248_v39, %v5425_v53 }
 0x582   :  { %3458 = vmatprep.subr.mxu0 %v4089_v35  ;;  %v2980_v9 = vrot.slane %v2964_v13, %v5150_v10 }
 0x583   :  { %3459 = vmatpush3.msk.msra.mxu0 %vm6003_vm13, %v4092_v55  ;;  %vm1917_vm13 = vcmp.eq.s32.totalorder %v5273_v5, %v5425_v53 }
 0x584   :  { %3460 = vmatprep.subr.mxu0 %v4089_v35  ;;  %v3009_v46 = vrot.slane %v2980_v9, %v4643_v56  ;;  %v3002_v32 = vcombine.high %v2980_v9, %v2980_v9 }
 0x585   :  { %3461 = vmatpush3.msk.msra.mxu0 %vm6004_vm12, %v4092_v55  ;;  %vm3126_vm12 = vcmask 1041409  }
 0x586   :  { %3462 = vmatprep.subr.mxu0 %v4089_v35  ;;  %v3017_v52 = vrot.slane %v3002_v32, %v4643_v56 }
 0x587   :  { %3463 = vmatpush3.msk.msra.mxu0 %vm1894_vm15, %v4092_v55 }
 0x588   :  { %3464 = vmatprep.subr.mxu0 %v4089_v35 }
 0x589   :  { %3465 = vmatpush3.msk.msra.mxu0 %vm1893_vm3, %v4092_v55 }
 0x58a   :  { %3466 = vmatprep.subr.mxu0 %v4089_v35 }
 0x58b   :  { %3467 = vmatpush3.msk.msra.mxu0 %vm1892_vm14, %v4092_v55  ;;  %vm3040_vm14 = vcmp.eq.s32.totalorder %v5977_v62, %v3017_v52 }
 0x58c   :  { %3490 = vmatprep.subr.mxu0 %v4089_v35  ;;  %v3298_v15 = vsel %vm3040_vm14, 1.0, %v4089_v35 }
 0x58f   :  { %v2658_v24 = vpop.trf.xlu1 }
 0x590   :  { %3488 = vmatmul.mubr.msk.f32.vlgmr.msra.gmra.mxu1 %vm2148_vm4, %v2658_v24  ;;  %v2957_v24 = vcombine.high %v5707_v40, %v5707_v40 }
 0x591   :  { %3510 = vmatpush3.msk.msra.mxu1 %vm6005_vm2, %v4092_v55  ;;  %3525 = vmatprep.mubr.msk.f32.mxu1 %vm4091_vm1, %v4089_v35  ;;  %vm3128_vm2 = vcmask 1042434  }
 0x592   :  { %3511 = vmatprep.subr.mxu1 %v4089_v35 }
 0x593   :  { %3512 = vmatpush3.msk.msra.mxu1 %vm6006_vm5, %v4092_v55  ;;  %vm3130_vm5 = vcmask 1043459  }
 0x594   :  { %3513 = vmatprep.subr.mxu1 %v4089_v35 }
 0x595   :  { %3514 = vmatpush3.msk.msra.mxu1 %vm6007_vm8, %v4092_v55 }
 0x596   :  { %3515 = vmatprep.subr.mxu1 %v4089_v35 }
 0x597   :  { %3516 = vmatpush3.msk.msra.mxu1 %vm1920_vm11, %v4092_v55  ;;  %vm1916_vm11 = vcmp.eq.s32.totalorder %v5977_v62, %v5425_v53 }
 0x598   :  { %3517 = vmatprep.subr.mxu1 %v4089_v35 }
 0x599   :  { %3518 = vmatpush3.msk.msra.mxu1 %vm1919_vm9, %v4092_v55  ;;  %vm6008_vm9 = vcmp.eq.s32.totalorder %v5168_v14, %v5428_v23 }
 0x59a   :  { %3519 = vmatprep.subr.mxu1 %v4089_v35 }
 0x59b   :  { %v2553_v0 = vpop.trf.xlu0  ;;  %3520 = vmatpush3.msk.msra.mxu1 %vm1918_vm0, %v4092_v55 }
 0x59c   :  { %3469 = vmatmul.mubr.msk.f32.vlgmr.msra.gmra.mxu0 %vm2148_vm4, %v2553_v0  ;;  %3521 = vmatprep.subr.mxu1 %v4089_v35  ;;  %v2971_v0 = vrot.slane %v2957_v24, %v5150_v10 }
 0x59d   :  { %3491 = vmatpush3.msk.msra.mxu0 %vm1915_vm10, %v4092_v55  ;;  %3522 = vmatpush3.msk.msra.mxu1 %vm1917_vm13, %v4092_v55  ;;  %vm1910_vm10 = vcmp.eq.s32.totalorder %v5248_v39, %v5428_v23 }
 0x59e   :  { %3492 = vmatprep.subr.mxu0 %v4089_v35  ;;  %3523 = vmatprep.subr.mxu1 %v4089_v35 }
 0x59f   :  { %3493 = vmatpush3.msk.msra.mxu0 %vm6008_vm9, %v4092_v55  ;;  %3524 = vmatpush3.msk.msra.mxu1 %vm1916_vm11, %v4092_v55  ;;  %vm3132_vm9 = vcmask 1044484  }
 0x5a0   :  { %3494 = vmatprep.subr.mxu0 %v4089_v35  ;;  %3506 = vmatprep.mubr.msk.f32.mxu0 %vm4091_vm1, %v4089_v35  ;;  %vm6009_vm1 = vcmp.eq.s32.totalorder %v5210_v33, %v5428_v23  ;;  %v2972_v33 = vcombine.high %v2964_v13, %v2964_v13  ;;  %v2987_v13 = vrot.slane %v2971_v0, %v5150_v10 }
 0x5a1   :  { %3495 = vmatpush3.msk.msra.mxu0 %vm1913_vm6, %v4092_v55  ;;  %vm1909_vm6 = vcmp.eq.s32.totalorder %v5273_v5, %v5428_v23 }
 0x5a2   :  { %3496 = vmatprep.subr.mxu0 %v4089_v35  ;;  %v2994_v39 = vrot.slane %v2972_v33, %v5150_v10 }
 0x5a3   :  { %3497 = vmatpush3.msk.msra.mxu0 %vm1912_vm7, %v4092_v55  ;;  %vm1908_vm7 = vcmp.eq.s32.totalorder %v5977_v62, %v5428_v23 }
 0x5a4   :  { %3498 = vmatprep.subr.mxu0 %v4089_v35  ;;  %v3013_v5 = vrot.slane %v2994_v39, %v4643_v56  ;;  %v3004_v37 = vcombine.high %v2994_v39, %v2994_v39 }
 0x5a5   :  { %3499 = vmatpush3.msk.msra.mxu0 %vm6009_vm1, %v4092_v55  ;;  %vm3136_vm1 = vcmask 1046534  }
 0x5a6   :  { %3500 = vmatprep.subr.mxu0 %v4089_v35  ;;  %vm3039_vm15 = vcmp.eq.s32.totalorder %v5977_v62, %v3013_v5  ;;  %v3021_v20 = vrot.slane %v3004_v37, %v4643_v56  ;;  %v3025_v5 = vrot.slane %v2987_v13, %v4643_v56 }
 0x5a7   :  { %3501 = vmatpush3.msk.msra.mxu0 %vm1910_vm10, %v4092_v55  ;;  %vm3134_vm10 = vcmask 1045509  }
 0x5a8   :  { %3502 = vmatprep.subr.mxu0 %v4089_v35  ;;  %vm3041_vm3 = vcmp.eq.s32.totalorder %v5977_v62, %v3021_v20  ;;  %vm3042_vm8 = vcmp.eq.s32.totalorder %v5977_v62, %v3025_v5 }
 0x5a9   :  { %3503 = vmatpush3.msk.msra.mxu0 %vm1909_vm6, %v4092_v55  ;;  %v3299_v58 = vsel %vm3041_vm3, 1.0, %v4089_v35  ;;  %vm3138_vm6 = vcmask 1047559  }
 0x5aa   :  { %3504 = vmatprep.subr.mxu0 %v4089_v35 }
 0x5ab   :  { %3505 = vmatpush3.msk.msra.mxu0 %vm1908_vm7, %v4092_v55  ;;  %v3297_v55 = vsel %vm3039_vm15, 1.0, %v4089_v35 }
 0x5af   :  { %v2868_v29 = vpop.trf.xlu1 }
 0x5b0   :  { %3526 = vmatmul.mubr.msk.f32.vlgmr.msra.gmra.mxu1 %vm2148_vm4, %v2868_v29 }
 0x5bb   :  { %v2763_v14 = vpop.trf.xlu0 }
 0x5bc   :  { %3507 = vmatmul.mubr.msk.f32.vlgmr.msra.gmra.mxu0 %vm2148_vm4, %v2763_v14  ;;  %vm3038_vm4 = vcmp.eq.s32.totalorder %v5977_v62, %v3009_v46  ;;  %v2973_v14 = vcombine.high %v2971_v0, %v2971_v0 }
 0x5bd   :  { %v3296_v61 = vsel %vm3038_vm4, 1.0, %v4089_v35 }
 0x5be   :  { %v3001_v39 = vrot.slane %v2973_v14, %v5150_v10 }
 0x60a   :  { %v2323_v53 = vpop.f32.mrf.mxu1 }
 0x60b   :  { %v3063_v4 = vmul.f32 %v3297_v55, %v2323_v53  ;;  %v3029_v53 = vrot.slane %v3001_v39, %v4643_v56  ;;  %v3005_v55 = vcombine.high %v3001_v39, %v3001_v39 }
 0x60c   :  { %v3413_v23 = vpop.f32.mrf.mxu1 }
 0x60d   :  { %v3076_v41 = vrot.slane %v3063_v4, 4  ;;  %v3300_v23 = vsel %vm3042_vm8, 1.0, %v4089_v35  ;;  %vm3043_vm0 = vcmp.eq.s32.totalorder %v5977_v62, %v3029_v53  ;;  %v3037_v40 = vrot.slane %v3005_v55, %v4643_v56 }
 0x60f   :  { %v3077_v7 = vadd.f32 %v3076_v41, %v3063_v4  ;;  %v3301_v4 = vsel %vm3043_vm0, 1.0, %v4089_v35  ;;  %vm3045_vm13 = vcmp.eq.s32.totalorder %v5977_v62, %v3037_v40 }
 0x610   :  { %v3303_v41 = vsel %vm3045_vm13, 1.0, %v4089_v35 }
 0x611   :  { %v3078_v47 = vrot.slane %v3077_v7, 2 }
 0x613   :  { %v3079_v50 = vadd.f32 %v3078_v47, %v3077_v7  ;;  %v3003_v7 = vcombine.high %v2987_v13, %v2987_v13 }
 0x615   :  { %v3080_v51 = vrot.slane %v3079_v50, 1 }
 0x617   :  { %v3081_v8 = vadd.f32 %v3080_v51, %v3079_v50 }
 0x61c   :  { %v2218_v49 = vpop.f32.mrf.mxu0 }
 0x61d   :  { %v3062_v63 = vmul.f32 %v3296_v61, %v2218_v49 }
 0x61e   :  { %v3394_v31 = vpop.f32.mrf.mxu0 }
 0x61f   :  { %v3070_v36 = vrot.slane %v3062_v63, 4 }
 0x621   :  { %v3071_v22 = vadd.f32 %v3070_v36, %v3062_v63  ;;  %v3033_v36 = vrot.slane %v3003_v7, %v4643_v56 }
 0x623   :  { %v3072_v38 = vrot.slane %v3071_v22, 2  ;;  %vm3044_vm11 = vcmp.eq.s32.totalorder %v5977_v62, %v3033_v36 }
 0x625   :  { %v3073_v60 = vadd.f32 %v3072_v38, %v3071_v22 }
 0x627   :  { %v3074_v6 = vrot.slane %v3073_v60, 1 }
 0x629   :  { %v3075_v25 = vadd.f32 %v3074_v6, %v3073_v60  ;;  %v3302_v60 = vsel %vm3044_vm11, 1.0, %v4089_v35 }
 0x62a   :  { %v2533_v1 = vpop.f32.mrf.mxu1 }
 0x62b   :  { %v3127_v17 = vsel %vm3126_vm12, %v3081_v8, %v3075_v25  ;;  %v3065_v42 = vmul.f32 %v3299_v58, %v2533_v1 }
 0x62c   :  { %v3451_v45 = vpop.f32.mrf.mxu1 }
 0x62d   :  { %v3088_v18 = vrot.slane %v3065_v42, 4 }
 0x62f   :  { %v3089_v44 = vadd.f32 %v3088_v18, %v3065_v42 }
 0x631   :  { %v3090_v28 = vrot.slane %v3089_v44, 2 }
 0x633   :  { %v3091_v2 = vadd.f32 %v3090_v28, %v3089_v44 }
 0x635   :  { %v3092_v26 = vrot.slane %v3091_v2, 1 }
 0x637   :  { %v3093_v59 = vadd.f32 %v3092_v26, %v3091_v2 }
 0x63c   :  { %v2428_v3 = vpop.f32.mrf.mxu0 }
 0x63d   :  { %v3064_v34 = vmul.f32 %v3298_v15, %v2428_v3 }
 0x63e   :  { %v3432_v12 = vpop.f32.mrf.mxu0 }
 0x63f   :  { %v3082_v54 = vrot.slane %v3064_v34, 4 }
 0x641   :  { %v3083_v11 = vadd.f32 %v3082_v54, %v3064_v34 }
 0x643   :  { %v3084_v57 = vrot.slane %v3083_v11, 2 }
 0x645   :  { %v3085_v21 = vadd.f32 %v3084_v57, %v3083_v11 }
 0x647   :  { %v3086_v19 = vrot.slane %v3085_v21, 1 }
 0x649   :  { %v3087_v27 = vadd.f32 %v3086_v19, %v3085_v21 }
 0x64b   :  { %v3129_v43 = vsel %vm3128_vm2, %v3087_v27, %v3127_v17 }
 0x64c   :  { %v3131_v16 = vsel %vm3130_vm5, %v3093_v59, %v3129_v43 }
 0x650   :  { %v2743_v30 = vpop.f32.mrf.mxu1 }
 0x651   :  { %v3067_v46 = vmul.f32 %v3301_v4, %v2743_v30 }
 0x652   :  { %v3489_v48 = vpop.f32.mrf.mxu1 }
 0x653   :  { %v3100_v47 = vrot.slane %v3067_v46, 4 }
 0x655   :  { %v3101_v50 = vadd.f32 %v3100_v47, %v3067_v46 }
 0x657   :  { %v3102_v38 = vrot.slane %v3101_v50, 2 }
 0x659   :  { %v3103_v25 = vadd.f32 %v3102_v38, %v3101_v50 }
 0x65b   :  { %v3104_v42 = vrot.slane %v3103_v25, 1 }
 0x65c   :  { %v2638_v29 = vpop.f32.mrf.mxu0 }
 0x65d   :  { %v3066_v9 = vmul.f32 %v3300_v23, %v2638_v29  ;;  %v3105_v62 = vadd.f32 %v3104_v42, %v3103_v25 }
 0x65e   :  { %v3470_v33 = vpop.f32.mrf.mxu0 }
 0x65f   :  { %v3094_v10 = vrot.slane %v3066_v9, 4 }
 0x661   :  { %v3095_v31 = vadd.f32 %v3094_v10, %v3066_v9 }
 0x663   :  { %v3096_v37 = vrot.slane %v3095_v31, 2 }
 0x665   :  { %v3097_v20 = vadd.f32 %v3096_v37, %v3095_v31 }
 0x667   :  { %v3098_v45 = vrot.slane %v3097_v20, 1 }
 0x669   :  { %v3099_v52 = vadd.f32 %v3098_v45, %v3097_v20 }
 0x66b   :  { %v3133_v28 = vsel %vm3132_vm9, %v3099_v52, %v3131_v16 }
 0x66c   :  { %v3135_v12 = vsel %vm3134_vm10, %v3105_v62, %v3133_v28 }
 0x670   :  { %v2953_v61 = vpop.f32.mrf.mxu1 }
 0x671   :  { %v3069_v49 = vmul.f32 %v3303_v41, %v2953_v61 }
 0x672   :  { %v3527_v63 = vpop.f32.mrf.mxu1 }
 0x673   :  { %v3112_v22 = vrot.slane %v3069_v49, 4 }
 0x675   :  { %v3113_v51 = vadd.f32 %v3112_v22, %v3069_v49 }
 0x677   :  { %v3114_v1 = vrot.slane %v3113_v51, 2 }
 0x679   :  { %v3115_v56 = vadd.f32 %v3114_v1, %v3113_v51 }
 0x67b   :  { %v3116_v15 = vrot.slane %v3115_v56, 1 }
 0x67c   :  { %v2848_v6 = vpop.f32.mrf.mxu0 }
 0x67d   :  { %v3068_v8 = vmul.f32 %v3302_v60, %v2848_v6  ;;  %v3117_v34 = vadd.f32 %v3116_v15, %v3115_v56 }
 0x67e   :  { %v3508_v17 = vpop.f32.mrf.mxu0 }
 0x67f   :  { %v3106_v58 = vrot.slane %v3068_v8, 4 }
 0x681   :  { %v3107_v32 = vadd.f32 %v3106_v58, %v3068_v8 }
 0x683   :  { %v3108_v18 = vrot.slane %v3107_v32, 2 }
 0x685   :  { %v3109_v44 = vadd.f32 %v3108_v18, %v3107_v32 }
 0x687   :  { %v3110_v3 = vrot.slane %v3109_v44, 1 }
 0x689   :  { %v3111_v35 = vadd.f32 %v3110_v3, %v3109_v44 }
 0x68b   :  { %v3137_v54 = vsel %vm3136_vm1, %v3111_v35, %v3135_v12 }
 0x68c   :  { %v3139_v2 = vsel %vm3138_vm6, %v3117_v34, %v3137_v54 }
 0x68d   :  { %3141 = vst [vmem:[#allocation14] sm:$0xff] %v3139_v2 }
 0x68e   :  { %4062 = shalt.err (!%p4059_p6)
}
 0x68f   :  { %3151 = dma.vmem_to_hbm [thread:$0]  %s3149_s5, 128, %s5751_s6, [#allocation5]  }
 0x690   :  { %4079 = dma.done.wait [#allocation5], 128  }
 0x691   :  { %4080 = vsyncadd [#allocation5], 4294967168 }
 0x692   :  { %3155 = vsyncpa [#allocation4], 1 }
 0x693   :  { %3156 = vsyncpa [#allocation7], 1 }
 0x694   :  { %3157 = vsyncpa [#allocation10], 1 }
 0x695   :  { %3158 = vsyncpa [#allocation13], 1 }
 0x696   :  { %3159 = vsyncpa [#allocation5], 1 }

</bundles_post_ra>
